<compile_context>
chip_gen: v5e
topology: v5e:2x2
jax: 0.10.0
libtpu: 0.0.40
codegen_flags: <defaults>
</compile_context>

<pallas_src>
import functools

import jax
import jax.numpy as jnp
from jax.experimental import pallas as pl
from jax.experimental.pallas import tpu as pltpu

_INV_SQRT2 = 0.7071067811865476
_LANE = 128
_EPS = 1e-5


def _round_up(v, m):
    return ((v + m - 1) // m) * m


def _gelu(x):
    # Exact (erf-based) GELU, matching torch.nn.GELU defaults.
    return 0.5 * x * (1.0 + jax.lax.erf(x * _INV_SQRT2))


# ----------------------------------------------------------------------------
# Kernels
# ----------------------------------------------------------------------------
def _maxpool_kernel(x_ref, o_ref):
    # x_ref: (1, 2, H, W//2, 2C)   (wrapper folded W-pairs into the lane dim)
    # o_ref: (1, 1, H//2, W//2, C)
    c = o_ref.shape[-1]
    a = x_ref[0, 0]                               # (H, W2, 2C)
    b = x_ref[0, 1]
    y = jnp.maximum(a, b)                         # depth pairs
    y = jnp.maximum(y[..., :c], y[..., c:])       # width pairs (lane-aligned)
    h = y.shape[0]
    y = y.reshape(h // 2, 2, y.shape[1], c)       # split leading dim only
    y = jnp.maximum(y[:, 0], y[:, 1])             # height pairs
    o_ref[0, 0] = y


def _conv_kernel(x_ref, w_ref, m_ref, o_ref, acc_ref, *, P, Wp):
    # x_ref: (1, 1, P_in, Cin) bf16 -- one padded+guarded flat plane (d_out+kd)
    # w_ref: (3, 9, Cin, Cout) bf16 -- resident packed weights
    # m_ref: (P, 1) f32            -- interior mask (zero at plane borders)
    # o_ref: (1, 1, P, Cout) f32   -- flat-padded output plane
    # acc_ref: (P, Cout) f32 VMEM accumulator over the kd reduction axis
    kd = pl.program_id(2)

    @pl.when(kd == 0)
    def _():
        acc_ref[...] = jnp.zeros_like(acc_ref)

    part = None
    for kh in range(3):
        for kw in range(3):
            off = kh * Wp + kw
            a = x_ref[0, 0, off:off + P, :]                       # (P, Cin)
            r = jnp.dot(a, w_ref[kd, kh * 3 + kw],
                        preferred_element_type=jnp.float32)       # (P, Cout)
            part = r if part is None else part + r
    acc_ref[...] += part

    @pl.when(kd == pl.num_programs(2) - 1)
    def _():
        o_ref[0, 0] = (acc_ref[...] * m_ref[...]).astype(o_ref.dtype)


def _gn_stats_kernel(x_ref, stat_ref, acc_ref, *, inv_count, eps):
    # Pass 1 of GroupNorm(1): accumulate per-sample sum / sum-of-squares across
    # the depth grid axis (marked "arbitrary").  Borders / padded channels are
    # exact zeros, so dividing by the *real* element count gives exact stats.
    d = pl.program_id(1)

    @pl.when(d == 0)
    def _():
        acc_ref[...] = jnp.zeros_like(acc_ref)

    x = x_ref[0, 0]                                               # (P, C) f32
    acc_ref[0:1, :] += jnp.sum(x, axis=0, keepdims=True)
    acc_ref[1:2, :] += jnp.sum(x * x, axis=0, keepdims=True)

    @pl.when(d == pl.num_programs(1) - 1)
    def _():
        mean = jnp.sum(acc_ref[0:1, :], axis=1, keepdims=True) * inv_count
        ex2 = jnp.sum(acc_ref[1:2, :], axis=1, keepdims=True) * inv_count
        rstd = jax.lax.rsqrt(ex2 - mean * mean + eps)
        stat_ref[0, 0] = jnp.broadcast_to(mean, (8, 128))
        stat_ref[0, 1] = jnp.broadcast_to(rstd, (8, 128))


def _gn_affine(x_ref, stat_ref, g_ref, b_ref):
    mean = stat_ref[0, 0, :1, :1]
    rstd = stat_ref[0, 1, :1, :1]
    return (x_ref[...] - mean) * rstd * g_ref[...] + b_ref[...]


def _gn_gelu_kernel(x_ref, stat_ref, g_ref, b_ref, m_ref, o_ref):
    o_ref[...] = _gelu(_gn_affine(x_ref, stat_ref, g_ref, b_ref)) * m_ref[...]


def _gn_res_gelu_kernel(x_ref, stat_ref, g_ref, b_ref, m_ref, r_ref, o_ref):
    y = _gn_affine(x_ref, stat_ref, g_ref, b_ref) + r_ref[...]
    o_ref[...] = _gelu(y) * m_ref[...]


def _gn_emb_kernel(x_ref, stat_ref, g_ref, b_ref, e_ref, o_ref):
    o_ref[...] = _gn_affine(x_ref, stat_ref, g_ref, b_ref) + e_ref[...]


def _silu_linear_kernel(t_ref, w_ref, b_ref, o_ref):
    t = t_ref[...]
    s = t * jax.nn.sigmoid(t)                       # SiLU in f32
    o_ref[...] = jnp.dot(s.astype(w_ref.dtype), w_ref[...],
                         preferred_element_type=jnp.float32) + b_ref[...]


# ----------------------------------------------------------------------------
# Layer wrappers
# ----------------------------------------------------------------------------
def maxpool3d_2(x):
    # x: (N, D, H, W, C) f32, D/H/W even, C multiple of 128
    n, d, h, w, c = x.shape
    xr = x.reshape(n, d, h, w // 2, 2 * c)          # bitcast-compatible reshape
    return pl.pallas_call(
        _maxpool_kernel,
        grid=(n, d // 2),
        in_specs=[pl.BlockSpec((1, 2, h, w // 2, 2 * c),
                               lambda i, j: (i, j, 0, 0, 0))],
        out_specs=pl.BlockSpec((1, 1, h // 2, w // 2, c),
                               lambda i, j: (i, j, 0, 0, 0)),
        out_shape=jax.ShapeDtypeStruct((n, d // 2, h // 2, w // 2, c), jnp.float32),
        compiler_params=pltpu.CompilerParams(
            dimension_semantics=("parallel", "parallel")),
    )(xr)


def conv3x3x3(x_flat, w_packed, mask, *, Wp, c_out_p):
    # x_flat: (N, D, P, Cin_p) f32, flat-padded planes with zero borders
    n, d, P, c_in_p = x_flat.shape
    g = Wp + 1                                       # guard rows per side
    p_in = P + 2 * g
    xin = jnp.pad(x_flat, ((0, 0), (1, 1), (g, g), (0, 0))).astype(jnp.bfloat16)
    kern = functools.partial(_conv_kernel, P=P, Wp=Wp)
    return pl.pallas_call(
        kern,
        grid=(n, d, 3),
        in_specs=[
            pl.BlockSpec((1, 1, p_in, c_in_p), lambda i, j, k: (i, j + k, 0, 0)),
            pl.BlockSpec((3, 9, c_in_p, c_out_p), lambda i, j, k: (0, 0, 0, 0)),
            pl.BlockSpec((P, 1), lambda i, j, k: (0, 0)),
        ],
        out_specs=pl.BlockSpec((1, 1, P, c_out_p), lambda i, j, k: (i, j, 0, 0)),
        out_shape=jax.ShapeDtypeStruct((n, d, P, c_out_p), jnp.float32),
        scratch_shapes=[pltpu.VMEM((P, c_out_p), jnp.float32)],
        compiler_params=pltpu.CompilerParams(
            dimension_semantics=("parallel", "parallel", "arbitrary")),
    )(xin, w_packed, mask)


def groupnorm_stats(x_flat, *, count):
    n, d, P, c = x_flat.shape
    kern = functools.partial(_gn_stats_kernel, inv_count=1.0 / count, eps=_EPS)
    return pl.pallas_call(
        kern,
        grid=(n, d),
        in_specs=[pl.BlockSpec((1, 1, P, c), lambda i, j: (i, j, 0, 0))],
        out_specs=pl.BlockSpec((1, 2, 8, 128), lambda i, j: (i, 0, 0, 0)),
        out_shape=jax.ShapeDtypeStruct((n, 2, 8, 128), jnp.float32),
        scratch_shapes=[pltpu.VMEM((2, c), jnp.float32)],
        compiler_params=pltpu.CompilerParams(
            dimension_semantics=("parallel", "arbitrary")),
    )(x_flat)


def groupnorm_apply(x_flat, stats, gamma, beta, mask, *, extra=None, mode="gelu"):
    n, d, P, c = x_flat.shape
    in_specs = [
        pl.BlockSpec((1, 1, P, c), lambda i, j: (i, j, 0, 0)),
        pl.BlockSpec((1, 2, 8, 128), lambda i, j: (i, 0, 0, 0)),
        pl.BlockSpec((1, c), lambda i, j: (0, 0)),
        pl.BlockSpec((1, c), lambda i, j: (0, 0)),
    ]
    args = [x_flat, stats, gamma, beta]
    if mode == "gelu":
        kern = _gn_gelu_kernel
        in_specs += [pl.BlockSpec((P, 1), lambda i, j: (0, 0))]
        args += [mask]
    elif mode == "res_gelu":
        kern = _gn_res_gelu_kernel
        in_specs += [pl.BlockSpec((P, 1), lambda i, j: (0, 0)),
                     pl.BlockSpec((1, 1, P, c), lambda i, j: (i, j, 0, 0))]
        args += [mask, extra]
    elif mode == "emb":
        kern = _gn_emb_kernel
        e3 = extra.reshape(extra.shape[0], 1, c)
        in_specs += [pl.BlockSpec((1, 1, c), lambda i, j: (i, 0, 0))]
        args += [e3]
    else:
        raise ValueError(mode)
    return pl.pallas_call(
        kern,
        grid=(n, d),
        in_specs=in_specs,
        out_specs=pl.BlockSpec((1, 1, P, c), lambda i, j: (i, j, 0, 0)),
        out_shape=jax.ShapeDtypeStruct((n, d, P, c), jnp.float32),
        compiler_params=pltpu.CompilerParams(
            dimension_semantics=("parallel", "parallel")),
    )(*args)


def silu_linear(t, w_bf16, b):
    n = t.shape[0]
    c = w_bf16.shape[1]
    return pl.pallas_call(
        _silu_linear_kernel,
        grid=(1,),
        in_specs=[pl.BlockSpec(t.shape, lambda i: (0, 0)),
                  pl.BlockSpec(w_bf16.shape, lambda i: (0, 0)),
                  pl.BlockSpec(b.shape, lambda i: (0, 0))],
        out_specs=pl.BlockSpec((n, c), lambda i: (0, 0)),
        out_shape=jax.ShapeDtypeStruct((n, c), jnp.float32),
    )(t, w_bf16, b)


# ----------------------------------------------------------------------------
# Layout helpers (JAX glue)
# ----------------------------------------------------------------------------
def _spatial_to_flat(x5):
    # (N, D, H, W, C) -> (N, D, (H+2)*(W+2), C) with zero h/w borders.
    n, d, h, w, c = x5.shape
    xp = jnp.pad(x5, ((0, 0), (0, 0), (1, 1), (1, 1), (0, 0)))
    return xp.reshape(n, d, (h + 2) * (w + 2), c)


def _make_mask(h, w):
    wp = w + 2
    p = (h + 2) * wp
    hp = jnp.arange(p) // wp
    wq = jnp.arange(p) % wp
    valid = (hp >= 1) & (hp <= h) & (wq >= 1) & (wq <= w)
    return valid.astype(jnp.float32).reshape(p, 1)


# ----------------------------------------------------------------------------
# Parameter init / packing
# ----------------------------------------------------------------------------
def init_params(key, c_in, c_out, emb_dim):
    ks = jax.random.split(key, 6)

    def conv_w(k, co, ci):
        return 0.1 * jax.random.normal(k, (co, ci, 3, 3, 3), jnp.float32)

    dc1 = dict(  # DoubleConv(c_in, c_in, residual=True) -> mid = c_in
        w1=conv_w(ks[0], c_in, c_in),
        g1=jnp.ones((c_in,), jnp.float32), b1=jnp.zeros((c_in,), jnp.float32),
        w2=conv_w(ks[1], c_in, c_in),
        g2=jnp.ones((c_in,), jnp.float32), b2=jnp.zeros((c_in,), jnp.float32),
    )
    dc2 = dict(  # DoubleConv(c_in, c_out) -> mid = c_out
        w1=conv_w(ks[2], c_out, c_in),
        g1=jnp.ones((c_out,), jnp.float32), b1=jnp.zeros((c_out,), jnp.float32),
        w2=conv_w(ks[3], c_out, c_out),
        g2=jnp.ones((c_out,), jnp.float32), b2=jnp.zeros((c_out,), jnp.float32),
    )
    emb_w = 0.1 * jax.random.normal(ks[4], (c_out, emb_dim), jnp.float32)
    emb_b = 0.01 * jax.random.normal(ks[5], (c_out,), jnp.float32)
    return dict(dc1=dc1, dc2=dc2, emb_w=emb_w, emb_b=emb_b)


def pack_params(params, c_in, c_out):
    # One-time weight packing: transpose / zero-pad to 128-lanes / bf16 cast.
    c_in_p = _round_up(c_in, _LANE)
    c_out_p = _round_up(c_out, _LANE)

    def pack_conv(w, ci_p, co_p):
        co, ci = w.shape[0], w.shape[1]
        wt = jnp.transpose(w, (2, 3, 4, 1, 0))                 # (kd, kh, kw, ci, co)
        wt = jnp.pad(wt, ((0, 0), (0, 0), (0, 0), (0, ci_p - ci), (0, co_p - co)))
        return wt.reshape(3, 9, ci_p, co_p).astype(jnp.bfloat16)

    def pack_vec(v, c_p):
        return jnp.pad(v, (0, c_p - v.shape[0])).reshape(1, c_p).astype(jnp.float32)

    dc1, dc2 = params["dc1"], params["dc2"]
    return dict(
        c_in=c_in, c_out=c_out, c_in_p=c_in_p, c_out_p=c_out_p,
        dc1=dict(w1=pack_conv(dc1["w1"], c_in_p, c_in_p),
                 g1=pack_vec(dc1["g1"], c_in_p), b1=pack_vec(dc1["b1"], c_in_p),
                 w2=pack_conv(dc1["w2"], c_in_p, c_in_p),
                 g2=pack_vec(dc1["g2"], c_in_p), b2=pack_vec(dc1["b2"], c_in_p)),
        dc2=dict(w1=pack_conv(dc2["w1"], c_in_p, c_out_p),
                 g1=pack_vec(dc2["g1"], c_out_p), b1=pack_vec(dc2["b1"], c_out_p),
                 w2=pack_conv(dc2["w2"], c_out_p, c_out_p),
                 g2=pack_vec(dc2["g2"], c_out_p), b2=pack_vec(dc2["b2"], c_out_p)),
        emb_w=jnp.pad(params["emb_w"].T,
                      ((0, 0), (0, c_out_p - c_out))).astype(jnp.bfloat16),
        emb_b=jnp.pad(params["emb_b"],
                      (0, c_out_p - c_out)).reshape(1, c_out_p).astype(jnp.float32),
    )


# ----------------------------------------------------------------------------
# Down forward
# ----------------------------------------------------------------------------
def down_forward(x_ncdhw, t, packed):
    n, c_in, d0, h0, w0 = x_ncdhw.shape
    assert d0 % 2 == 0 and h0 % 2 == 0 and w0 % 2 == 0, "MaxPool3d(2): even dims"
    c_in_p, c_out_p = packed["c_in_p"], packed["c_out_p"]

    # NCDHW -> NDHWC, pad channels to a lane multiple (zeros propagate cleanly).
    x = jnp.transpose(x_ncdhw, (0, 2, 3, 4, 1))
    x = jnp.pad(x, ((0, 0), (0, 0), (0, 0), (0, 0), (0, c_in_p - c_in)))

    # MaxPool3d(2)
    xp = maxpool3d_2(x)                                  # (N, D, H, W, c_in_p)
    _, d, h, w, _ = xp.shape
    wp = w + 2
    mask = _make_mask(h, w)
    x_flat = _spatial_to_flat(xp)                        # (N, D, P, c_in_p)

    # ---- DoubleConv 1 (residual) ----
    p1 = packed["dc1"]
    cnt1 = d * h * w * packed["c_in"]
    h1 = conv3x3x3(x_flat, p1["w1"], mask, Wp=wp, c_out_p=c_in_p)
    h1 = groupnorm_apply(h1, groupnorm_stats(h1, count=cnt1),
                         p1["g1"], p1["b1"], mask, mode="gelu")
    h2 = conv3x3x3(h1, p1["w2"], mask, Wp=wp, c_out_p=c_in_p)
    y1 = groupnorm_apply(h2, groupnorm_stats(h2, count=cnt1),
                         p1["g2"], p1["b2"], mask, extra=x_flat, mode="res_gelu")

    # ---- DoubleConv 2 ----
    p2 = packed["dc2"]
    cnt2 = d * h * w * packed["c_out"]
    h3 = conv3x3x3(y1, p2["w1"], mask, Wp=wp, c_out_p=c_out_p)
    h3 = groupnorm_apply(h3, groupnorm_stats(h3, count=cnt2),
                         p2["g1"], p2["b1"], mask, mode="gelu")
    h4 = conv3x3x3(h3, p2["w2"], mask, Wp=wp, c_out_p=c_out_p)

    # emb = Linear(SiLU(t)); the broadcast add is fused into the final GN apply.
    emb = silu_linear(t, packed["emb_w"], packed["emb_b"])      # (N, c_out_p)
    out_flat = groupnorm_apply(h4, groupnorm_stats(h4, count=cnt2),
                               p2["g2"], p2["b2"], mask, extra=emb, mode="emb")

    # flat-padded -> NCDHW, drop spatial borders and channel padding.
    out = out_flat.reshape(n, d, h + 2, wp, c_out_p)
    out = out[:, :, 1:h + 1, 1:w + 1, :packed["c_out"]]
    return jnp.transpose(out, (0, 4, 1, 2, 3))


# ----------------------------------------------------------------------------
# Pure-JAX reference (mirrors the bf16 cast points of the kernel path)
# ----------------------------------------------------------------------------
def _reference_forward(x_ncdhw, t, params):
    x = jnp.transpose(x_ncdhw, (0, 2, 3, 4, 1)).astype(jnp.float32)
    x = jax.lax.reduce_window(x, -jnp.inf, jax.lax.max,
                              (1, 2, 2, 2, 1), (1, 2, 2, 2, 1), "VALID")

    def conv(v, w):
        wt = jnp.transpose(w, (2, 3, 4, 1, 0)).astype(jnp.bfloat16)   # DHWIO
        return jax.lax.conv_general_dilated(
            v.astype(jnp.bfloat16), wt, (1, 1, 1), "SAME",
            dimension_numbers=("NDHWC", "DHWIO", "NDHWC"),
            preferred_element_type=jnp.float32)

    def gn(v, g, b):
        mean = jnp.mean(v, axis=(1, 2, 3, 4), keepdims=True)
        var = jnp.mean((v - mean) ** 2, axis=(1, 2, 3, 4), keepdims=True)
        return (v - mean) * jax.lax.rsqrt(var + _EPS) * g + b

    p = params["dc1"]
    hh = _gelu(gn(conv(x, p["w1"]), p["g1"], p["b1"]))
    hh = gn(conv(hh, p["w2"]), p["g2"], p["b2"])
    y = _gelu(x + hh)
    p = params["dc2"]
    hh = _gelu(gn(conv(y, p["w1"]), p["g1"], p["b1"]))
    hh = gn(conv(hh, p["w2"]), p["g2"], p["b2"])
    s = t * jax.nn.sigmoid(t)
    emb = jnp.dot(s.astype(jnp.bfloat16), params["emb_w"].T.astype(jnp.bfloat16),
                  preferred_element_type=jnp.float32) + params["emb_b"]
    out = hh + emb[:, None, None, None, :]
    return jnp.transpose(out, (0, 4, 1, 2, 3))


# ----------------------------------------------------------------------------
# Demo
# ----------------------------------------------------------------------------
if __name__ == "__main__":
    key = jax.random.PRNGKey(0)
    k_x, k_t, k_p = jax.random.split(key, 3)

    N, C_IN, C_OUT, S, EMB = 2, 4, 8, 8, 32
    x = jax.random.normal(k_x, (N, C_IN, S, S, S), jnp.float32)   # NCDHW
    t = jax.random.normal(k_t, (N, EMB), jnp.float32)
    params = init_params(k_p, C_IN, C_OUT, EMB)
    packed = pack_params(params, C_IN, C_OUT)

    fwd = jax.jit(lambda xx, tt: down_forward(xx, tt, packed))
    out = jax.block_until_ready(fwd(x, t))

    assert out.shape == (N, C_OUT, S // 2, S // 2, S // 2), out.shape
    assert bool(jnp.all(jnp.isfinite(out)))

    ref = jax.block_until_ready(
        jax.jit(lambda xx, tt: _reference_forward(xx, tt, params))(x, t))
    err = float(jnp.max(jnp.abs(out - ref)))
    assert err < 5e-2, f"max abs err vs reference: {err}"
    print("KERNEL_OK")
</pallas_src>

<mosaic_0001>
module attributes {stable_mosaic.version = 11 : i64} {
  func.func @_maxpool_kernel(%arg0: i32, %arg1: i32, %arg2: memref<1x2x8x4x256xf32, #tpu.memory_space<vmem>>, %arg3: memref<1x1x4x4x128xf32, #tpu.memory_space<vmem>>) attributes {dimension_semantics = [#tpu.dimension_semantics<parallel>, #tpu.dimension_semantics<parallel>], iteration_bounds = array<i64: 2, 4>, scalar_prefetch = 0 : i64, scratch_operands = 0 : i64, tpu.core_type = #tpu.core_type<tc>, window_params = [{transform_indices = @transform_0, window_bounds = array<i64: 1, 2, 8, 4, 256>}, {transform_indices = @transform_1, window_bounds = array<i64: 1, 1, 4, 4, 128>}]} {
    %c0 = arith.constant 0 : index
    %c0_0 = arith.constant 0 : index
    %c0_1 = arith.constant 0 : index
    %c0_2 = arith.constant 0 : index
    %c0_3 = arith.constant 0 : index
    %0 = vector.load %arg2[%c0, %c0_0, %c0_1, %c0_2, %c0_3] : memref<1x2x8x4x256xf32, #tpu.memory_space<vmem>>, vector<1x1x8x4x256xf32>
    %1 = vector.shape_cast %0 : vector<1x1x8x4x256xf32> to vector<8x4x256xf32>
    %c0_4 = arith.constant 0 : index
    %c1 = arith.constant 1 : index
    %c0_5 = arith.constant 0 : index
    %c0_6 = arith.constant 0 : index
    %c0_7 = arith.constant 0 : index
    %2 = vector.load %arg2[%c0_4, %c1, %c0_5, %c0_6, %c0_7] : memref<1x2x8x4x256xf32, #tpu.memory_space<vmem>>, vector<1x1x8x4x256xf32>
    %3 = vector.shape_cast %2 : vector<1x1x8x4x256xf32> to vector<8x4x256xf32>
    %4 = arith.maximumf %1, %3 : vector<8x4x256xf32>
    %5 = vector.extract_strided_slice %4 {offsets = [0, 0, 0], sizes = [8, 4, 128], strides = [1, 1, 1]} : vector<8x4x256xf32> to vector<8x4x128xf32>
    %6 = vector.extract_strided_slice %4 {offsets = [0, 0, 128], sizes = [8, 4, 128], strides = [1, 1, 1]} : vector<8x4x256xf32> to vector<8x4x128xf32>
    %7 = arith.maximumf %5, %6 : vector<8x4x128xf32>
    %8 = vector.shape_cast %7 : vector<8x4x128xf32> to vector<4x2x4x128xf32>
    %9 = vector.extract_strided_slice %8 {offsets = [0, 0, 0, 0], sizes = [4, 1, 4, 128], strides = [1, 1, 1, 1]} : vector<4x2x4x128xf32> to vector<4x1x4x128xf32>
    %10 = vector.shape_cast %9 : vector<4x1x4x128xf32> to vector<4x4x128xf32>
    %11 = vector.extract_strided_slice %8 {offsets = [0, 1, 0, 0], sizes = [4, 1, 4, 128], strides = [1, 1, 1, 1]} : vector<4x2x4x128xf32> to vector<4x1x4x128xf32>
    %12 = vector.shape_cast %11 : vector<4x1x4x128xf32> to vector<4x4x128xf32>
    %13 = arith.maximumf %10, %12 : vector<4x4x128xf32>
    %c0_8 = arith.constant 0 : index
    %c0_9 = arith.constant 0 : index
    %c0_10 = arith.constant 0 : index
    %c0_11 = arith.constant 0 : index
    %c0_12 = arith.constant 0 : index
    %14 = vector.load %arg3[%c0_8, %c0_9, %c0_10, %c0_11, %c0_12] : memref<1x1x4x4x128xf32, #tpu.memory_space<vmem>>, vector<1x1x4x4x128xf32>
    %15 = vector.shape_cast %14 : vector<1x1x4x4x128xf32> to vector<4x4x128xf32>
    %16 = vector.shape_cast %13 : vector<4x4x128xf32> to vector<1x1x4x4x128xf32>
    tpu.vector_store %arg3[%c0_8, %c0_9, %c0_10, %c0_11, %c0_12], %16 {strides = array<i32>} : memref<1x1x4x4x128xf32, #tpu.memory_space<vmem>>, vector<1x1x4x4x128xf32>,
    return
  }
  func.func @transform_0(%arg0: i32, %arg1: i32) -> (i32, i32, i32, i32, i32) {
    %c0_i32 = arith.constant 0 : i32
    %c0_i32_0 = arith.constant 0 : i32
    %c0_i32_1 = arith.constant 0 : i32
    %c0_i32_2 = arith.constant 0 : i32
    return %arg0, %arg1, %c0_i32, %c0_i32_0, %c0_i32_1 : i32, i32, i32, i32, i32
  }
  func.func @transform_1(%arg0: i32, %arg1: i32) -> (i32, i32, i32, i32, i32) {
    %c0_i32 = arith.constant 0 : i32
    %c0_i32_0 = arith.constant 0 : i32
    %c0_i32_1 = arith.constant 0 : i32
    %c0_i32_2 = arith.constant 0 : i32
    return %arg0, %arg1, %c0_i32, %c0_i32_0, %c0_i32_1 : i32, i32, i32, i32, i32
  }
}

module attributes {stable_mosaic.version = 11 : i64} {
  func.func @_gn_stats_kernel(%arg0: i32, %arg1: i32, %arg2: memref<1x1x36x128xf32, #tpu.memory_space<vmem>>, %arg3: memref<1x2x8x128xf32, #tpu.memory_space<vmem>>, %arg4: memref<2x128xf32, #tpu.memory_space<vmem>>) attributes {dimension_semantics = [#tpu.dimension_semantics<parallel>, #tpu.dimension_semantics<arbitrary>], iteration_bounds = array<i64: 2, 4>, scalar_prefetch = 0 : i64, scratch_operands = 1 : i64, tpu.core_type = #tpu.core_type<tc>, window_params = [{transform_indices = @transform_0, window_bounds = array<i64: 1, 1, 36, 128>}, {transform_indices = @transform_1, window_bounds = array<i64: 1, 2, 8, 128>}]} {
    %c0_i32 = arith.constant 0 : i32
    %0 = arith.cmpi eq, %arg1, %c0_i32 : i32
    %1 = arith.extui %0 : i1 to i32
    %c0_i32_0 = arith.constant 0 : i32
    %2 = arith.cmpi ne, %1, %c0_i32_0 : i32
    scf.if %2 {
      %cst_13 = arith.constant 0.000000e+00 : f32
      %19 = vector.broadcast %cst_13 : f32 to vector<2x128xf32>
      %c0_14 = arith.constant 0 : index
      %c0_15 = arith.constant 0 : index
      %20 = vector.load %arg4[%c0_14, %c0_15] : memref<2x128xf32, #tpu.memory_space<vmem>>, vector<2x128xf32>
      tpu.vector_store %arg4[%c0_14, %c0_15], %19 {strides = array<i32>} : memref<2x128xf32, #tpu.memory_space<vmem>>, vector<2x128xf32>,
    } else {
    }
    %c0 = arith.constant 0 : index
    %c0_1 = arith.constant 0 : index
    %c0_2 = arith.constant 0 : index
    %c0_3 = arith.constant 0 : index
    %3 = vector.load %arg2[%c0, %c0_1, %c0_2, %c0_3] : memref<1x1x36x128xf32, #tpu.memory_space<vmem>>, vector<1x1x36x128xf32>
    %4 = vector.shape_cast %3 : vector<1x1x36x128xf32> to vector<36x128xf32>
    %c0_4 = arith.constant 0 : index
    %c0_5 = arith.constant 0 : index
    %5 = vector.load %arg4[%c0_4, %c0_5] : memref<2x128xf32, #tpu.memory_space<vmem>>, vector<1x128xf32>
    %cst = arith.constant dense<0.000000e+00> : vector<128xf32>
    %6 = vector.multi_reduction <add>, %4, %cst [0] : vector<36x128xf32> to vector<128xf32>
    %7 = vector.shape_cast %6 : vector<128xf32> to vector<1x128xf32>
    %8 = arith.addf %5, %7 : vector<1x128xf32>
    %c0_6 = arith.constant 0 : index
    %c0_7 = arith.constant 0 : index
    %9 = vector.load %arg4[%c0_6, %c0_7] : memref<2x128xf32, #tpu.memory_space<vmem>>, vector<1x128xf32>
    tpu.vector_store %arg4[%c0_6, %c0_7], %8 {strides = array<i32>} : memref<2x128xf32, #tpu.memory_space<vmem>>, vector<1x128xf32>,
    %c1 = arith.constant 1 : index
    %c0_8 = arith.constant 0 : index
    %10 = vector.load %arg4[%c1, %c0_8] : memref<2x128xf32, #tpu.memory_space<vmem>>, vector<1x128xf32>
    %11 = arith.mulf %4, %4 : vector<36x128xf32>
    %cst_9 = arith.constant dense<0.000000e+00> : vector<128xf32>
    %12 = vector.multi_reduction <add>, %11, %cst_9 [0] : vector<36x128xf32> to vector<128xf32>
    %13 = vector.shape_cast %12 : vector<128xf32> to vector<1x128xf32>
    %14 = arith.addf %10, %13 : vector<1x128xf32>
    %c1_10 = arith.constant 1 : index
    %c0_11 = arith.constant 0 : index
    %15 = vector.load %arg4[%c1_10, %c0_11] : memref<2x128xf32, #tpu.memory_space<vmem>>, vector<1x128xf32>
    tpu.vector_store %arg4[%c1_10, %c0_11], %14 {strides = array<i32>} : memref<2x128xf32, #tpu.memory_space<vmem>>, vector<1x128xf32>,
    %c3_i32 = arith.constant 3 : i32
    %16 = arith.cmpi eq, %arg1, %c3_i32 : i32
    %17 = arith.extui %16 : i1 to i32
    %c0_i32_12 = arith.constant 0 : i32
    %18 = arith.cmpi ne, %17, %c0_i32_12 : i32
    scf.if %18 {
      %c0_13 = arith.constant 0 : index
      %c0_14 = arith.constant 0 : index
      %19 = vector.load %arg4[%c0_13, %c0_14] : memref<2x128xf32, #tpu.memory_space<vmem>>, vector<1x128xf32>
      %cst_15 = arith.constant dense<0.000000e+00> : vector<1xf32>
      %20 = vector.multi_reduction <add>, %19, %cst_15 [1] : vector<1x128xf32> to vector<1xf32>
      %21 = vector.shape_cast %20 : vector<1xf32> to vector<1x1xf32>
      %cst_16 = arith.constant 3.906250e-03 : f32
      %22 = vector.broadcast %cst_16 : f32 to vector<1x1xf32>
      %23 = arith.mulf %21, %22 : vector<1x1xf32>
      %c1_17 = arith.constant 1 : index
      %c0_18 = arith.constant 0 : index
      %24 = vector.load %arg4[%c1_17, %c0_18] : memref<2x128xf32, #tpu.memory_space<vmem>>, vector<1x128xf32>
      %cst_19 = arith.constant dense<0.000000e+00> : vector<1xf32>
      %25 = vector.multi_reduction <add>, %24, %cst_19 [1] : vector<1x128xf32> to vector<1xf32>
      %26 = vector.shape_cast %25 : vector<1xf32> to vector<1x1xf32>
      %cst_20 = arith.constant 3.906250e-03 : f32
      %27 = vector.broadcast %cst_20 : f32 to vector<1x1xf32>
      %28 = arith.mulf %26, %27 : vector<1x1xf32>
      %29 = arith.mulf %23, %23 : vector<1x1xf32>
      %30 = arith.subf %28, %29 : vector<1x1xf32>
      %cst_21 = arith.constant 9.99999974E-6 : f32
      %31 = vector.broadcast %cst_21 : f32 to vector<1x1xf32>
      %32 = arith.addf %30, %31 : vector<1x1xf32>
      %33 = math.rsqrt %32 : vector<1x1xf32>
      %34 = vector.shape_cast %23 : vector<1x1xf32> to vector<1x1xf32>
      %35 = vector.broadcast %34 : vector<1x1xf32> to vector<8x128xf32>
      %c0_22 = arith.constant 0 : index
      %c0_23 = arith.constant 0 : index
      %c0_24 = arith.constant 0 : index
      %c0_25 = arith.constant 0 : index
      %36 = vector.load %arg3[%c0_22, %c0_23, %c0_24, %c0_25] : memref<1x2x8x128xf32, #tpu.memory_space<vmem>>, vector<1x1x8x128xf32>
      %37 = vector.shape_cast %36 : vector<1x1x8x128xf32> to vector<8x128xf32>
      %38 = vector.shape_cast %35 : vector<8x128xf32> to vector<1x1x8x128xf32>
      tpu.vector_store %arg3[%c0_22, %c0_23, %c0_24, %c0_25], %38 {strides = array<i32>} : memref<1x2x8x128xf32, #tpu.memory_space<vmem>>, vector<1x1x8x128xf32>,
      %39 = vector.shape_cast %33 : vector<1x1xf32> to vector<1x1xf32>
      %40 = vector.broadcast %39 : vector<1x1xf32> to vector<8x128xf32>
      %c0_26 = arith.constant 0 : index
      %c1_27 = arith.constant 1 : index
      %c0_28 = arith.constant 0 : index
      %c0_29 = arith.constant 0 : index
      %41 = vector.load %arg3[%c0_26, %c1_27, %c0_28, %c0_29] : memref<1x2x8x128xf32, #tpu.memory_space<vmem>>, vector<1x1x8x128xf32>
      %42 = vector.shape_cast %41 : vector<1x1x8x128xf32> to vector<8x128xf32>
      %43 = vector.shape_cast %40 : vector<8x128xf32> to vector<1x1x8x128xf32>
      tpu.vector_store %arg3[%c0_26, %c1_27, %c0_28, %c0_29], %43 {strides = array<i32>} : memref<1x2x8x128xf32, #tpu.memory_space<vmem>>, vector<1x1x8x128xf32>,
    } else {
    }
    return
  }
  func.func @transform_0(%arg0: i32, %arg1: i32) -> (i32, i32, i32, i32) {
    %c0_i32 = arith.constant 0 : i32
    %c0_i32_0 = arith.constant 0 : i32
    %c0_i32_1 = arith.constant 0 : i32
    return %arg0, %arg1, %c0_i32, %c0_i32_0 : i32, i32, i32, i32
  }
  func.func @transform_1(%arg0: i32, %arg1: i32) -> (i32, i32, i32, i32) {
    %c0_i32 = arith.constant 0 : i32
    %c0_i32_0 = arith.constant 0 : i32
    %c0_i32_1 = arith.constant 0 : i32
    %c0_i32_2 = arith.constant 0 : i32
    return %arg0, %c0_i32, %c0_i32_0, %c0_i32_1 : i32, i32, i32, i32
  }
}

module attributes {stable_mosaic.version = 11 : i64} {
  func.func @_gn_res_gelu_kernel(%arg0: i32, %arg1: i32, %arg2: memref<1x1x36x128xf32, #tpu.memory_space<vmem>>, %arg3: memref<1x2x8x128xf32, #tpu.memory_space<vmem>>, %arg4: memref<1x128xf32, #tpu.memory_space<vmem>>, %arg5: memref<1x128xf32, #tpu.memory_space<vmem>>, %arg6: memref<36x1xf32, #tpu.memory_space<vmem>>, %arg7: memref<1x1x36x128xf32, #tpu.memory_space<vmem>>, %arg8: memref<1x1x36x128xf32, #tpu.memory_space<vmem>>) attributes {dimension_semantics = [#tpu.dimension_semantics<parallel>, #tpu.dimension_semantics<parallel>], iteration_bounds = array<i64: 2, 4>, scalar_prefetch = 0 : i64, scratch_operands = 0 : i64, tpu.core_type = #tpu.core_type<tc>, window_params = [{transform_indices = @transform_0, window_bounds = array<i64: 1, 1, 36, 128>}, {transform_indices = @transform_1, window_bounds = array<i64: 1, 2, 8, 128>}, {pipeline_mode = #tpu.pipeline_mode<synchronous>, transform_indices = @transform_2, window_bounds = array<i64: 1, 128>}, {pipeline_mode = #tpu.pipeline_mode<synchronous>, transform_indices = @transform_3, window_bounds = array<i64: 1, 128>}, {pipeline_mode = #tpu.pipeline_mode<synchronous>, transform_indices = @transform_4, window_bounds = array<i64: 36, 1>}, {transform_indices = @transform_5, window_bounds = array<i64: 1, 1, 36, 128>}, {transform_indices = @transform_6, window_bounds = array<i64: 1, 1, 36, 128>}]} {
    %c0 = arith.constant 0 : index
    %c0_0 = arith.constant 0 : index
    %c0_1 = arith.constant 0 : index
    %c0_2 = arith.constant 0 : index
    %0 = vector.load %arg3[%c0, %c0_0, %c0_1, %c0_2] : memref<1x2x8x128xf32, #tpu.memory_space<vmem>>, vector<1x1x1x1xf32>
    %1 = vector.shape_cast %0 : vector<1x1x1x1xf32> to vector<1x1xf32>
    %c0_3 = arith.constant 0 : index
    %c1 = arith.constant 1 : index
    %c0_4 = arith.constant 0 : index
    %c0_5 = arith.constant 0 : index
    %2 = vector.load %arg3[%c0_3, %c1, %c0_4, %c0_5] : memref<1x2x8x128xf32, #tpu.memory_space<vmem>>, vector<1x1x1x1xf32>
    %3 = vector.shape_cast %2 : vector<1x1x1x1xf32> to vector<1x1xf32>
    %c0_6 = arith.constant 0 : index
    %c0_7 = arith.constant 0 : index
    %c0_8 = arith.constant 0 : index
    %c0_9 = arith.constant 0 : index
    %4 = vector.load %arg2[%c0_6, %c0_7, %c0_8, %c0_9] : memref<1x1x36x128xf32, #tpu.memory_space<vmem>>, vector<1x1x36x128xf32>
    %5 = vector.shape_cast %1 : vector<1x1xf32> to vector<1x1x1x1xf32>
    %6 = vector.broadcast %5 : vector<1x1x1x1xf32> to vector<1x1x36x128xf32>
    %7 = arith.subf %4, %6 : vector<1x1x36x128xf32>
    %8 = vector.shape_cast %3 : vector<1x1xf32> to vector<1x1x1x1xf32>
    %9 = vector.broadcast %8 : vector<1x1x1x1xf32> to vector<1x1x36x128xf32>
    %10 = arith.mulf %7, %9 : vector<1x1x36x128xf32>
    %c0_10 = arith.constant 0 : index
    %c0_11 = arith.constant 0 : index
    %11 = vector.load %arg4[%c0_10, %c0_11] : memref<1x128xf32, #tpu.memory_space<vmem>>, vector<1x128xf32>
    %12 = vector.shape_cast %11 : vector<1x128xf32> to vector<1x1x1x128xf32>
    %13 = vector.broadcast %12 : vector<1x1x1x128xf32> to vector<1x1x36x128xf32>
    %14 = arith.mulf %10, %13 : vector<1x1x36x128xf32>
    %c0_12 = arith.constant 0 : index
    %c0_13 = arith.constant 0 : index
    %15 = vector.load %arg5[%c0_12, %c0_13] : memref<1x128xf32, #tpu.memory_space<vmem>>, vector<1x128xf32>
    %16 = vector.shape_cast %15 : vector<1x128xf32> to vector<1x1x1x128xf32>
    %17 = vector.broadcast %16 : vector<1x1x1x128xf32> to vector<1x1x36x128xf32>
    %18 = arith.addf %14, %17 : vector<1x1x36x128xf32>
    %c0_14 = arith.constant 0 : index
    %c0_15 = arith.constant 0 : index
    %c0_16 = arith.constant 0 : index
    %c0_17 = arith.constant 0 : index
    %19 = vector.load %arg7[%c0_14, %c0_15, %c0_16, %c0_17] : memref<1x1x36x128xf32, #tpu.memory_space<vmem>>, vector<1x1x36x128xf32>
    %20 = arith.addf %18, %19 : vector<1x1x36x128xf32>
    %cst = arith.constant 5.000000e-01 : f32
    %21 = vector.broadcast %cst : f32 to vector<1x1x36x128xf32>
    %22 = arith.mulf %21, %20 : vector<1x1x36x128xf32>
    %cst_18 = arith.constant 0.707106769 : f32
    %23 = vector.broadcast %cst_18 : f32 to vector<1x1x36x128xf32>
    %24 = arith.mulf %20, %23 : vector<1x1x36x128xf32>
    %25 = math.erf %24 : vector<1x1x36x128xf32>
    %cst_19 = arith.constant 1.000000e+00 : f32
    %26 = vector.broadcast %cst_19 : f32 to vector<1x1x36x128xf32>
    %27 = arith.addf %26, %25 : vector<1x1x36x128xf32>
    %28 = arith.mulf %22, %27 : vector<1x1x36x128xf32>
    %c0_20 = arith.constant 0 : index
    %c0_21 = arith.constant 0 : index
    %29 = vector.load %arg6[%c0_20, %c0_21] : memref<36x1xf32, #tpu.memory_space<vmem>>, vector<36x1xf32>
    %30 = vector.shape_cast %29 : vector<36x1xf32> to vector<1x1x36x1xf32>
    %31 = vector.broadcast %30 : vector<1x1x36x1xf32> to vector<1x1x36x128xf32>
    %32 = arith.mulf %28, %31 : vector<1x1x36x128xf32>
    %c0_22 = arith.constant 0 : index
    %c0_23 = arith.constant 0 : index
    %c0_24 = arith.constant 0 : index
    %c0_25 = arith.constant 0 : index
    %33 = vector.load %arg8[%c0_22, %c0_23, %c0_24, %c0_25] : memref<1x1x36x128xf32, #tpu.memory_space<vmem>>, vector<1x1x36x128xf32>
    tpu.vector_store %arg8[%c0_22, %c0_23, %c0_24, %c0_25], %32 {strides = array<i32>} : memref<1x1x36x128xf32, #tpu.memory_space<vmem>>, vector<1x1x36x128xf32>,
    return
  }
  func.func @transform_0(%arg0: i32, %arg1: i32) -> (i32, i32, i32, i32) {
    %c0_i32 = arith.constant 0 : i32
    %c0_i32_0 = arith.constant 0 : i32
    %c0_i32_1 = arith.constant 0 : i32
    return %arg0, %arg1, %c0_i32, %c0_i32_0 : i32, i32, i32, i32
  }
  func.func @transform_1(%arg0: i32, %arg1: i32) -> (i32, i32, i32, i32) {
    %c0_i32 = arith.constant 0 : i32
    %c0_i32_0 = arith.constant 0 : i32
    %c0_i32_1 = arith.constant 0 : i32
    %c0_i32_2 = arith.constant 0 : i32
    return %arg0, %c0_i32, %c0_i32_0, %c0_i32_1 : i32, i32, i32, i32
  }
  func.func @transform_2(%arg0: i32, %arg1: i32) -> (i32, i32) {
    %c0_i32 = arith.constant 0 : i32
    %c0_i32_0 = arith.constant 0 : i32
    %c0_i32_1 = arith.constant 0 : i32
    return %c0_i32, %c0_i32_0 : i32, i32
  }
  func.func @transform_3(%arg0: i32, %arg1: i32) -> (i32, i32) {
    %c0_i32 = arith.constant 0 : i32
    %c0_i32_0 = arith.constant 0 : i32
    %c0_i32_1 = arith.constant 0 : i32
    return %c0_i32, %c0_i32_0 : i32, i32
  }
  func.func @transform_4(%arg0: i32, %arg1: i32) -> (i32, i32) {
    %c0_i32 = arith.constant 0 : i32
    %c0_i32_0 = arith.constant 0 : i32
    %c0_i32_1 = arith.constant 0 : i32
    return %c0_i32, %c0_i32_0 : i32, i32
  }
  func.func @transform_5(%arg0: i32, %arg1: i32) -> (i32, i32, i32, i32) {
    %c0_i32 = arith.constant 0 : i32
    %c0_i32_0 = arith.constant 0 : i32
    %c0_i32_1 = arith.constant 0 : i32
    return %arg0, %arg1, %c0_i32, %c0_i32_0 : i32, i32, i32, i32
  }
  func.func @transform_6(%arg0: i32, %arg1: i32) -> (i32, i32, i32, i32) {
    %c0_i32 = arith.constant 0 : i32
    %c0_i32_0 = arith.constant 0 : i32
    %c0_i32_1 = arith.constant 0 : i32
    return %arg0, %arg1, %c0_i32, %c0_i32_0 : i32, i32, i32, i32
  }
}

module attributes {stable_mosaic.version = 11 : i64} {
  func.func @_gn_gelu_kernel(%arg0: i32, %arg1: i32, %arg2: memref<1x1x36x128xf32, #tpu.memory_space<vmem>>, %arg3: memref<1x2x8x128xf32, #tpu.memory_space<vmem>>, %arg4: memref<1x128xf32, #tpu.memory_space<vmem>>, %arg5: memref<1x128xf32, #tpu.memory_space<vmem>>, %arg6: memref<36x1xf32, #tpu.memory_space<vmem>>, %arg7: memref<1x1x36x128xf32, #tpu.memory_space<vmem>>) attributes {dimension_semantics = [#tpu.dimension_semantics<parallel>, #tpu.dimension_semantics<parallel>], iteration_bounds = array<i64: 2, 4>, scalar_prefetch = 0 : i64, scratch_operands = 0 : i64, tpu.core_type = #tpu.core_type<tc>, window_params = [{transform_indices = @transform_0, window_bounds = array<i64: 1, 1, 36, 128>}, {transform_indices = @transform_1, window_bounds = array<i64: 1, 2, 8, 128>}, {pipeline_mode = #tpu.pipeline_mode<synchronous>, transform_indices = @transform_2, window_bounds = array<i64: 1, 128>}, {pipeline_mode = #tpu.pipeline_mode<synchronous>, transform_indices = @transform_3, window_bounds = array<i64: 1, 128>}, {pipeline_mode = #tpu.pipeline_mode<synchronous>, transform_indices = @transform_4, window_bounds = array<i64: 36, 1>}, {transform_indices = @transform_5, window_bounds = array<i64: 1, 1, 36, 128>}]} {
    %c0 = arith.constant 0 : index
    %c0_0 = arith.constant 0 : index
    %c0_1 = arith.constant 0 : index
    %c0_2 = arith.constant 0 : index
    %0 = vector.load %arg3[%c0, %c0_0, %c0_1, %c0_2] : memref<1x2x8x128xf32, #tpu.memory_space<vmem>>, vector<1x1x1x1xf32>
    %1 = vector.shape_cast %0 : vector<1x1x1x1xf32> to vector<1x1xf32>
    %c0_3 = arith.constant 0 : index
    %c1 = arith.constant 1 : index
    %c0_4 = arith.constant 0 : index
    %c0_5 = arith.constant 0 : index
    %2 = vector.load %arg3[%c0_3, %c1, %c0_4, %c0_5] : memref<1x2x8x128xf32, #tpu.memory_space<vmem>>, vector<1x1x1x1xf32>
    %3 = vector.shape_cast %2 : vector<1x1x1x1xf32> to vector<1x1xf32>
    %c0_6 = arith.constant 0 : index
    %c0_7 = arith.constant 0 : index
    %c0_8 = arith.constant 0 : index
    %c0_9 = arith.constant 0 : index
    %4 = vector.load %arg2[%c0_6, %c0_7, %c0_8, %c0_9] : memref<1x1x36x128xf32, #tpu.memory_space<vmem>>, vector<1x1x36x128xf32>
    %5 = vector.shape_cast %1 : vector<1x1xf32> to vector<1x1x1x1xf32>
    %6 = vector.broadcast %5 : vector<1x1x1x1xf32> to vector<1x1x36x128xf32>
    %7 = arith.subf %4, %6 : vector<1x1x36x128xf32>
    %8 = vector.shape_cast %3 : vector<1x1xf32> to vector<1x1x1x1xf32>
    %9 = vector.broadcast %8 : vector<1x1x1x1xf32> to vector<1x1x36x128xf32>
    %10 = arith.mulf %7, %9 : vector<1x1x36x128xf32>
    %c0_10 = arith.constant 0 : index
    %c0_11 = arith.constant 0 : index
    %11 = vector.load %arg4[%c0_10, %c0_11] : memref<1x128xf32, #tpu.memory_space<vmem>>, vector<1x128xf32>
    %12 = vector.shape_cast %11 : vector<1x128xf32> to vector<1x1x1x128xf32>
    %13 = vector.broadcast %12 : vector<1x1x1x128xf32> to vector<1x1x36x128xf32>
    %14 = arith.mulf %10, %13 : vector<1x1x36x128xf32>
    %c0_12 = arith.constant 0 : index
    %c0_13 = arith.constant 0 : index
    %15 = vector.load %arg5[%c0_12, %c0_13] : memref<1x128xf32, #tpu.memory_space<vmem>>, vector<1x128xf32>
    %16 = vector.shape_cast %15 : vector<1x128xf32> to vector<1x1x1x128xf32>
    %17 = vector.broadcast %16 : vector<1x1x1x128xf32> to vector<1x1x36x128xf32>
    %18 = arith.addf %14, %17 : vector<1x1x36x128xf32>
    %cst = arith.constant 5.000000e-01 : f32
    %19 = vector.broadcast %cst : f32 to vector<1x1x36x128xf32>
    %20 = arith.mulf %19, %18 : vector<1x1x36x128xf32>
    %cst_14 = arith.constant 0.707106769 : f32
    %21 = vector.broadcast %cst_14 : f32 to vector<1x1x36x128xf32>
    %22 = arith.mulf %18, %21 : vector<1x1x36x128xf32>
    %23 = math.erf %22 : vector<1x1x36x128xf32>
    %cst_15 = arith.constant 1.000000e+00 : f32
    %24 = vector.broadcast %cst_15 : f32 to vector<1x1x36x128xf32>
    %25 = arith.addf %24, %23 : vector<1x1x36x128xf32>
    %26 = arith.mulf %20, %25 : vector<1x1x36x128xf32>
    %c0_16 = arith.constant 0 : index
    %c0_17 = arith.constant 0 : index
    %27 = vector.load %arg6[%c0_16, %c0_17] : memref<36x1xf32, #tpu.memory_space<vmem>>, vector<36x1xf32>
    %28 = vector.shape_cast %27 : vector<36x1xf32> to vector<1x1x36x1xf32>
    %29 = vector.broadcast %28 : vector<1x1x36x1xf32> to vector<1x1x36x128xf32>
    %30 = arith.mulf %26, %29 : vector<1x1x36x128xf32>
    %c0_18 = arith.constant 0 : index
    %c0_19 = arith.constant 0 : index
    %c0_20 = arith.constant 0 : index
    %c0_21 = arith.constant 0 : index
    %31 = vector.load %arg7[%c0_18, %c0_19, %c0_20, %c0_21] : memref<1x1x36x128xf32, #tpu.memory_space<vmem>>, vector<1x1x36x128xf32>
    tpu.vector_store %arg7[%c0_18, %c0_19, %c0_20, %c0_21], %30 {strides = array<i32>} : memref<1x1x36x128xf32, #tpu.memory_space<vmem>>, vector<1x1x36x128xf32>,
    return
  }
  func.func @transform_0(%arg0: i32, %arg1: i32) -> (i32, i32, i32, i32) {
    %c0_i32 = arith.constant 0 : i32
    %c0_i32_0 = arith.constant 0 : i32
    %c0_i32_1 = arith.constant 0 : i32
    return %arg0, %arg1, %c0_i32, %c0_i32_0 : i32, i32, i32, i32
  }
  func.func @transform_1(%arg0: i32, %arg1: i32) -> (i32, i32, i32, i32) {
    %c0_i32 = arith.constant 0 : i32
    %c0_i32_0 = arith.constant 0 : i32
    %c0_i32_1 = arith.constant 0 : i32
    %c0_i32_2 = arith.constant 0 : i32
    return %arg0, %c0_i32, %c0_i32_0, %c0_i32_1 : i32, i32, i32, i32
  }
  func.func @transform_2(%arg0: i32, %arg1: i32) -> (i32, i32) {
    %c0_i32 = arith.constant 0 : i32
    %c0_i32_0 = arith.constant 0 : i32
    %c0_i32_1 = arith.constant 0 : i32
    return %c0_i32, %c0_i32_0 : i32, i32
  }
  func.func @transform_3(%arg0: i32, %arg1: i32) -> (i32, i32) {
    %c0_i32 = arith.constant 0 : i32
    %c0_i32_0 = arith.constant 0 : i32
    %c0_i32_1 = arith.constant 0 : i32
    return %c0_i32, %c0_i32_0 : i32, i32
  }
  func.func @transform_4(%arg0: i32, %arg1: i32) -> (i32, i32) {
    %c0_i32 = arith.constant 0 : i32
    %c0_i32_0 = arith.constant 0 : i32
    %c0_i32_1 = arith.constant 0 : i32
    return %c0_i32, %c0_i32_0 : i32, i32
  }
  func.func @transform_5(%arg0: i32, %arg1: i32) -> (i32, i32, i32, i32) {
    %c0_i32 = arith.constant 0 : i32
    %c0_i32_0 = arith.constant 0 : i32
    %c0_i32_1 = arith.constant 0 : i32
    return %arg0, %arg1, %c0_i32, %c0_i32_0 : i32, i32, i32, i32
  }
}

module attributes {stable_mosaic.version = 11 : i64} {
  func.func @_conv_kernel(%arg0: i32, %arg1: i32, %arg2: i32, %arg3: memref<1x1x50x128xbf16, #tpu.memory_space<vmem>>, %arg4: memref<3x9x128x128xbf16, #tpu.memory_space<vmem>>, %arg5: memref<36x1xf32, #tpu.memory_space<vmem>>, %arg6: memref<1x1x36x128xf32, #tpu.memory_space<vmem>>, %arg7: memref<36x128xf32, #tpu.memory_space<vmem>>) attributes {dimension_semantics = [#tpu.dimension_semantics<parallel>, #tpu.dimension_semantics<parallel>, #tpu.dimension_semantics<arbitrary>], iteration_bounds = array<i64: 2, 4, 3>, scalar_prefetch = 0 : i64, scratch_operands = 1 : i64, tpu.core_type = #tpu.core_type<tc>, window_params = [{transform_indices = @transform_0, window_bounds = array<i64: 1, 1, 50, 128>}, {pipeline_mode = #tpu.pipeline_mode<synchronous>, transform_indices = @transform_1, window_bounds = array<i64: 3, 9, 128, 128>}, {pipeline_mode = #tpu.pipeline_mode<synchronous>, transform_indices = @transform_2, window_bounds = array<i64: 36, 1>}, {transform_indices = @transform_3, window_bounds = array<i64: 1, 1, 36, 128>}]} {
    %c0_i32 = arith.constant 0 : i32
    %0 = arith.cmpi eq, %arg2, %c0_i32 : i32
    %1 = arith.extui %0 : i1 to i32
    %c0_i32_0 = arith.constant 0 : i32
    %2 = arith.cmpi ne, %1, %c0_i32_0 : i32
    scf.if %2 {
      %cst_65 = arith.constant 0.000000e+00 : f32
      %71 = vector.broadcast %cst_65 : f32 to vector<36x128xf32>
      %c0_66 = arith.constant 0 : index
      %c0_67 = arith.constant 0 : index
      %72 = vector.load %arg7[%c0_66, %c0_67] : memref<36x128xf32, #tpu.memory_space<vmem>>, vector<36x128xf32>
      tpu.vector_store %arg7[%c0_66, %c0_67], %71 {strides = array<i32>} : memref<36x128xf32, #tpu.memory_space<vmem>>, vector<36x128xf32>,
    } else {
    }
    %c0 = arith.constant 0 : index
    %c0_1 = arith.constant 0 : index
    %c0_2 = arith.constant 0 : index
    %c0_3 = arith.constant 0 : index
    %3 = vector.load %arg3[%c0, %c0_1, %c0_2, %c0_3] : memref<1x1x50x128xbf16, #tpu.memory_space<vmem>>, vector<1x1x36x128xbf16>
    %4 = vector.shape_cast %3 : vector<1x1x36x128xbf16> to vector<36x128xbf16>
    %5 = arith.index_cast %arg2 : i32 to index
    %c0_4 = arith.constant 0 : index
    %c0_5 = arith.constant 0 : index
    %c0_6 = arith.constant 0 : index
    %6 = vector.load %arg4[%5, %c0_4, %c0_5, %c0_6] : memref<3x9x128x128xbf16, #tpu.memory_space<vmem>>, vector<1x1x128x128xbf16>
    %7 = vector.shape_cast %6 : vector<1x1x128x128xbf16> to vector<128x128xbf16>
    %cst = arith.constant dense<0.000000e+00> : vector<36x128xf32>
    %8 = tpu.matmul %4, %7, %cst {dimension_numbers = #tpu.dot_dimension_numbers<[1], [0], [0], [1], [0, 0, 1, 1], [], []>} : vector<36x128xbf16>, vector<128x128xbf16>, vector<36x128xf32> -> vector<36x128xf32>
    %c0_7 = arith.constant 0 : index
    %c0_8 = arith.constant 0 : index
    %c1 = arith.constant 1 : index
    %c0_9 = arith.constant 0 : index
    %9 = vector.load %arg3[%c0_7, %c0_8, %c1, %c0_9] : memref<1x1x50x128xbf16, #tpu.memory_space<vmem>>, vector<1x1x36x128xbf16>
    %10 = vector.shape_cast %9 : vector<1x1x36x128xbf16> to vector<36x128xbf16>
    %11 = arith.index_cast %arg2 : i32 to index
    %c1_10 = arith.constant 1 : index
    %c0_11 = arith.constant 0 : index
    %c0_12 = arith.constant 0 : index
    %12 = vector.load %arg4[%11, %c1_10, %c0_11, %c0_12] : memref<3x9x128x128xbf16, #tpu.memory_space<vmem>>, vector<1x1x128x128xbf16>
    %13 = vector.shape_cast %12 : vector<1x1x128x128xbf16> to vector<128x128xbf16>
    %cst_13 = arith.constant dense<0.000000e+00> : vector<36x128xf32>
    %14 = tpu.matmul %10, %13, %cst_13 {dimension_numbers = #tpu.dot_dimension_numbers<[1], [0], [0], [1], [0, 0, 1, 1], [], []>} : vector<36x128xbf16>, vector<128x128xbf16>, vector<36x128xf32> -> vector<36x128xf32>
    %15 = arith.addf %8, %14 : vector<36x128xf32>
    %c0_14 = arith.constant 0 : index
    %c0_15 = arith.constant 0 : index
    %c2 = arith.constant 2 : index
    %c0_16 = arith.constant 0 : index
    %16 = vector.load %arg3[%c0_14, %c0_15, %c2, %c0_16] : memref<1x1x50x128xbf16, #tpu.memory_space<vmem>>, vector<1x1x36x128xbf16>
    %17 = vector.shape_cast %16 : vector<1x1x36x128xbf16> to vector<36x128xbf16>
    %18 = arith.index_cast %arg2 : i32 to index
    %c2_17 = arith.constant 2 : index
    %c0_18 = arith.constant 0 : index
    %c0_19 = arith.constant 0 : index
    %19 = vector.load %arg4[%18, %c2_17, %c0_18, %c0_19] : memref<3x9x128x128xbf16, #tpu.memory_space<vmem>>, vector<1x1x128x128xbf16>
    %20 = vector.shape_cast %19 : vector<1x1x128x128xbf16> to vector<128x128xbf16>
    %cst_20 = arith.constant dense<0.000000e+00> : vector<36x128xf32>
    %21 = tpu.matmul %17, %20, %cst_20 {dimension_numbers = #tpu.dot_dimension_numbers<[1], [0], [0], [1], [0, 0, 1, 1], [], []>} : vector<36x128xbf16>, vector<128x128xbf16>, vector<36x128xf32> -> vector<36x128xf32>
    %22 = arith.addf %15, %21 : vector<36x128xf32>
    %c0_21 = arith.constant 0 : index
    %c0_22 = arith.constant 0 : index
    %c6 = arith.constant 6 : index
    %c0_23 = arith.constant 0 : index
    %23 = vector.load %arg3[%c0_21, %c0_22, %c6, %c0_23] : memref<1x1x50x128xbf16, #tpu.memory_space<vmem>>, vector<1x1x36x128xbf16>
    %24 = vector.shape_cast %23 : vector<1x1x36x128xbf16> to vector<36x128xbf16>
    %25 = arith.index_cast %arg2 : i32 to index
    %c3 = arith.constant 3 : index
    %c0_24 = arith.constant 0 : index
    %c0_25 = arith.constant 0 : index
    %26 = vector.load %arg4[%25, %c3, %c0_24, %c0_25] : memref<3x9x128x128xbf16, #tpu.memory_space<vmem>>, vector<1x1x128x128xbf16>
    %27 = vector.shape_cast %26 : vector<1x1x128x128xbf16> to vector<128x128xbf16>
    %cst_26 = arith.constant dense<0.000000e+00> : vector<36x128xf32>
    %28 = tpu.matmul %24, %27, %cst_26 {dimension_numbers = #tpu.dot_dimension_numbers<[1], [0], [0], [1], [0, 0, 1, 1], [], []>} : vector<36x128xbf16>, vector<128x128xbf16>, vector<36x128xf32> -> vector<36x128xf32>
    %29 = arith.addf %22, %28 : vector<36x128xf32>
    %c0_27 = arith.constant 0 : index
    %c0_28 = arith.constant 0 : index
    %c7 = arith.constant 7 : index
    %c0_29 = arith.constant 0 : index
    %30 = vector.load %arg3[%c0_27, %c0_28, %c7, %c0_29] : memref<1x1x50x128xbf16, #tpu.memory_space<vmem>>, vector<1x1x36x128xbf16>
    %31 = vector.shape_cast %30 : vector<1x1x36x128xbf16> to vector<36x128xbf16>
    %32 = arith.index_cast %arg2 : i32 to index
    %c4 = arith.constant 4 : index
    %c0_30 = arith.constant 0 : index
    %c0_31 = arith.constant 0 : index
    %33 = vector.load %arg4[%32, %c4, %c0_30, %c0_31] : memref<3x9x128x128xbf16, #tpu.memory_space<vmem>>, vector<1x1x128x128xbf16>
    %34 = vector.shape_cast %33 : vector<1x1x128x128xbf16> to vector<128x128xbf16>
    %cst_32 = arith.constant dense<0.000000e+00> : vector<36x128xf32>
    %35 = tpu.matmul %31, %34, %cst_32 {dimension_numbers = #tpu.dot_dimension_numbers<[1], [0], [0], [1], [0, 0, 1, 1], [], []>} : vector<36x128xbf16>, vector<128x128xbf16>, vector<36x128xf32> -> vector<36x128xf32>
    %36 = arith.addf %29, %35 : vector<36x128xf32>
    %c0_33 = arith.constant 0 : index
    %c0_34 = arith.constant 0 : index
    %c8 = arith.constant 8 : index
    %c0_35 = arith.constant 0 : index
    %37 = vector.load %arg3[%c0_33, %c0_34, %c8, %c0_35] : memref<1x1x50x128xbf16, #tpu.memory_space<vmem>>, vector<1x1x36x128xbf16>
    %38 = vector.shape_cast %37 : vector<1x1x36x128xbf16> to vector<36x128xbf16>
    %39 = arith.index_cast %arg2 : i32 to index
    %c5 = arith.constant 5 : index
    %c0_36 = arith.constant 0 : index
    %c0_37 = arith.constant 0 : index
    %40 = vector.load %arg4[%39, %c5, %c0_36, %c0_37] : memref<3x9x128x128xbf16, #tpu.memory_space<vmem>>, vector<1x1x128x128xbf16>
    %41 = vector.shape_cast %40 : vector<1x1x128x128xbf16> to vector<128x128xbf16>
    %cst_38 = arith.constant dense<0.000000e+00> : vector<36x128xf32>
    %42 = tpu.matmul %38, %41, %cst_38 {dimension_numbers = #tpu.dot_dimension_numbers<[1], [0], [0], [1], [0, 0, 1, 1], [], []>} : vector<36x128xbf16>, vector<128x128xbf16>, vector<36x128xf32> -> vector<36x128xf32>
    %43 = arith.addf %36, %42 : vector<36x128xf32>
    %c0_39 = arith.constant 0 : index
    %c0_40 = arith.constant 0 : index
    %c12 = arith.constant 12 : index
    %c0_41 = arith.constant 0 : index
    %44 = vector.load %arg3[%c0_39, %c0_40, %c12, %c0_41] : memref<1x1x50x128xbf16, #tpu.memory_space<vmem>>, vector<1x1x36x128xbf16>
    %45 = vector.shape_cast %44 : vector<1x1x36x128xbf16> to vector<36x128xbf16>
    %46 = arith.index_cast %arg2 : i32 to index
    %c6_42 = arith.constant 6 : index
    %c0_43 = arith.constant 0 : index
    %c0_44 = arith.constant 0 : index
    %47 = vector.load %arg4[%46, %c6_42, %c0_43, %c0_44] : memref<3x9x128x128xbf16, #tpu.memory_space<vmem>>, vector<1x1x128x128xbf16>
    %48 = vector.shape_cast %47 : vector<1x1x128x128xbf16> to vector<128x128xbf16>
    %cst_45 = arith.constant dense<0.000000e+00> : vector<36x128xf32>
    %49 = tpu.matmul %45, %48, %cst_45 {dimension_numbers = #tpu.dot_dimension_numbers<[1], [0], [0], [1], [0, 0, 1, 1], [], []>} : vector<36x128xbf16>, vector<128x128xbf16>, vector<36x128xf32> -> vector<36x128xf32>
    %50 = arith.addf %43, %49 : vector<36x128xf32>
    %c0_46 = arith.constant 0 : index
    %c0_47 = arith.constant 0 : index
    %c13 = arith.constant 13 : index
    %c0_48 = arith.constant 0 : index
    %51 = vector.load %arg3[%c0_46, %c0_47, %c13, %c0_48] : memref<1x1x50x128xbf16, #tpu.memory_space<vmem>>, vector<1x1x36x128xbf16>
    %52 = vector.shape_cast %51 : vector<1x1x36x128xbf16> to vector<36x128xbf16>
    %53 = arith.index_cast %arg2 : i32 to index
    %c7_49 = arith.constant 7 : index
    %c0_50 = arith.constant 0 : index
    %c0_51 = arith.constant 0 : index
    %54 = vector.load %arg4[%53, %c7_49, %c0_50, %c0_51] : memref<3x9x128x128xbf16, #tpu.memory_space<vmem>>, vector<1x1x128x128xbf16>
    %55 = vector.shape_cast %54 : vector<1x1x128x128xbf16> to vector<128x128xbf16>
    %cst_52 = arith.constant dense<0.000000e+00> : vector<36x128xf32>
    %56 = tpu.matmul %52, %55, %cst_52 {dimension_numbers = #tpu.dot_dimension_numbers<[1], [0], [0], [1], [0, 0, 1, 1], [], []>} : vector<36x128xbf16>, vector<128x128xbf16>, vector<36x128xf32> -> vector<36x128xf32>
    %57 = arith.addf %50, %56 : vector<36x128xf32>
    %c0_53 = arith.constant 0 : index
    %c0_54 = arith.constant 0 : index
    %c14 = arith.constant 14 : index
    %c0_55 = arith.constant 0 : index
    %58 = vector.load %arg3[%c0_53, %c0_54, %c14, %c0_55] : memref<1x1x50x128xbf16, #tpu.memory_space<vmem>>, vector<1x1x36x128xbf16>
    %59 = vector.shape_cast %58 : vector<1x1x36x128xbf16> to vector<36x128xbf16>
    %60 = arith.index_cast %arg2 : i32 to index
    %c8_56 = arith.constant 8 : index
    %c0_57 = arith.constant 0 : index
    %c0_58 = arith.constant 0 : index
    %61 = vector.load %arg4[%60, %c8_56, %c0_57, %c0_58] : memref<3x9x128x128xbf16, #tpu.memory_space<vmem>>, vector<1x1x128x128xbf16>
    %62 = vector.shape_cast %61 : vector<1x1x128x128xbf16> to vector<128x128xbf16>
    %cst_59 = arith.constant dense<0.000000e+00> : vector<36x128xf32>
    %63 = tpu.matmul %59, %62, %cst_59 {dimension_numbers = #tpu.dot_dimension_numbers<[1], [0], [0], [1], [0, 0, 1, 1], [], []>} : vector<36x128xbf16>, vector<128x128xbf16>, vector<36x128xf32> -> vector<36x128xf32>
    %64 = arith.addf %57, %63 : vector<36x128xf32>
    %c0_60 = arith.constant 0 : index
    %c0_61 = arith.constant 0 : index
    %65 = vector.load %arg7[%c0_60, %c0_61] : memref<36x128xf32, #tpu.memory_space<vmem>>, vector<36x128xf32>
    %66 = arith.addf %65, %64 : vector<36x128xf32>
    %c0_62 = arith.constant 0 : index
    %c0_63 = arith.constant 0 : index
    %67 = vector.load %arg7[%c0_62, %c0_63] : memref<36x128xf32, #tpu.memory_space<vmem>>, vector<36x128xf32>
    tpu.vector_store %arg7[%c0_62, %c0_63], %66 {strides = array<i32>} : memref<36x128xf32, #tpu.memory_space<vmem>>, vector<36x128xf32>,
    %c2_i32 = arith.constant 2 : i32
    %68 = arith.cmpi eq, %arg2, %c2_i32 : i32
    %69 = arith.extui %68 : i1 to i32
    %c0_i32_64 = arith.constant 0 : i32
    %70 = arith.cmpi ne, %69, %c0_i32_64 : i32
    scf.if %70 {
      %c0_65 = arith.constant 0 : index
      %c0_66 = arith.constant 0 : index
      %71 = vector.load %arg7[%c0_65, %c0_66] : memref<36x128xf32, #tpu.memory_space<vmem>>, vector<36x128xf32>
      %c0_67 = arith.constant 0 : index
      %c0_68 = arith.constant 0 : index
      %72 = vector.load %arg5[%c0_67, %c0_68] : memref<36x1xf32, #tpu.memory_space<vmem>>, vector<36x1xf32>
      %73 = vector.broadcast %72 : vector<36x1xf32> to vector<36x128xf32>
      %74 = arith.mulf %71, %73 : vector<36x128xf32>
      %c0_69 = arith.constant 0 : index
      %c0_70 = arith.constant 0 : index
      %c0_71 = arith.constant 0 : index
      %c0_72 = arith.constant 0 : index
      %75 = vector.load %arg6[%c0_69, %c0_70, %c0_71, %c0_72] : memref<1x1x36x128xf32, #tpu.memory_space<vmem>>, vector<1x1x36x128xf32>
      %76 = vector.shape_cast %75 : vector<1x1x36x128xf32> to vector<36x128xf32>
      %77 = vector.shape_cast %74 : vector<36x128xf32> to vector<1x1x36x128xf32>
      tpu.vector_store %arg6[%c0_69, %c0_70, %c0_71, %c0_72], %77 {strides = array<i32>} : memref<1x1x36x128xf32, #tpu.memory_space<vmem>>, vector<1x1x36x128xf32>,
    } else {
    }
    return
  }
  func.func @transform_0(%arg0: i32, %arg1: i32, %arg2: i32) -> (i32, i32, i32, i32) {
    %0 = arith.addi %arg1, %arg2 : i32
    %c0_i32 = arith.constant 0 : i32
    %c0_i32_0 = arith.constant 0 : i32
    %c0_i32_1 = arith.constant 0 : i32
    return %arg0, %0, %c0_i32, %c0_i32_0 : i32, i32, i32, i32
  }
  func.func @transform_1(%arg0: i32, %arg1: i32, %arg2: i32) -> (i32, i32, i32, i32) {
    %c0_i32 = arith.constant 0 : i32
    %c0_i32_0 = arith.constant 0 : i32
    %c0_i32_1 = arith.constant 0 : i32
    %c0_i32_2 = arith.constant 0 : i32
    %c0_i32_3 = arith.constant 0 : i32
    return %c0_i32, %c0_i32_0, %c0_i32_1, %c0_i32_2 : i32, i32, i32, i32
  }
  func.func @transform_2(%arg0: i32, %arg1: i32, %arg2: i32) -> (i32, i32) {
    %c0_i32 = arith.constant 0 : i32
    %c0_i32_0 = arith.constant 0 : i32
    %c0_i32_1 = arith.constant 0 : i32
    return %c0_i32, %c0_i32_0 : i32, i32
  }
  func.func @transform_3(%arg0: i32, %arg1: i32, %arg2: i32) -> (i32, i32, i32, i32) {
    %c0_i32 = arith.constant 0 : i32
    %c0_i32_0 = arith.constant 0 : i32
    %c0_i32_1 = arith.constant 0 : i32
    return %arg0, %arg1, %c0_i32, %c0_i32_0 : i32, i32, i32, i32
  }
}

module attributes {stable_mosaic.version = 11 : i64} {
  func.func @_gn_stats_kernel(%arg0: i32, %arg1: i32, %arg2: memref<1x1x36x128xf32, #tpu.memory_space<vmem>>, %arg3: memref<1x2x8x128xf32, #tpu.memory_space<vmem>>, %arg4: memref<2x128xf32, #tpu.memory_space<vmem>>) attributes {dimension_semantics = [#tpu.dimension_semantics<parallel>, #tpu.dimension_semantics<arbitrary>], iteration_bounds = array<i64: 2, 4>, scalar_prefetch = 0 : i64, scratch_operands = 1 : i64, tpu.core_type = #tpu.core_type<tc>, window_params = [{transform_indices = @transform_0, window_bounds = array<i64: 1, 1, 36, 128>}, {transform_indices = @transform_1, window_bounds = array<i64: 1, 2, 8, 128>}]} {
    %c0_i32 = arith.constant 0 : i32
    %0 = arith.cmpi eq, %arg1, %c0_i32 : i32
    %1 = arith.extui %0 : i1 to i32
    %c0_i32_0 = arith.constant 0 : i32
    %2 = arith.cmpi ne, %1, %c0_i32_0 : i32
    scf.if %2 {
      %cst_13 = arith.constant 0.000000e+00 : f32
      %19 = vector.broadcast %cst_13 : f32 to vector<2x128xf32>
      %c0_14 = arith.constant 0 : index
      %c0_15 = arith.constant 0 : index
      %20 = vector.load %arg4[%c0_14, %c0_15] : memref<2x128xf32, #tpu.memory_space<vmem>>, vector<2x128xf32>
      tpu.vector_store %arg4[%c0_14, %c0_15], %19 {strides = array<i32>} : memref<2x128xf32, #tpu.memory_space<vmem>>, vector<2x128xf32>,
    } else {
    }
    %c0 = arith.constant 0 : index
    %c0_1 = arith.constant 0 : index
    %c0_2 = arith.constant 0 : index
    %c0_3 = arith.constant 0 : index
    %3 = vector.load %arg2[%c0, %c0_1, %c0_2, %c0_3] : memref<1x1x36x128xf32, #tpu.memory_space<vmem>>, vector<1x1x36x128xf32>
    %4 = vector.shape_cast %3 : vector<1x1x36x128xf32> to vector<36x128xf32>
    %c0_4 = arith.constant 0 : index
    %c0_5 = arith.constant 0 : index
    %5 = vector.load %arg4[%c0_4, %c0_5] : memref<2x128xf32, #tpu.memory_space<vmem>>, vector<1x128xf32>
    %cst = arith.constant dense<0.000000e+00> : vector<128xf32>
    %6 = vector.multi_reduction <add>, %4, %cst [0] : vector<36x128xf32> to vector<128xf32>
    %7 = vector.shape_cast %6 : vector<128xf32> to vector<1x128xf32>
    %8 = arith.addf %5, %7 : vector<1x128xf32>
    %c0_6 = arith.constant 0 : index
    %c0_7 = arith.constant 0 : index
    %9 = vector.load %arg4[%c0_6, %c0_7] : memref<2x128xf32, #tpu.memory_space<vmem>>, vector<1x128xf32>
    tpu.vector_store %arg4[%c0_6, %c0_7], %8 {strides = array<i32>} : memref<2x128xf32, #tpu.memory_space<vmem>>, vector<1x128xf32>,
    %c1 = arith.constant 1 : index
    %c0_8 = arith.constant 0 : index
    %10 = vector.load %arg4[%c1, %c0_8] : memref<2x128xf32, #tpu.memory_space<vmem>>, vector<1x128xf32>
    %11 = arith.mulf %4, %4 : vector<36x128xf32>
    %cst_9 = arith.constant dense<0.000000e+00> : vector<128xf32>
    %12 = vector.multi_reduction <add>, %11, %cst_9 [0] : vector<36x128xf32> to vector<128xf32>
    %13 = vector.shape_cast %12 : vector<128xf32> to vector<1x128xf32>
    %14 = arith.addf %10, %13 : vector<1x128xf32>
    %c1_10 = arith.constant 1 : index
    %c0_11 = arith.constant 0 : index
    %15 = vector.load %arg4[%c1_10, %c0_11] : memref<2x128xf32, #tpu.memory_space<vmem>>, vector<1x128xf32>
    tpu.vector_store %arg4[%c1_10, %c0_11], %14 {strides = array<i32>} : memref<2x128xf32, #tpu.memory_space<vmem>>, vector<1x128xf32>,
    %c3_i32 = arith.constant 3 : i32
    %16 = arith.cmpi eq, %arg1, %c3_i32 : i32
    %17 = arith.extui %16 : i1 to i32
    %c0_i32_12 = arith.constant 0 : i32
    %18 = arith.cmpi ne, %17, %c0_i32_12 : i32
    scf.if %18 {
      %c0_13 = arith.constant 0 : index
      %c0_14 = arith.constant 0 : index
      %19 = vector.load %arg4[%c0_13, %c0_14] : memref<2x128xf32, #tpu.memory_space<vmem>>, vector<1x128xf32>
      %cst_15 = arith.constant dense<0.000000e+00> : vector<1xf32>
      %20 = vector.multi_reduction <add>, %19, %cst_15 [1] : vector<1x128xf32> to vector<1xf32>
      %21 = vector.shape_cast %20 : vector<1xf32> to vector<1x1xf32>
      %cst_16 = arith.constant 0.001953125 : f32
      %22 = vector.broadcast %cst_16 : f32 to vector<1x1xf32>
      %23 = arith.mulf %21, %22 : vector<1x1xf32>
      %c1_17 = arith.constant 1 : index
      %c0_18 = arith.constant 0 : index
      %24 = vector.load %arg4[%c1_17, %c0_18] : memref<2x128xf32, #tpu.memory_space<vmem>>, vector<1x128xf32>
      %cst_19 = arith.constant dense<0.000000e+00> : vector<1xf32>
      %25 = vector.multi_reduction <add>, %24, %cst_19 [1] : vector<1x128xf32> to vector<1xf32>
      %26 = vector.shape_cast %25 : vector<1xf32> to vector<1x1xf32>
      %cst_20 = arith.constant 0.001953125 : f32
      %27 = vector.broadcast %cst_20 : f32 to vector<1x1xf32>
      %28 = arith.mulf %26, %27 : vector<1x1xf32>
      %29 = arith.mulf %23, %23 : vector<1x1xf32>
      %30 = arith.subf %28, %29 : vector<1x1xf32>
      %cst_21 = arith.constant 9.99999974E-6 : f32
      %31 = vector.broadcast %cst_21 : f32 to vector<1x1xf32>
      %32 = arith.addf %30, %31 : vector<1x1xf32>
      %33 = math.rsqrt %32 : vector<1x1xf32>
      %34 = vector.shape_cast %23 : vector<1x1xf32> to vector<1x1xf32>
      %35 = vector.broadcast %34 : vector<1x1xf32> to vector<8x128xf32>
      %c0_22 = arith.constant 0 : index
      %c0_23 = arith.constant 0 : index
      %c0_24 = arith.constant 0 : index
      %c0_25 = arith.constant 0 : index
      %36 = vector.load %arg3[%c0_22, %c0_23, %c0_24, %c0_25] : memref<1x2x8x128xf32, #tpu.memory_space<vmem>>, vector<1x1x8x128xf32>
      %37 = vector.shape_cast %36 : vector<1x1x8x128xf32> to vector<8x128xf32>
      %38 = vector.shape_cast %35 : vector<8x128xf32> to vector<1x1x8x128xf32>
      tpu.vector_store %arg3[%c0_22, %c0_23, %c0_24, %c0_25], %38 {strides = array<i32>} : memref<1x2x8x128xf32, #tpu.memory_space<vmem>>, vector<1x1x8x128xf32>,
      %39 = vector.shape_cast %33 : vector<1x1xf32> to vector<1x1xf32>
      %40 = vector.broadcast %39 : vector<1x1xf32> to vector<8x128xf32>
      %c0_26 = arith.constant 0 : index
      %c1_27 = arith.constant 1 : index
      %c0_28 = arith.constant 0 : index
      %c0_29 = arith.constant 0 : index
      %41 = vector.load %arg3[%c0_26, %c1_27, %c0_28, %c0_29] : memref<1x2x8x128xf32, #tpu.memory_space<vmem>>, vector<1x1x8x128xf32>
      %42 = vector.shape_cast %41 : vector<1x1x8x128xf32> to vector<8x128xf32>
      %43 = vector.shape_cast %40 : vector<8x128xf32> to vector<1x1x8x128xf32>
      tpu.vector_store %arg3[%c0_26, %c1_27, %c0_28, %c0_29], %43 {strides = array<i32>} : memref<1x2x8x128xf32, #tpu.memory_space<vmem>>, vector<1x1x8x128xf32>,
    } else {
    }
    return
  }
  func.func @transform_0(%arg0: i32, %arg1: i32) -> (i32, i32, i32, i32) {
    %c0_i32 = arith.constant 0 : i32
    %c0_i32_0 = arith.constant 0 : i32
    %c0_i32_1 = arith.constant 0 : i32
    return %arg0, %arg1, %c0_i32, %c0_i32_0 : i32, i32, i32, i32
  }
  func.func @transform_1(%arg0: i32, %arg1: i32) -> (i32, i32, i32, i32) {
    %c0_i32 = arith.constant 0 : i32
    %c0_i32_0 = arith.constant 0 : i32
    %c0_i32_1 = arith.constant 0 : i32
    %c0_i32_2 = arith.constant 0 : i32
    return %arg0, %c0_i32, %c0_i32_0, %c0_i32_1 : i32, i32, i32, i32
  }
}

module attributes {stable_mosaic.version = 11 : i64} {
  func.func @_silu_linear_kernel(%arg0: i32, %arg1: memref<2x32xf32, #tpu.memory_space<vmem>>, %arg2: memref<32x128xbf16, #tpu.memory_space<vmem>>, %arg3: memref<1x128xf32, #tpu.memory_space<vmem>>, %arg4: memref<2x128xf32, #tpu.memory_space<vmem>>) attributes {dimension_semantics = [#tpu.dimension_semantics<arbitrary>], iteration_bounds = array<i64: 1>, scalar_prefetch = 0 : i64, scratch_operands = 0 : i64, tpu.core_type = #tpu.core_type<tc>, window_params = [{pipeline_mode = #tpu.pipeline_mode<synchronous>, transform_indices = @transform_0, window_bounds = array<i64: 2, 32>}, {pipeline_mode = #tpu.pipeline_mode<synchronous>, transform_indices = @transform_1, window_bounds = array<i64: 32, 128>}, {pipeline_mode = #tpu.pipeline_mode<synchronous>, transform_indices = @transform_2, window_bounds = array<i64: 1, 128>}, {pipeline_mode = #tpu.pipeline_mode<synchronous>, transform_indices = @transform_3, window_bounds = array<i64: 2, 128>}]} {
    %c0 = arith.constant 0 : index
    %c0_0 = arith.constant 0 : index
    %0 = vector.load %arg1[%c0, %c0_0] : memref<2x32xf32, #tpu.memory_space<vmem>>, vector<2x32xf32>
    %1 = arith.negf %0 : vector<2x32xf32>
    %2 = math.exp %1 : vector<2x32xf32>
    %cst = arith.constant 1.000000e+00 : f32
    %3 = vector.broadcast %cst : f32 to vector<2x32xf32>
    %4 = arith.addf %3, %2 : vector<2x32xf32>
    %5 = arith.divf %3, %4 : vector<2x32xf32>
    %6 = arith.mulf %0, %5 : vector<2x32xf32>
    %7 = arith.truncf %6 : vector<2x32xf32> to vector<2x32xbf16>
    %c0_1 = arith.constant 0 : index
    %c0_2 = arith.constant 0 : index
    %8 = vector.load %arg2[%c0_1, %c0_2] : memref<32x128xbf16, #tpu.memory_space<vmem>>, vector<32x128xbf16>
    %cst_3 = arith.constant dense<0.000000e+00> : vector<2x128xf32>
    %9 = tpu.matmul %7, %8, %cst_3 {dimension_numbers = #tpu.dot_dimension_numbers<[1], [0], [0], [1], [0, 0, 1, 1], [], []>} : vector<2x32xbf16>, vector<32x128xbf16>, vector<2x128xf32> -> vector<2x128xf32>
    %c0_4 = arith.constant 0 : index
    %c0_5 = arith.constant 0 : index
    %10 = vector.load %arg3[%c0_4, %c0_5] : memref<1x128xf32, #tpu.memory_space<vmem>>, vector<1x128xf32>
    %11 = vector.broadcast %10 : vector<1x128xf32> to vector<2x128xf32>
    %12 = arith.addf %9, %11 : vector<2x128xf32>
    %c0_6 = arith.constant 0 : index
    %c0_7 = arith.constant 0 : index
    %13 = vector.load %arg4[%c0_6, %c0_7] : memref<2x128xf32, #tpu.memory_space<vmem>>, vector<2x128xf32>
    tpu.vector_store %arg4[%c0_6, %c0_7], %12 {strides = array<i32>} : memref<2x128xf32, #tpu.memory_space<vmem>>, vector<2x128xf32>,
    return
  }
  func.func @transform_0(%arg0: i32) -> (i32, i32) {
    %c0_i32 = arith.constant 0 : i32
    %c0_i32_0 = arith.constant 0 : i32
    %c0_i32_1 = arith.constant 0 : i32
    return %c0_i32, %c0_i32_0 : i32, i32
  }
  func.func @transform_1(%arg0: i32) -> (i32, i32) {
    %c0_i32 = arith.constant 0 : i32
    %c0_i32_0 = arith.constant 0 : i32
    %c0_i32_1 = arith.constant 0 : i32
    return %c0_i32, %c0_i32_0 : i32, i32
  }
  func.func @transform_2(%arg0: i32) -> (i32, i32) {
    %c0_i32 = arith.constant 0 : i32
    %c0_i32_0 = arith.constant 0 : i32
    %c0_i32_1 = arith.constant 0 : i32
    return %c0_i32, %c0_i32_0 : i32, i32
  }
  func.func @transform_3(%arg0: i32) -> (i32, i32) {
    %c0_i32 = arith.constant 0 : i32
    %c0_i32_0 = arith.constant 0 : i32
    %c0_i32_1 = arith.constant 0 : i32
    return %c0_i32, %c0_i32_0 : i32, i32
  }
}

module attributes {stable_mosaic.version = 11 : i64} {
  func.func @_gn_emb_kernel(%arg0: i32, %arg1: i32, %arg2: memref<1x1x36x128xf32, #tpu.memory_space<vmem>>, %arg3: memref<1x2x8x128xf32, #tpu.memory_space<vmem>>, %arg4: memref<1x128xf32, #tpu.memory_space<vmem>>, %arg5: memref<1x128xf32, #tpu.memory_space<vmem>>, %arg6: memref<1x1x128xf32, #tpu.memory_space<vmem>>, %arg7: memref<1x1x36x128xf32, #tpu.memory_space<vmem>>) attributes {dimension_semantics = [#tpu.dimension_semantics<parallel>, #tpu.dimension_semantics<parallel>], iteration_bounds = array<i64: 2, 4>, scalar_prefetch = 0 : i64, scratch_operands = 0 : i64, tpu.core_type = #tpu.core_type<tc>, window_params = [{transform_indices = @transform_0, window_bounds = array<i64: 1, 1, 36, 128>}, {transform_indices = @transform_1, window_bounds = array<i64: 1, 2, 8, 128>}, {pipeline_mode = #tpu.pipeline_mode<synchronous>, transform_indices = @transform_2, window_bounds = array<i64: 1, 128>}, {pipeline_mode = #tpu.pipeline_mode<synchronous>, transform_indices = @transform_3, window_bounds = array<i64: 1, 128>}, {transform_indices = @transform_4, window_bounds = array<i64: 1, 1, 128>}, {transform_indices = @transform_5, window_bounds = array<i64: 1, 1, 36, 128>}]} {
    %c0 = arith.constant 0 : index
    %c0_0 = arith.constant 0 : index
    %c0_1 = arith.constant 0 : index
    %c0_2 = arith.constant 0 : index
    %0 = vector.load %arg3[%c0, %c0_0, %c0_1, %c0_2] : memref<1x2x8x128xf32, #tpu.memory_space<vmem>>, vector<1x1x1x1xf32>
    %1 = vector.shape_cast %0 : vector<1x1x1x1xf32> to vector<1x1xf32>
    %c0_3 = arith.constant 0 : index
    %c1 = arith.constant 1 : index
    %c0_4 = arith.constant 0 : index
    %c0_5 = arith.constant 0 : index
    %2 = vector.load %arg3[%c0_3, %c1, %c0_4, %c0_5] : memref<1x2x8x128xf32, #tpu.memory_space<vmem>>, vector<1x1x1x1xf32>
    %3 = vector.shape_cast %2 : vector<1x1x1x1xf32> to vector<1x1xf32>
    %c0_6 = arith.constant 0 : index
    %c0_7 = arith.constant 0 : index
    %c0_8 = arith.constant 0 : index
    %c0_9 = arith.constant 0 : index
    %4 = vector.load %arg2[%c0_6, %c0_7, %c0_8, %c0_9] : memref<1x1x36x128xf32, #tpu.memory_space<vmem>>, vector<1x1x36x128xf32>
    %5 = vector.shape_cast %1 : vector<1x1xf32> to vector<1x1x1x1xf32>
    %6 = vector.broadcast %5 : vector<1x1x1x1xf32> to vector<1x1x36x128xf32>
    %7 = arith.subf %4, %6 : vector<1x1x36x128xf32>
    %8 = vector.shape_cast %3 : vector<1x1xf32> to vector<1x1x1x1xf32>
    %9 = vector.broadcast %8 : vector<1x1x1x1xf32> to vector<1x1x36x128xf32>
    %10 = arith.mulf %7, %9 : vector<1x1x36x128xf32>
    %c0_10 = arith.constant 0 : index
    %c0_11 = arith.constant 0 : index
    %11 = vector.load %arg4[%c0_10, %c0_11] : memref<1x128xf32, #tpu.memory_space<vmem>>, vector<1x128xf32>
    %12 = vector.shape_cast %11 : vector<1x128xf32> to vector<1x1x1x128xf32>
    %13 = vector.broadcast %12 : vector<1x1x1x128xf32> to vector<1x1x36x128xf32>
    %14 = arith.mulf %10, %13 : vector<1x1x36x128xf32>
    %c0_12 = arith.constant 0 : index
    %c0_13 = arith.constant 0 : index
    %15 = vector.load %arg5[%c0_12, %c0_13] : memref<1x128xf32, #tpu.memory_space<vmem>>, vector<1x128xf32>
    %16 = vector.shape_cast %15 : vector<1x128xf32> to vector<1x1x1x128xf32>
    %17 = vector.broadcast %16 : vector<1x1x1x128xf32> to vector<1x1x36x128xf32>
    %18 = arith.addf %14, %17 : vector<1x1x36x128xf32>
    %c0_14 = arith.constant 0 : index
    %c0_15 = arith.constant 0 : index
    %c0_16 = arith.constant 0 : index
    %19 = vector.load %arg6[%c0_14, %c0_15, %c0_16] : memref<1x1x128xf32, #tpu.memory_space<vmem>>, vector<1x1x128xf32>
    %20 = vector.shape_cast %19 : vector<1x1x128xf32> to vector<1x1x1x128xf32>
    %21 = vector.broadcast %20 : vector<1x1x1x128xf32> to vector<1x1x36x128xf32>
    %22 = arith.addf %18, %21 : vector<1x1x36x128xf32>
    %c0_17 = arith.constant 0 : index
    %c0_18 = arith.constant 0 : index
    %c0_19 = arith.constant 0 : index
    %c0_20 = arith.constant 0 : index
    %23 = vector.load %arg7[%c0_17, %c0_18, %c0_19, %c0_20] : memref<1x1x36x128xf32, #tpu.memory_space<vmem>>, vector<1x1x36x128xf32>
    tpu.vector_store %arg7[%c0_17, %c0_18, %c0_19, %c0_20], %22 {strides = array<i32>} : memref<1x1x36x128xf32, #tpu.memory_space<vmem>>, vector<1x1x36x128xf32>,
    return
  }
  func.func @transform_0(%arg0: i32, %arg1: i32) -> (i32, i32, i32, i32) {
    %c0_i32 = arith.constant 0 : i32
    %c0_i32_0 = arith.constant 0 : i32
    %c0_i32_1 = arith.constant 0 : i32
    return %arg0, %arg1, %c0_i32, %c0_i32_0 : i32, i32, i32, i32
  }
  func.func @transform_1(%arg0: i32, %arg1: i32) -> (i32, i32, i32, i32) {
    %c0_i32 = arith.constant 0 : i32
    %c0_i32_0 = arith.constant 0 : i32
    %c0_i32_1 = arith.constant 0 : i32
    %c0_i32_2 = arith.constant 0 : i32
    return %arg0, %c0_i32, %c0_i32_0, %c0_i32_1 : i32, i32, i32, i32
  }
  func.func @transform_2(%arg0: i32, %arg1: i32) -> (i32, i32) {
    %c0_i32 = arith.constant 0 : i32
    %c0_i32_0 = arith.constant 0 : i32
    %c0_i32_1 = arith.constant 0 : i32
    return %c0_i32, %c0_i32_0 : i32, i32
  }
  func.func @transform_3(%arg0: i32, %arg1: i32) -> (i32, i32) {
    %c0_i32 = arith.constant 0 : i32
    %c0_i32_0 = arith.constant 0 : i32
    %c0_i32_1 = arith.constant 0 : i32
    return %c0_i32, %c0_i32_0 : i32, i32
  }
  func.func @transform_4(%arg0: i32, %arg1: i32) -> (i32, i32, i32) {
    %c0_i32 = arith.constant 0 : i32
    %c0_i32_0 = arith.constant 0 : i32
    %c0_i32_1 = arith.constant 0 : i32
    return %arg0, %c0_i32, %c0_i32_0 : i32, i32, i32
  }
  func.func @transform_5(%arg0: i32, %arg1: i32) -> (i32, i32, i32, i32) {
    %c0_i32 = arith.constant 0 : i32
    %c0_i32_0 = arith.constant 0 : i32
    %c0_i32_1 = arith.constant 0 : i32
    return %arg0, %arg1, %c0_i32, %c0_i32_0 : i32, i32, i32, i32
  }
}

</mosaic_0001>

<bundles_post_ra>
// kernel: _lambda_.14
= control target key start
LH: loop header
LB: loop body
LE: loop exit
PB: predicated region body
PF: predicated region fallthrough
CT: control target
= control target key end

     0   :  { %s430_s6 = smov 0   ;;  %s432_s7 = smov 0   ;;  %s499_s0 = inlined_call_operand.vmem [shape: f32[2,8,8,4,256], index: 0, kind: input, shape index: {}]   ;;  %s500_s1 = inlined_call_operand.vmem [shape: f32[2,4,4,4,128], index: 1, kind: output, shape index: {}]  }
   0x1   :  { %s434_s8 = smov 0   ;;  %s436_s9 = smov 0  }
   0x2   :  { %s438_s10 = smov 0  }
   0x3 LB: > { %s20_s11 = sadd.s32 1, %s410_s8  ;;  %s23_s12 = sadd.s32 1, %s414_s9  ;;  %s418_s10 = sphi %s438_s10, %s11_s10   ;;  %s414_s9 = sphi %s436_s9, %s504_s9   ;;  %s410_s8 = sphi %s434_s8, %s503_s8   ;;  %s406_s7 = sphi %s432_s7, %s502_s7   ;;  %s402_s6 = sphi %s430_s6, %s501_s6  }
   0x4   : > { %p21_p0 = scmp.ge.s32.totalorder %s20_s11, 4  ;;  %p322_p1 = scmp.ge.s32.totalorder %s418_s10, 1 }
   0x5   : > { %p109_p2 = scmp.lt.s32.totalorder %s418_s10, 9 }
   0x6   : > { %s506_s11 = smov (%p21_p0, %s20_s11), 0  ;;  %s508_s12 = smov (!%p21_p0, %s23_s12), %s414_s9 }
   0x7   : > { %p110_p3 = pnand %p322_p1, %p109_p2  ;;  %p25_p4 = scmp.ge.s32.totalorder %s508_s12, 2 }
   0x8   : > { %s323_s13 = sshll.u32 (!%p110_p3), %s402_s6, 1  ;;  %p139_p5 = scmp.lt.s32.totalorder (!%p110_p3), %s406_s7, 1 }
   0x9   : > { %s510_s12 = smov (%p25_p4, %s508_s12), 0  ;;  %113 = sbr.rel (%p110_p3) target bundleno = 34 (0x22), region = 24 }
   0xa   : > { %p141_p6 = scmp.lt.s32.totalorder (!%p110_p3), %s323_s13, 7  ;;  %p151_p7 = scmp.lt.s32.totalorder (!%p110_p3), %s402_s6, 3 }
   0xe   : > { %s512_s7 = smov (!%p139_p5, %s406_s7), 1  ;;  %s514_s13 = smov (!%p141_p6, %s323_s13), 7 }
   0xf   : > { %s325_s14 = sshll.u32 %s512_s7, 7  ;;  %s324_s15 = sshll.u32 %s514_s13, 4 }
  0x10   : > { %s145_s16 = sadd.s32 %s325_s14, %s324_s15  ;;  %s328_s21 = sshll.u32 %s512_s7, 4 }
  0x11   : > { %s326_s17 = sshll.u32 %s145_s16, 2  ;;  %s516_s6 = smov (!%p151_p7, %s402_s6), 3 }
  0x12   : > { %s463_s20 = scalar_lea.vmem %s499_s0, %s326_s17  ;;  %s327_s22 = sshll.u32 %s516_s6, 2 }
  0x13   : > { %v158_v0 = vld [vmem:[%s463_s20] sm:$0xff]  ;;  %v159_v1 = vld [vmem:[%s463_s20 + $0x8] sm:$0xff]  ;;  %v160_v5 = vld [vmem:[%s463_s20 + $0x10] sm:$0xff]  ;;  %s155_s23 = sadd.s32 %s328_s21, %s327_s22 }
  0x14   : > { %v330_v2 = vld [vmem:[%s463_s20 + $0x40] sm:$0xff]  ;;  %v331_v3 = vld [vmem:[%s463_s20 + $0x48] sm:$0xff]  ;;  %v161_v6 = vld [vmem:[%s463_s20 + $0x18] sm:$0xff]  ;;  %s329_s24 = sshll.u32 %s155_s23, 2 }
  0x15   : > { %v175_v4 = vmax.f32 %v158_v0, %v330_v2  ;;  %v176_v7 = vmax.f32 %v159_v1, %v331_v3  ;;  %v332_v8 = vld [vmem:[%s463_s20 + $0x50] sm:$0xff]  ;;  %v333_v9 = vld [vmem:[%s463_s20 + $0x58] sm:$0xff]  ;;  %v162_v10 = vld [vmem:[%s463_s20 + $0x20] sm:$0xff]  ;;  %s157_s27 = scalar_lea.vmem %s500_s1, %s329_s24 }
  0x16   : > { %v177_v12 = vmax.f32 %v160_v5, %v332_v8  ;;  %v178_v13 = vmax.f32 %v161_v6, %v333_v9  ;;  %v163_v14 = vld [vmem:[%s463_s20 + $0x28] sm:$0xff]  ;;  %v334_v15 = vld [vmem:[%s463_s20 + $0x60] sm:$0xff]  ;;  %v164_v20 = vld [vmem:[%s463_s20 + $0x30] sm:$0xff] }
  0x17   : > { %v191_v11 = vrot.slane %v175_v4, 4  ;;  %v335_v16 = vld [vmem:[%s463_s20 + $0x68] sm:$0xff]  ;;  %v192_v17 = vrot.slane %v176_v7, 4  ;;  %v179_v18 = vmax.f32 %v162_v10, %v334_v15  ;;  %v165_v21 = vld [vmem:[%s463_s20 + $0x38] sm:$0xff]  ;;  %v336_v22 = vld [vmem:[%s463_s20 + $0x70] sm:$0xff] }
  0x18   : > { %v180_v19 = vmax.f32 %v163_v14, %v335_v16  ;;  %v193_v24 = vrot.slane %v177_v12, 4  ;;  %v194_v25 = vrot.slane %v178_v13, 4  ;;  %v337_v26 = vld [vmem:[%s463_s20 + $0x78] sm:$0xff]  ;;  %v181_v27 = vmax.f32 %v164_v20, %v336_v22 }
  0x19   : > { %v207_v23 = vmax.f32 %v175_v4, %v191_v11  ;;  %v208_v28 = vmax.f32 %v176_v7, %v192_v17  ;;  %v195_v29 = vrot.slane %v179_v18, 4  ;;  %v182_v31 = vmax.f32 %v165_v21, %v337_v26 }
  0x1a   : > { %v196_v30 = vrot.slane %v180_v19, 4  ;;  %v209_v32 = vmax.f32 %v177_v12, %v193_v24  ;;  %v210_v33 = vmax.f32 %v178_v13, %v194_v25  ;;  %v197_v34 = vrot.slane %v181_v27, 4 }
  0x1b   : > { %v215_v35 = vmax.f32 %v207_v23, %v208_v28  ;;  %v211_v36 = vmax.f32 %v179_v18, %v195_v29  ;;  %v198_v38 = vrot.slane %v182_v31, 4 }
  0x1c   : > { %v212_v37 = vmax.f32 %v180_v19, %v196_v30  ;;  %v216_v39 = vmax.f32 %v209_v32, %v210_v33  ;;  %v213_v40 = vmax.f32 %v181_v27, %v197_v34 }
  0x1d   : > { %219 = vst [vmem:[%s157_s27] sm:$0xf] %v215_v35  ;;  %v214_v42 = vmax.f32 %v182_v31, %v198_v38 }
  0x1e   : > { %v217_v41 = vmax.f32 %v211_v36, %v212_v37  ;;  %220 = vst [vmem:[%s157_s27 + $0x4] sm:$0xf] %v216_v39 }
  0x1f   : > { %v218_v43 = vmax.f32 %v213_v40, %v214_v42 }
  0x20   : > { %221 = vst [vmem:[%s157_s27 + $0x8] sm:$0xf] %v217_v41 }
  0x21   : > { %222 = vst [vmem:[%s157_s27 + $0xc] sm:$0xf] %v218_v43 }
  0x22 PF: > { %s11_s10 = sadd.s32 1, %s418_s10   ;;  %s501_s6 = smov %s410_s8 }
  0x23   : > { %p8_p8 = scmp.ge.s32.totalorder %s11_s10, 10   ;;  %s502_s7 = smov %s414_s9 }
  0x24   : > { %s503_s8 = smov %s506_s11  ;;  %s504_s9 = smov %s510_s12 }
  0x25   :  { %10 = sbr.rel (!%p8_p8) target bundleno = 3 (0x3), region = 55 }

// kernel: _lambda_.16
= control target key start
LH: loop header
LB: loop body
LE: loop exit
PB: predicated region body
PF: predicated region fallthrough
CT: control target
= control target key end

     0   :  { %s405_s6 = smov 0   ;;  %s407_s7 = smov 0   ;;  %s466_s0 = inlined_call_operand.vmem [shape: f32[2,4,36,128], index: 0, kind: input, shape index: {}]   ;;  %s467_s1 = inlined_call_operand.vmem [shape: f32[2,2,8,128], index: 1, kind: output, shape index: {}]  }
   0x1   :  { %s409_s8 = smov 0   ;;  %s411_s9 = smov 0  }
   0x2   :  { %s413_s10 = smov 0  }
   0x3 LB: > { %s20_s11 = sadd.s32 1, %s384_s8  ;;  %s23_s12 = sadd.s32 1, %s388_s9  ;;  %s392_s10 = sphi %s413_s10, %s11_s10   ;;  %s388_s9 = sphi %s411_s9, %s471_s9   ;;  %s384_s8 = sphi %s409_s8, %s470_s8   ;;  %s380_s7 = sphi %s407_s7, %s469_s7   ;;  %s376_s6 = sphi %s405_s6, %s468_s6  }
   0x4   : > { %p21_p0 = scmp.ge.s32.totalorder %s20_s11, 4  ;;  %p299_p1 = scmp.ge.s32.totalorder %s392_s10, 1 }
   0x5   : > { %p105_p2 = scmp.lt.s32.totalorder %s392_s10, 9 }
   0x6   : > { %s473_s11 = smov (%p21_p0, %s20_s11), 0  ;;  %s475_s12 = smov (!%p21_p0, %s23_s12), %s388_s9 }
   0x7   : > { %p106_p3 = pnand %p299_p1, %p105_p2  ;;  %p25_p4 = scmp.ge.s32.totalorder %s475_s12, 2 }
   0x8   : > { %p129_p5 = scmp.lt.s32.totalorder (!%p106_p3), %s380_s7, 1  ;;  %p131_p6 = scmp.lt.s32.totalorder (!%p106_p3), %s376_s6, 3 }
   0x9   : > { %s477_s12 = smov (%p25_p4, %s475_s12), 0  ;;  %109 = sbr.rel (%p106_p3) target bundleno = 208 (0xd0), region = 24 }
   0xa   : > { %p303_p7 = scmp.ne.s32.totalorder (!%p106_p3), %s376_s6, 0 }
   0xe   : > { %s479_s7 = smov (!%p129_p5, %s380_s7), 1 }
   0xf   : > { %s132_s13 = scalar_select %p131_p6, %s376_s6, 3 }
  0x10   : > { %s310_s14 = smul.u32 20, %s479_s7  ;;  %s308_s15 = sshll.u32 %s479_s7, 4 }
  0x11   : > { %s309_s16 = smul.u32 5, %s132_s13  ;;  %s442_s19 = scalar_lea.vmem %s467_s1, %s308_s15 }
  0x12   : > { %146 = sbr.rel (%p303_p7) target bundleno = 25 (0x19), region = 28 }
  0x13   : > { %s135_s20 = sadd.s32 %s310_s14, %s309_s16 }
  0x14   : > { %s300_s21 = sshll.u32 %s135_s20, 3 }
  0x15   : > { %s137_s24 = scalar_lea.vmem %s466_s0, %s300_s21 }
  0x17   : > { %v394_v0 = vmov 0.0  }
  0x18   : > { %147 = vst [vmem:[#allocation2] sm:$0x3] %v394_v0 }
  0x19 PF: > { %v148_v1 = vld [vmem:[%s137_s24] sm:$0xff]  ;;  %v149_v2 = vld [vmem:[%s137_s24 + $0x8] sm:$0xff]  ;;  %v150_v3 = vld [vmem:[%s137_s24 + $0x10] sm:$0xff]  ;;  %vm157_vm0 = vcmask 1043456   ;;  %p304_p8 = scmp.ne.s32.totalorder %s376_s6, 3 }
  0x1a   : > { %v151_v4 = vld [vmem:[%s137_s24 + $0x18] sm:$0xff]  ;;  %v152_v5 = vld [vmem:[%s137_s24 + $0x20] sm:$0xf]  ;;  %v154_v6 = vadd.f32 %v149_v2, %v148_v1  ;;  %v169_v7 = vmul.f32 %v148_v1, %v148_v1  ;;  %v170_v8 = vmul.f32 %v149_v2, %v149_v2  ;;  %v171_v9 = vmul.f32 %v150_v3, %v150_v3 }
  0x1b   : > { %v173_v10 = vmul.f32 %v152_v5, %v152_v5  ;;  %v172_v12 = vmul.f32 %v151_v4, %v151_v4  ;;  %v158_v14 = vsel %vm157_vm0, %v152_v5, 0.0 }
  0x1c   : > { %v155_v11 = vadd.f32 %v154_v6, %v150_v3  ;;  %v174_v13 = vadd.f32 %v170_v8, %v169_v7 }
  0x1d   : > { %v177_v17 = vsel %vm157_vm0, %v173_v10, 0.0 }
  0x1e   : > { %v156_v15 = vadd.f32 %v155_v11, %v151_v4  ;;  %v175_v16 = vadd.f32 %v174_v13, %v171_v9 }
  0x1f   : > { %v153_v30 = vld [vmem:[#allocation2] sm:$0x1]  ;;  %v168_v33 = vld [vmem:[#allocation2 + $0x1] sm:$0x1] }
  0x20   : > { %v159_v18 = vadd.f32 %v158_v14, %v156_v15  ;;  %v176_v19 = vadd.f32 %v175_v16, %v172_v12 }
  0x22   : > { %v160_v20 = vrot.slane %v159_v18, 4  ;;  %v178_v21 = vadd.f32 %v177_v17, %v176_v19 }
  0x24   : > { %v161_v22 = vadd.f32 %v160_v20, %v159_v18  ;;  %v179_v23 = vrot.slane %v178_v21, 4 }
  0x26   : > { %v162_v24 = vrot.slane %v161_v22, 2  ;;  %v180_v25 = vadd.f32 %v179_v23, %v178_v21 }
  0x28   : > { %v163_v26 = vadd.f32 %v162_v24, %v161_v22  ;;  %v181_v27 = vrot.slane %v180_v25, 2 }
  0x2a   : > { %v164_v28 = vrot.slane %v163_v26, 1  ;;  %v182_v29 = vadd.f32 %v181_v27, %v180_v25 }
  0x2c   : > { %v165_v31 = vadd.f32 %v164_v28, %v163_v26  ;;  %v183_v32 = vrot.slane %v182_v29, 1 }
  0x2e   : > { %v166_v34 = vadd.f32 %v165_v31, %v153_v30  ;;  %v184_v35 = vadd.f32 %v183_v32, %v182_v29  ;;  %190 = sbr.rel (%p304_p8) target bundleno = 208 (0xd0), region = 32 }
  0x30   : > { %167 = vst [vmem:[#allocation2] sm:$0x1] %v166_v34  ;;  %v185_v36 = vadd.f32 %v184_v35, %v168_v33 }
  0x32   : > { %186 = vst [vmem:[#allocation2 + $0x1] sm:$0x1] %v185_v36 }
  0x33   : > { %vm192_vm1 = vcmask 1040384  }
  0x37   : > { %v191_v37 = vld [vmem:[#allocation2] sm:$0x1] }
  0x38   : > { %v193_v38 = vsel %vm192_vm1, %v191_v37, 0.0 }
  0x39   : > { %194 = vadd.xlane.f32.xlu0 %v193_v38  ;;  %v197_v39 = vld [vmem:[#allocation2 + $0x1] sm:$0x1] }
  0x3a   : > { %v198_v40 = vsel %vm192_vm1, %v197_v39, 0.0 }
  0x41   : > { %199 = vadd.xlane.f32.xlu0 %v198_v40 }
  0xac   : > { %v195_v41 = vpop.xlane.xlu0 %194 }
  0xad   : > { %v196_v42 = vmul.f32 0.00390625, %v195_v41 }
  0xaf   : > { %v215_v43 = vperm.slane %v196_v42, 0  ;;  %v202_v45 = vmul.f32 %v196_v42, %v196_v42 }
  0xb1   : > { %216 = vst [vmem:[%s442_s19] sm:$0xff] %v215_v43 }
  0xb4   : > { %v200_v44 = vpop.xlane.xlu0 %199 }
  0xb5   : > { %v201_v46 = vmul.f32 0.00390625, %v200_v44 }
  0xb7   : > { %v203_v47 = vsub.f32 %v201_v46, %v202_v45 }
  0xb9   : > { %v204_v48 = vadd.f32 1e-05, %v203_v47 }
  0xbb   : > { %352 = vrsqrt.f32 %v204_v48  ;;  %vm211_vm3 = vweird.f32 %v204_v48 }
  0xc1   : > { %v353_v49 = vpop.eup %352 }
  0xc2   : > { %v206_v50 = vmul.f32 %v353_v49, %v204_v48  ;;  %vm212_vm2 = vweird.f32 %v353_v49 }
  0xc3   : > { %vm213_vm4 = vmor %vm211_vm3, %vm212_vm2 }
  0xc4   : > { %v207_v51 = vmul.f32 %v353_v49, %v206_v50 }
  0xc6   : > { %v208_v52 = vmul.f32 0.5, %v207_v51 }
  0xc8   : > { %v209_v53 = vsub.f32 1.5, %v208_v52 }
  0xca   : > { %v210_v54 = vmul.f32 %v353_v49, %v209_v53 }
  0xcc   : > { %v214_v55 = vsel %vm213_vm4, %v353_v49, %v210_v54 }
  0xcd   : > { %v217_v56 = vperm.slane %v214_v55, 0 }
  0xcf   : > { %305 = vst [vmem:[%s442_s19 + $0x8] sm:$0xff] %v217_v56 }
  0xd0 PF: > { %s11_s10 = sadd.s32 1, %s392_s10   ;;  %s468_s6 = smov %s384_s8 }
  0xd1   : > { %p8_p9 = scmp.ge.s32.totalorder %s11_s10, 10   ;;  %s469_s7 = smov %s388_s9 }
  0xd2   : > { %s470_s8 = smov %s473_s11  ;;  %s471_s9 = smov %s477_s12 }
  0xd3   :  { %10 = sbr.rel (!%p8_p9) target bundleno = 3 (0x3), region = 63 }

// kernel: _lambda_.20
= control target key start
LH: loop header
LB: loop body
LE: loop exit
PB: predicated region body
PF: predicated region fallthrough
CT: control target
= control target key end

     0   :  { %s941_s21 = smov 0   ;;  %s943_s22 = smov 0   ;;  %s1177_s0 = inlined_call_operand.vmem [shape: f32[2,4,36,128], index: 0, kind: input, shape index: {}]   ;;  %s1178_s1 = inlined_call_operand.vmem [shape: f32[2,2,8,128], index: 1, kind: input, shape index: {}]   ;;  %s1179_s2 = inlined_call_operand.vmem [shape: f32[1,128], index: 2, kind: input, shape index: {}]   ;;  %s1180_s3 = inlined_call_operand.vmem [shape: f32[1,128], index: 3, kind: input, shape index: {}]   ;;  %s1181_s4 = inlined_call_operand.vmem [shape: f32[36,1], index: 4, kind: input, shape index: {}]   ;;  %s1182_s5 = inlined_call_operand.vmem [shape: f32[2,4,36,128], index: 5, kind: input, shape index: {}]   ;;  %s1183_s6 = inlined_call_operand.vmem [shape: f32[2,4,36,128], index: 6, kind: output, shape index: {}]  }
   0x1   :  { %s945_s23 = smov 0   ;;  %s947_s24 = smov 0  }
   0x2   :  { %s949_s25 = smov 0  }
   0x3 LB: > { %s25_s26 = sadd.s32 1, %s895_s23  ;;  %s28_s27 = sadd.s32 1, %s899_s24  ;;  %s903_s25 = sphi %s949_s25, %s16_s25   ;;  %s899_s24 = sphi %s947_s24, %s1189_s24   ;;  %s895_s23 = sphi %s945_s23, %s1188_s23   ;;  %s891_s22 = sphi %s943_s22, %s1187_s22   ;;  %s887_s21 = sphi %s941_s21, %s1186_s21  }
   0x4   : > { %p26_p0 = scmp.ge.s32.totalorder %s25_s26, 4  ;;  %p788_p1 = scmp.ge.s32.totalorder %s903_s25, 1 }
   0x5   : > { %p258_p2 = scmp.lt.s32.totalorder %s903_s25, 9 }
   0x6   : > { %s1191_s26 = smov (%p26_p0, %s25_s26), 0  ;;  %s1193_s27 = smov (!%p26_p0, %s28_s27), %s899_s24 }
   0x7   : > { %p259_p3 = pnand %p788_p1, %p258_p2  ;;  %p30_p4 = scmp.ge.s32.totalorder %s1193_s27, 2 }
   0x8   : > { %p310_p5 = scmp.lt.s32.totalorder (!%p259_p3), %s891_s22, 1  ;;  %p312_p6 = scmp.lt.s32.totalorder (!%p259_p3), %s887_s21, 3 }
   0x9   : > { %s1195_s27 = smov (%p30_p4, %s1193_s27), 0  ;;  %262 = sbr.rel (%p259_p3) target bundleno = 161 (0xa1), region = 44 }
   0xe   : > { %v618_v0 = vld [vmem:[%s1181_s4 + $0x10] sm:$0xff]  ;;  %v616_v1 = vld [vmem:[%s1181_s4] sm:$0xff]  ;;  %v905_v2 = vmov 0   ;;  %s1197_s22 = smov (!%p310_p5, %s891_s22), 1  ;;  %v619_v6 = vld [vmem:[%s1181_s4 + $0x18] sm:$0xff]  ;;  %s1199_s21 = smov (!%p312_p6, %s887_s21), 3 }
   0xf   : > { %851 = vset.pattern.permute.xlu1 %v905_v2  ;;  %850 = vset.pattern.permute.xlu0 %v905_v2  ;;  %v620_v3 = vld [vmem:[%s1181_s4 + $0x20] sm:$0xf]  ;;  %s802_s10 = sshll.u32 %s1197_s22, 4  ;;  %v617_v7 = vld [vmem:[%s1181_s4 + $0x8] sm:$0xff]  ;;  %s804_s18 = smul.u32 20, %s1197_s22 }
  0x10   : > { %633 = vperm.xlu1 %851, %v618_v0   ;;  %623 = vperm.xlu0 %850, %v616_v1   ;;  %s323_s13 = scalar_lea.vmem %s1178_s1, %s802_s10  ;;  %s803_s19 = smul.u32 5, %s1199_s21  ;;  %v853_v16 = vld [vmem:[%s1179_s2] ss:$0 sm:$0xff] }
  0x11   : > { %852 = vset.pattern.permute.xlu2 %v905_v2  ;;  %v342_v4 = vld [vmem:[%s323_s13] sm:$0x1]  ;;  %v794_v5 = vld [vmem:[%s323_s13 + $0x8] sm:$0x1] }
  0x12   : > { %643 = vperm.xlu2 %852, %v620_v3   ;;  %805 = vpush %v342_v4  ;;  %s316_s20 = sadd.s32 %s804_s18, %s803_s19  ;;  %v854_v22 = vld [vmem:[%s1180_s3] ss:$0 sm:$0xff] }
  0x13   : > { %807 = vpush %v794_v5  ;;  %s993_s28 = sshll.u32 %s316_s20, 3 }
  0x14   : > { %s318_s7 = scalar_lea.vmem %s1177_s0, %s993_s28  ;;  %s1006_s12 = scalar_lea.vmem %s1182_s5, %s993_s28 }
  0x15   : > { %v345_v8 = vld [vmem:[%s318_s7] sm:$0xff]  ;;  %v347_v9 = vld [vmem:[%s318_s7 + $0x10] sm:$0xff]  ;;  %v348_v10 = vld [vmem:[%s318_s7 + $0x18] sm:$0xff]  ;;  %s1147_s17 = scalar_lea.vmem %s1183_s6, %s993_s28 }
  0x16   : > { %v349_v11 = vld [vmem:[%s318_s7 + $0x20] sm:$0xf]  ;;  %v346_v24 = vld [vmem:[%s318_s7 + $0x8] sm:$0xff]  ;;  %v388_v29 = vld [vmem:[%s1006_s12 + $0x10] sm:$0xff] }
  0x17   : > { %v386_v30 = vld [vmem:[%s1006_s12] sm:$0xff]  ;;  %v389_v31 = vld [vmem:[%s1006_s12 + $0x18] sm:$0xff] }
  0x18   : > { %638 = vperm.xlu1 %851, %v619_v6   ;;  %628 = vperm.xlu0 %850, %v617_v7   ;;  %v390_v34 = vld [vmem:[%s1006_s12 + $0x20] sm:$0xf] }
  0x43   : > { %s806_s8 = spop %805 }
  0x44   : > { %v352_v12 = vstv %s806_s8  ;;  %s808_s9 = spop %807 }
  0x45   : > { %v354_v13 = vsub.f32 %v345_v8, %v352_v12  ;;  %v356_v14 = vsub.f32 %v347_v9, %v352_v12  ;;  %v357_v15 = vsub.f32 %v348_v10, %v352_v12  ;;  %v358_v17 = vsub.f32 %v349_v11, %v352_v12  ;;  %v387_v9 = vld [vmem:[%s1006_s12 + $0x8] sm:$0xff] }
  0x46   : > { %v361_v18 = vstv %s808_s9  ;;  %v355_v36 = vsub.f32 %v346_v24, %v352_v12 }
  0x47   : > { %v363_v19 = vmul.f32 %v361_v18, %v354_v13  ;;  %v365_v20 = vmul.f32 %v361_v18, %v356_v14  ;;  %v366_v21 = vmul.f32 %v361_v18, %v357_v15  ;;  %v367_v23 = vmul.f32 %v361_v18, %v358_v17 }
  0x48   : > { %v364_v44 = vmul.f32 %v361_v18, %v355_v36 }
  0x49   : > { %v372_v25 = vmul.f32 %v853_v16, %v363_v19  ;;  %v374_v26 = vmul.f32 %v853_v16, %v365_v20  ;;  %v375_v27 = vmul.f32 %v853_v16, %v366_v21  ;;  %v376_v28 = vmul.f32 %v853_v16, %v367_v23 }
  0x4a   : > { %v373_v53 = vmul.f32 %v853_v16, %v364_v44 }
  0x4b   : > { %v383_v32 = vadd.f32 %v854_v22, %v374_v26  ;;  %v381_v33 = vadd.f32 %v854_v22, %v372_v25  ;;  %v384_v35 = vadd.f32 %v854_v22, %v375_v27  ;;  %v385_v37 = vadd.f32 %v854_v22, %v376_v28 }
  0x4c   : > { %v382_v4 = vadd.f32 %v854_v22, %v373_v53 }
  0x4d   : > { %v1015_v38 = vadd.f32 %v388_v29, %v383_v32  ;;  %v1017_v39 = vadd.f32 %v386_v30, %v381_v33  ;;  %v1019_v40 = vadd.f32 %v389_v31, %v384_v35  ;;  %v1021_v41 = vadd.f32 %v390_v34, %v385_v37 }
  0x4e   : > { %v1066_v20 = vadd.f32 %v387_v9, %v382_v4 }
  0x4f   : > { %v1024_v42 = vmul.f32 0.70710677, %v1015_v38  ;;  %v1027_v43 = vmul.f32 0.70710677, %v1017_v39  ;;  %v1030_v45 = vmul.f32 0.70710677, %v1021_v41 }
  0x50   : > { %v1033_v46 = vmul.f32 0.70710677, %v1019_v40 }
  0x51   : > { %v486_v47 = vmul.f32 %v1024_v42, %v1024_v42  ;;  %v406_v48 = vmul.f32 %v1027_v43, %v1027_v43  ;;  %v566_v49 = vmul.f32 %v1030_v45, %v1030_v45 }
  0x52   : > { %v526_v50 = vmul.f32 %v1033_v46, %v1033_v46 }
  0x53   : > { %v1043_v51 = vmin.f32 %v486_v47, 16.0  ;;  %v1045_v52 = vmin.f32 %v406_v48, 16.0  ;;  %v1047_v54 = vmin.f32 %v566_v49, 16.0 }
  0x54   : > { %v1049_v55 = vmin.f32 %v526_v50, 16.0 }
  0x55   : > { %v488_v56 = vmul.f32 2.1237322e-06, %v1043_v51  ;;  %v499_v57 = vmul.f32 3.8918573e-05, %v1043_v51  ;;  %v408_v58 = vmul.f32 2.1237322e-06, %v1045_v52 }
  0x56   : > { %v419_v59 = vmul.f32 3.8918573e-05, %v1045_v52  ;;  %v568_v60 = vmul.f32 2.1237322e-06, %v1047_v54  ;;  %v579_v61 = vmul.f32 3.8918573e-05, %v1047_v54 }
  0x57   : > { %v489_v62 = vadd.f32 0.00028619796, %v488_v56  ;;  %v500_v63 = vadd.f32 0.001143296, %v499_v57  ;;  %v409_v0 = vadd.f32 0.00028619796, %v408_v58 }
  0x58   : > { %v420_v1 = vadd.f32 0.001143296, %v419_v59  ;;  %v569_v2 = vadd.f32 0.00028619796, %v568_v60  ;;  %v580_v3 = vadd.f32 0.001143296, %v579_v61 }
  0x59   : > { %v490_v5 = vmul.f32 %v489_v62, %v1043_v51  ;;  %v501_v6 = vmul.f32 %v500_v63, %v1043_v51  ;;  %v410_v7 = vmul.f32 %v409_v0, %v1045_v52  ;;  %v528_v8 = vmul.f32 2.1237322e-06, %v1049_v55 }
  0x5a   : > { %v421_v10 = vmul.f32 %v420_v1, %v1045_v52  ;;  %v570_v11 = vmul.f32 %v569_v2, %v1047_v54  ;;  %v581_v12 = vmul.f32 %v580_v3, %v1047_v54  ;;  %v539_v13 = vmul.f32 3.8918573e-05, %v1049_v55 }
  0x5b   : > { %v491_v14 = vadd.f32 0.0036580483, %v490_v5  ;;  %v502_v15 = vadd.f32 0.014752088, %v501_v6  ;;  %v411_v16 = vadd.f32 0.0036580483, %v410_v7 }
  0x5c   : > { %v422_v17 = vadd.f32 0.014752088, %v421_v10  ;;  %v571_v18 = vadd.f32 0.0036580483, %v570_v11  ;;  %v582_v19 = vadd.f32 0.014752088, %v581_v12 }
  0x5d   : > { %v492_v21 = vmul.f32 %v491_v14, %v1043_v51  ;;  %v503_v22 = vmul.f32 %v502_v15, %v1043_v51  ;;  %v412_v23 = vmul.f32 %v411_v16, %v1045_v52  ;;  %v529_v24 = vadd.f32 0.00028619796, %v528_v8 }
  0x5e   : > { %v423_v25 = vmul.f32 %v422_v17, %v1045_v52  ;;  %v572_v26 = vmul.f32 %v571_v18, %v1047_v54  ;;  %v583_v27 = vmul.f32 %v582_v19, %v1047_v54  ;;  %v540_v28 = vadd.f32 0.001143296, %v539_v13 }
  0x5f   : > { %v493_v29 = vadd.f32 0.05243302, %v492_v21  ;;  %v504_v30 = vadd.f32 0.112945676, %v503_v22  ;;  %v413_v31 = vadd.f32 0.05243302, %v412_v23  ;;  %v530_v32 = vmul.f32 %v529_v24, %v1049_v55 }
  0x60   : > { %v424_v33 = vadd.f32 0.112945676, %v423_v25  ;;  %v573_v34 = vadd.f32 0.05243302, %v572_v26  ;;  %v584_v35 = vadd.f32 0.112945676, %v583_v27  ;;  %v541_v36 = vmul.f32 %v540_v28, %v1049_v55 }
  0x61   : > { %v494_v37 = vmul.f32 %v493_v29, %v1043_v51  ;;  %v505_v44 = vmul.f32 %v504_v30, %v1043_v51  ;;  %v414_v47 = vmul.f32 %v413_v31, %v1045_v52  ;;  %v531_v48 = vadd.f32 0.0036580483, %v530_v32 }
  0x62   : > { %v425_v49 = vmul.f32 %v424_v33, %v1045_v52  ;;  %v574_v50 = vmul.f32 %v573_v34, %v1047_v54  ;;  %v585_v53 = vmul.f32 %v584_v35, %v1047_v54  ;;  %v542_v56 = vadd.f32 0.014752088, %v541_v36 }
  0x63   : > { %v495_v57 = vadd.f32 0.18741608, %v494_v37  ;;  %v506_v58 = vadd.f32 0.4994258, %v505_v44  ;;  %v415_v59 = vadd.f32 0.18741608, %v414_v47  ;;  %v532_v1 = vmul.f32 %v531_v48, %v1049_v55 }
  0x64   : > { %v426_v60 = vadd.f32 0.4994258, %v425_v49  ;;  %v586_v61 = vadd.f32 0.4994258, %v585_v53  ;;  %v543_v62 = vmul.f32 %v542_v56, %v1049_v55  ;;  %v575_v0 = vadd.f32 0.18741608, %v574_v50 }
  0x65   : > { %v507_v63 = vmul.f32 %v506_v58, %v1043_v51  ;;  %v1086_v2 = vmul.f32 0.70710677, %v1066_v20  ;;  %v496_v3 = vmul.f32 %v495_v57, %v1043_v51  ;;  %v416_v8 = vmul.f32 %v415_v59, %v1045_v52 }
  0x66   : > { %v427_v4 = vmul.f32 %v426_v60, %v1045_v52  ;;  %v587_v5 = vmul.f32 %v586_v61, %v1047_v54  ;;  %v544_v6 = vadd.f32 0.112945676, %v543_v62  ;;  %v576_v11 = vmul.f32 %v575_v0, %v1047_v54 }
  0x67   : > { %v508_v7 = vadd.f32 1.0, %v507_v63  ;;  %v446_v12 = vmul.f32 %v1086_v2, %v1086_v2  ;;  %v497_v13 = vadd.f32 1.1283791, %v496_v3  ;;  %v533_v51 = vadd.f32 0.05243302, %v532_v1 }
  0x68   : > { %v428_v9 = vadd.f32 1.0, %v427_v4  ;;  %v1092_v10 = vadd.f32 1.0, %v587_v5  ;;  %v545_v14 = vmul.f32 %v544_v6, %v1049_v55  ;;  %v417_v15 = vadd.f32 1.1283791, %v416_v8 }
  0x69   : > { %855 = vrcp.f32 %v508_v7  ;;  %v518_v16 = vand.u32 2147483647, %v508_v7  ;;  %v1100_v52 = vmul.f32 0.5, %v1015_v38  ;;  %v1103_v17 = vmul.f32 0.5, %v1017_v39 }
  0x6a   : > { %857 = vrcp.f32 %v428_v9  ;;  %v577_v18 = vadd.f32 1.1283791, %v576_v11  ;;  %v498_v54 = vmul.f32 %v497_v13, %v1024_v42  ;;  %v534_v19 = vmul.f32 %v533_v51, %v1049_v55 }
  0x6b   : > { %859 = vrcp.f32 %v1092_v10  ;;  %v546_v21 = vadd.f32 0.4994258, %v545_v14  ;;  %v1107_v22 = vmin.f32 %v446_v12, 16.0  ;;  %vm514_vm0 = vweird.f32 %v508_v7 }
  0x6c   : > { %v520_v24 = vand.u32 2147483648, %v508_v7  ;;  %v418_v25 = vmul.f32 %v417_v15, %v1027_v43  ;;  %vm434_vm1 = vweird.f32 %v428_v9  ;;  %vm1110_vm2 = vcmp.eq.f32.partialorder %v518_v16, 8.507059e+37 }
  0x6d   : > { %v547_v39 = vmul.f32 %v546_v21, %v1049_v55  ;;  %v448_v42 = vmul.f32 2.1237322e-06, %v1107_v22  ;;  %v438_v29 = vand.u32 2147483647, %v428_v9  ;;  %v440_v30 = vand.u32 2147483648, %v428_v9 }
  0x6e   : > { %v578_v31 = vmul.f32 %v577_v18, %v1030_v45  ;;  %v459_v35 = vmul.f32 3.8918573e-05, %v1107_v22  ;;  %v521_v36 = vor.u32 1.1754944e-38, %v520_v24  ;;  %vm594_vm3 = vweird.f32 %v1092_v10 }
  0x6f   : > { %v856_v23 = vpop.eup %855  ;;  %v1117_v34 = vadd.f32 1.0, %v547_v39  ;;  %v449_v43 = vadd.f32 0.00028619796, %v448_v42  ;;  %v535_v48 = vadd.f32 0.18741608, %v534_v19  ;;  %v600_v50 = vand.u32 2147483648, %v1092_v10 }
  0x70   : > { %v858_v26 = vpop.eup %857  ;;  %v510_v38 = vmul.f32 %v856_v23, %v508_v7  ;;  %vm515_vm4 = vweird.f32 %v856_v23  ;;  %v598_v56 = vand.u32 2147483647, %v1092_v10  ;;  %v460_v58 = vadd.f32 0.001143296, %v459_v35 }
  0x71   : > { %v430_v28 = vmul.f32 %v858_v26, %v428_v9  ;;  %v860_v32 = vpop.eup %859  ;;  %861 = vrcp.f32 %v1117_v34  ;;  %vm435_vm5 = vweird.f32 %v858_v26  ;;  %v450_v57 = vmul.f32 %v449_v43, %v1107_v22  ;;  %vm516_vm6 = vmor %vm514_vm0, %vm515_vm4 }
  0x72   : > { %v511_v33 = vsub.f32 1.0, %v510_v38  ;;  %v590_v44 = vmul.f32 %v860_v32, %v1092_v10  ;;  %vm439_vm7 = vcmp.eq.f32.partialorder %v438_v29, 8.507059e+37  ;;  %vm595_vm8 = vweird.f32 %v860_v32  ;;  %vm436_vm9 = vmor %vm434_vm1, %vm435_vm5 }
  0x73   : > { %v431_v37 = vsub.f32 1.0, %v430_v28  ;;  %v441_v62 = vor.u32 1.1754944e-38, %v440_v30  ;;  %v536_v63 = vmul.f32 %v535_v48, %v1049_v55  ;;  %v461_v0 = vmul.f32 %v460_v58, %v1107_v22  ;;  %vm596_vm10 = vmor %vm594_vm3, %vm595_vm8 }
  0x74   : > { %v512_v47 = vmul.f32 %v856_v23, %v511_v33  ;;  %v591_v45 = vsub.f32 1.0, %v590_v44  ;;  %v601_v5 = vor.u32 1.1754944e-38, %v600_v50  ;;  %v451_v11 = vadd.f32 0.0036580483, %v450_v57 }
  0x75   : > { %v432_v49 = vmul.f32 %v858_v26, %v431_v37  ;;  %v462_v9 = vadd.f32 0.014752088, %v461_v0  ;;  %vm599_vm11 = vcmp.eq.f32.partialorder %v598_v56, 8.507059e+37  ;;  %v537_v15 = vadd.f32 1.1283791, %v536_v63 }
  0x76   : > { %v513_v53 = vadd.f32 %v856_v23, %v512_v47  ;;  %v592_v60 = vmul.f32 %v860_v32, %v591_v45  ;;  %v558_v21 = vand.u32 2147483647, %v1117_v34  ;;  %v452_v24 = vmul.f32 %v451_v11, %v1107_v22 }
  0x77   : > { %v433_v59 = vadd.f32 %v858_v26, %v432_v49  ;;  %v862_v6 = vpop.eup %861  ;;  %v463_v16 = vmul.f32 %v462_v9, %v1107_v22  ;;  %v400_v28 = vmul.f32 0.5, %v1021_v41  ;;  %v538_v29 = vmul.f32 %v537_v15, %v1033_v46  ;;  %v644_v41 = vpop.permute.xlu2 %643 }
  0x78   : > { %v517_v61 = vsel %vm516_vm6, %v856_v23, %v513_v53  ;;  %v593_v4 = vadd.f32 %v860_v32, %v592_v60  ;;  %v550_v55 = vmul.f32 %v862_v6, %v1117_v34  ;;  %v560_v23 = vand.u32 2147483648, %v1117_v34 }
  0x79   : > { %v522_v1 = vsel %vm1110_vm2, %v521_v36, %v517_v61  ;;  %v437_v3 = vsel %vm436_vm9, %v858_v26, %v433_v59  ;;  %vm555_vm12 = vweird.f32 %v862_v6  ;;  %vm554_vm13 = vweird.f32 %v1117_v34 }
  0x7a   : > { %v523_v7 = vmul.f32 %v522_v1, %v498_v54  ;;  %v442_v8 = vsel %vm439_vm7, %v441_v62, %v437_v3  ;;  %v597_v13 = vsel %vm596_vm10, %v860_v32, %v593_v4  ;;  %v551_v54 = vsub.f32 1.0, %v550_v55  ;;  %vm556_vm14 = vmor %vm554_vm13, %vm555_vm12 }
  0x7b   : > { %v443_v12 = vmul.f32 %v442_v8, %v418_v25  ;;  %v602_v14 = vsel %vm599_vm11, %v601_v5, %v597_v13  ;;  %v464_v25 = vadd.f32 0.112945676, %v463_v16  ;;  %vm559_vm15 = vcmp.eq.f32.partialorder %v558_v21, 8.507059e+37 }
  0x7c   : > { %v797_v51 = vclamps-f32 %v523_v7, 1.0  ;;  %v603_v19 = vmul.f32 %v602_v14, %v578_v31  ;;  %v552_v27 = vmul.f32 %v862_v6, %v551_v54  ;;  %v561_v46 = vor.u32 1.1754944e-38, %v560_v23 }
  0x7d   : > { %v795_v18 = vclamps-f32 %v443_v12, 1.0  ;;  %v465_v30 = vmul.f32 %v464_v25, %v1107_v22  ;;  %v453_v47 = vadd.f32 0.05243302, %v452_v24  ;;  %v399_v56 = vmul.f32 0.5, %v1019_v40 }
  0x7e   : > { %v608_v10 = vadd.f32 1.0, %v797_v51  ;;  %v799_v38 = vclamps-f32 %v603_v19, 1.0  ;;  %v553_v33 = vadd.f32 %v862_v6, %v552_v27 }
  0x7f   : > { %v606_v26 = vadd.f32 1.0, %v795_v18  ;;  %v466_v35 = vadd.f32 0.4994258, %v465_v30  ;;  %v454_v53 = vmul.f32 %v453_v47, %v1107_v22 }
  0x80   : > { %v613_v42 = vmul.f32 %v608_v10, %v1100_v52  ;;  %v610_v32 = vadd.f32 1.0, %v799_v38  ;;  %v557_v44 = vsel %vm556_vm14, %v862_v6, %v553_v33 }
  0x81   : > { %v611_v31 = vmul.f32 %v606_v26, %v1103_v17  ;;  %v562_v48 = vsel %vm559_vm15, %v561_v46, %v557_v44  ;;  %v467_v17 = vmul.f32 %v466_v35, %v1107_v22  ;;  %v455_v60 = vadd.f32 0.18741608, %v454_v53 }
  0x82   : > { %v634_v39 = vpop.permute.xlu1 %633  ;;  %v624_v43 = vpop.permute.xlu0 %623  ;;  %v615_v37 = vmul.f32 %v610_v32, %v400_v28  ;;  %v563_v34 = vmul.f32 %v562_v48, %v538_v29 }
  0x83   : > { %v648_v52 = vmul.f32 %v634_v39, %v613_v42  ;;  %v646_v36 = vmul.f32 %v624_v43, %v611_v31  ;;  %v468_v45 = vadd.f32 1.0, %v467_v17  ;;  %v456_v63 = vmul.f32 %v455_v60, %v1107_v22 }
  0x84   : > { %v650_v49 = vmul.f32 %v644_v41, %v615_v37  ;;  %v798_v50 = vclamps-f32 %v563_v34, 1.0  ;;  %v397_v22 = vmul.f32 0.5, %v1066_v20 }
  0x85   : > { %653 = vst [vmem:[%s1147_s17 + $0x10] sm:$0xff] %v648_v52  ;;  %863 = vrcp.f32 %v468_v45  ;;  %v480_v3 = vand.u32 2147483648, %v468_v45  ;;  %v457_v4 = vadd.f32 1.1283791, %v456_v63  ;;  %v478_v6 = vand.u32 2147483647, %v468_v45 }
  0x86   : > { %651 = vst [vmem:[%s1147_s17] sm:$0xff] %v646_v36  ;;  %v609_v57 = vadd.f32 1.0, %v798_v50  ;;  %vm474_vm1 = vweird.f32 %v468_v45 }
  0x87   : > { %655 = vst [vmem:[%s1147_s17 + $0x20] sm:$0xf] %v650_v49  ;;  %v481_v40 = vor.u32 1.1754944e-38, %v480_v3  ;;  %v458_v8 = vmul.f32 %v457_v4, %v1086_v2  ;;  %vm479_vm3 = vcmp.eq.f32.partialorder %v478_v6, 8.507059e+37 }
  0x88   : > { %v614_v59 = vmul.f32 %v609_v57, %v399_v56 }
  0x8a   : > { %v639_v58 = vpop.permute.xlu1 %638  ;;  %v629_v51 = vpop.permute.xlu0 %628 }
  0x8b   : > { %v649_v61 = vmul.f32 %v639_v58, %v614_v59  ;;  %v864_v62 = vpop.eup %863 }
  0x8c   : > { %v470_v0 = vmul.f32 %v864_v62, %v468_v45  ;;  %vm475_vm0 = vweird.f32 %v864_v62 }
  0x8d   : > { %654 = vst [vmem:[%s1147_s17 + $0x18] sm:$0xff] %v649_v61  ;;  %vm476_vm2 = vmor %vm474_vm1, %vm475_vm0 }
  0x8e   : > { %v471_v1 = vsub.f32 1.0, %v470_v0 }
  0x90   : > { %v472_v5 = vmul.f32 %v864_v62, %v471_v1 }
  0x92   : > { %v473_v7 = vadd.f32 %v864_v62, %v472_v5 }
  0x94   : > { %v477_v11 = vsel %vm476_vm2, %v864_v62, %v473_v7 }
  0x95   : > { %v482_v9 = vsel %vm479_vm3, %v481_v40, %v477_v11 }
  0x96   : > { %v483_v12 = vmul.f32 %v482_v9, %v458_v8 }
  0x98   : > { %v796_v13 = vclamps-f32 %v483_v12, 1.0 }
  0x9a   : > { %v607_v55 = vadd.f32 1.0, %v796_v13 }
  0x9c   : > { %v612_v14 = vmul.f32 %v607_v55, %v397_v22 }
  0x9e   : > { %v647_v15 = vmul.f32 %v629_v51, %v612_v14 }
  0xa0   : > { %652 = vst [vmem:[%s1147_s17 + $0x8] sm:$0xff] %v647_v15 }
  0xa1 PF: > { %s16_s25 = sadd.s32 1, %s903_s25   ;;  %s1186_s21 = smov %s895_s23 }
  0xa2   : > { %p13_p7 = scmp.ge.s32.totalorder %s16_s25, 10   ;;  %s1187_s22 = smov %s899_s24 }
  0xa3   : > { %s1188_s23 = smov %s1191_s26  ;;  %s1189_s24 = smov %s1195_s27 }
  0xa4   :  { %15 = sbr.rel (!%p13_p7) target bundleno = 3 (0x3), region = 81 }

// kernel: _lambda_.17
= control target key start
LH: loop header
LB: loop body
LE: loop exit
PB: predicated region body
PF: predicated region fallthrough
CT: control target
= control target key end

     0   :  { %s843_s18 = smov 0   ;;  %s845_s19 = smov 0   ;;  %s1077_s0 = inlined_call_operand.vmem [shape: f32[2,4,36,128], index: 0, kind: input, shape index: {}]   ;;  %s1078_s1 = inlined_call_operand.vmem [shape: f32[2,2,8,128], index: 1, kind: input, shape index: {}]   ;;  %s1079_s2 = inlined_call_operand.vmem [shape: f32[1,128], index: 2, kind: input, shape index: {}]   ;;  %s1080_s3 = inlined_call_operand.vmem [shape: f32[1,128], index: 3, kind: input, shape index: {}]   ;;  %s1081_s4 = inlined_call_operand.vmem [shape: f32[36,1], index: 4, kind: input, shape index: {}]   ;;  %s1082_s5 = inlined_call_operand.vmem [shape: f32[2,4,36,128], index: 5, kind: output, shape index: {}]  }
   0x1   :  { %s847_s20 = smov 0   ;;  %s849_s21 = smov 0  }
   0x2   :  { %s851_s22 = smov 0  }
   0x3 LB: > { %s24_s23 = sadd.s32 1, %s802_s20  ;;  %s27_s24 = sadd.s32 1, %s806_s21  ;;  %s810_s22 = sphi %s851_s22, %s15_s22   ;;  %s806_s21 = sphi %s849_s21, %s1090_s21   ;;  %s802_s20 = sphi %s847_s20, %s1089_s20   ;;  %s798_s19 = sphi %s845_s19, %s1088_s19   ;;  %s794_s18 = sphi %s843_s18, %s1087_s18  }
   0x4   : > { %p25_p0 = scmp.ge.s32.totalorder %s24_s23, 4  ;;  %p696_p1 = scmp.ge.s32.totalorder %s810_s22, 1 }
   0x5   : > { %p217_p2 = scmp.lt.s32.totalorder %s810_s22, 9 }
   0x6   : > { %s1092_s23 = smov (%p25_p0, %s24_s23), 0  ;;  %s1094_s24 = smov (!%p25_p0, %s27_s24), %s806_s21 }
   0x7   : > { %p218_p3 = pnand %p696_p1, %p217_p2  ;;  %p29_p4 = scmp.ge.s32.totalorder %s1094_s24, 2 }
   0x8   : > { %p258_p5 = scmp.lt.s32.totalorder (!%p218_p3), %s798_s19, 1  ;;  %p260_p6 = scmp.lt.s32.totalorder (!%p218_p3), %s794_s18, 3 }
   0x9   : > { %s1096_s24 = smov (%p29_p4, %s1094_s24), 0  ;;  %221 = sbr.rel (%p218_p3) target bundleno = 159 (0x9f), region = 40 }
   0xe   : > { %v547_v0 = vld [vmem:[%s1081_s4 + $0x10] sm:$0xff]  ;;  %v545_v1 = vld [vmem:[%s1081_s4] sm:$0xff]  ;;  %v812_v2 = vmov 0   ;;  %s1098_s19 = smov (!%p258_p5, %s798_s19), 1  ;;  %v548_v6 = vld [vmem:[%s1081_s4 + $0x18] sm:$0xff]  ;;  %s1100_s18 = smov (!%p260_p6, %s794_s18), 3 }
   0xf   : > { %758 = vset.pattern.permute.xlu1 %v812_v2  ;;  %757 = vset.pattern.permute.xlu0 %v812_v2  ;;  %v549_v3 = vld [vmem:[%s1081_s4 + $0x20] sm:$0xf]  ;;  %s709_s6 = sshll.u32 %s1098_s19, 4  ;;  %v546_v7 = vld [vmem:[%s1081_s4 + $0x8] sm:$0xff]  ;;  %s711_s14 = smul.u32 20, %s1098_s19 }
  0x10   : > { %562 = vperm.xlu1 %758, %v547_v0   ;;  %552 = vperm.xlu0 %757, %v545_v1   ;;  %s271_s9 = scalar_lea.vmem %s1078_s1, %s709_s6  ;;  %s710_s15 = smul.u32 5, %s1100_s18  ;;  %v760_v16 = vld [vmem:[%s1079_s2] ss:$0 sm:$0xff] }
  0x11   : > { %759 = vset.pattern.permute.xlu2 %v812_v2  ;;  %v281_v4 = vld [vmem:[%s271_s9] sm:$0x1]  ;;  %v701_v5 = vld [vmem:[%s271_s9 + $0x8] sm:$0x1] }
  0x12   : > { %572 = vperm.xlu2 %759, %v549_v3   ;;  %712 = vpush %v281_v4  ;;  %s895_s16 = sadd.s32 %s711_s14, %s710_s15  ;;  %v761_v22 = vld [vmem:[%s1080_s3] ss:$0 sm:$0xff] }
  0x13   : > { %714 = vpush %v701_v5  ;;  %s697_s17 = sshll.u32 %s895_s16, 3 }
  0x14   : > { %s266_s27 = scalar_lea.vmem %s1077_s0, %s697_s17  ;;  %s1047_s9 = scalar_lea.vmem %s1082_s5, %s697_s17 }
  0x15   : > { %v284_v8 = vld [vmem:[%s266_s27] sm:$0xff]  ;;  %v286_v9 = vld [vmem:[%s266_s27 + $0x10] sm:$0xff]  ;;  %v287_v10 = vld [vmem:[%s266_s27 + $0x18] sm:$0xff] }
  0x16   : > { %v288_v11 = vld [vmem:[%s266_s27 + $0x20] sm:$0xf]  ;;  %v285_v28 = vld [vmem:[%s266_s27 + $0x8] sm:$0xff] }
  0x18   : > { %567 = vperm.xlu1 %758, %v548_v6   ;;  %557 = vperm.xlu0 %757, %v546_v7  }
  0x43   : > { %s713_s28 = spop %712 }
  0x44   : > { %v291_v12 = vstv %s713_s28  ;;  %s715_s29 = spop %714 }
  0x45   : > { %v293_v13 = vsub.f32 %v284_v8, %v291_v12  ;;  %v295_v14 = vsub.f32 %v286_v9, %v291_v12  ;;  %v296_v15 = vsub.f32 %v287_v10, %v291_v12  ;;  %v297_v17 = vsub.f32 %v288_v11, %v291_v12 }
  0x46   : > { %v300_v18 = vstv %s715_s29  ;;  %v294_v35 = vsub.f32 %v285_v28, %v291_v12 }
  0x47   : > { %v302_v19 = vmul.f32 %v300_v18, %v293_v13  ;;  %v304_v20 = vmul.f32 %v300_v18, %v295_v14  ;;  %v305_v21 = vmul.f32 %v300_v18, %v296_v15  ;;  %v306_v23 = vmul.f32 %v300_v18, %v297_v17 }
  0x48   : > { %v303_v44 = vmul.f32 %v300_v18, %v294_v35 }
  0x49   : > { %v311_v24 = vmul.f32 %v760_v16, %v302_v19  ;;  %v313_v25 = vmul.f32 %v760_v16, %v304_v20  ;;  %v314_v26 = vmul.f32 %v760_v16, %v305_v21  ;;  %v315_v27 = vmul.f32 %v760_v16, %v306_v23 }
  0x4a   : > { %v312_v56 = vmul.f32 %v760_v16, %v303_v44 }
  0x4b   : > { %v909_v29 = vadd.f32 %v761_v22, %v313_v25  ;;  %v911_v30 = vadd.f32 %v761_v22, %v311_v24  ;;  %v913_v31 = vadd.f32 %v761_v22, %v314_v26  ;;  %v915_v32 = vadd.f32 %v761_v22, %v315_v27 }
  0x4c   : > { %v959_v10 = vadd.f32 %v761_v22, %v312_v56 }
  0x4d   : > { %v918_v33 = vmul.f32 0.70710677, %v909_v29  ;;  %v921_v34 = vmul.f32 0.70710677, %v911_v30  ;;  %v924_v36 = vmul.f32 0.70710677, %v915_v32 }
  0x4e   : > { %v927_v37 = vmul.f32 0.70710677, %v913_v31  ;;  %v979_v56 = vmul.f32 0.70710677, %v959_v10 }
  0x4f   : > { %v415_v38 = vmul.f32 %v918_v33, %v918_v33  ;;  %v335_v39 = vmul.f32 %v921_v34, %v921_v34  ;;  %v495_v40 = vmul.f32 %v924_v36, %v924_v36 }
  0x50   : > { %v455_v41 = vmul.f32 %v927_v37, %v927_v37 }
  0x51   : > { %v937_v42 = vmin.f32 %v415_v38, 16.0  ;;  %v939_v43 = vmin.f32 %v335_v39, 16.0  ;;  %v941_v45 = vmin.f32 %v495_v40, 16.0 }
  0x52   : > { %v943_v46 = vmin.f32 %v455_v41, 16.0 }
  0x53   : > { %v417_v47 = vmul.f32 2.1237322e-06, %v937_v42  ;;  %v428_v48 = vmul.f32 3.8918573e-05, %v937_v42  ;;  %v337_v49 = vmul.f32 2.1237322e-06, %v939_v43 }
  0x54   : > { %v497_v50 = vmul.f32 2.1237322e-06, %v941_v45  ;;  %v508_v51 = vmul.f32 3.8918573e-05, %v941_v45  ;;  %v348_v52 = vmul.f32 3.8918573e-05, %v939_v43 }
  0x55   : > { %v418_v53 = vadd.f32 0.00028619796, %v417_v47  ;;  %v429_v54 = vadd.f32 0.001143296, %v428_v48  ;;  %v338_v55 = vadd.f32 0.00028619796, %v337_v49 }
  0x56   : > { %v498_v57 = vadd.f32 0.00028619796, %v497_v50  ;;  %v509_v58 = vadd.f32 0.001143296, %v508_v51  ;;  %v349_v59 = vadd.f32 0.001143296, %v348_v52 }
  0x57   : > { %v419_v60 = vmul.f32 %v418_v53, %v937_v42  ;;  %v430_v61 = vmul.f32 %v429_v54, %v937_v42  ;;  %v339_v62 = vmul.f32 %v338_v55, %v939_v43  ;;  %v457_v63 = vmul.f32 2.1237322e-06, %v943_v46 }
  0x58   : > { %v499_v0 = vmul.f32 %v498_v57, %v941_v45  ;;  %v510_v1 = vmul.f32 %v509_v58, %v941_v45  ;;  %v350_v2 = vmul.f32 %v349_v59, %v939_v43  ;;  %v468_v3 = vmul.f32 3.8918573e-05, %v943_v46 }
  0x59   : > { %v420_v4 = vadd.f32 0.0036580483, %v419_v60  ;;  %v431_v5 = vadd.f32 0.014752088, %v430_v61  ;;  %v340_v6 = vadd.f32 0.0036580483, %v339_v62 }
  0x5a   : > { %v500_v7 = vadd.f32 0.0036580483, %v499_v0  ;;  %v511_v8 = vadd.f32 0.014752088, %v510_v1  ;;  %v351_v9 = vadd.f32 0.014752088, %v350_v2  ;;  %v375_v2 = vmul.f32 %v979_v56, %v979_v56 }
  0x5b   : > { %v421_v11 = vmul.f32 %v420_v4, %v937_v42  ;;  %v432_v12 = vmul.f32 %v431_v5, %v937_v42  ;;  %v341_v13 = vmul.f32 %v340_v6, %v939_v43  ;;  %v458_v14 = vadd.f32 0.00028619796, %v457_v63 }
  0x5c   : > { %v501_v15 = vmul.f32 %v500_v7, %v941_v45  ;;  %v512_v16 = vmul.f32 %v511_v8, %v941_v45  ;;  %v352_v17 = vmul.f32 %v351_v9, %v939_v43  ;;  %v469_v18 = vadd.f32 0.001143296, %v468_v3 }
  0x5d   : > { %v422_v19 = vadd.f32 0.05243302, %v421_v11  ;;  %v433_v20 = vadd.f32 0.112945676, %v432_v12  ;;  %v342_v21 = vadd.f32 0.05243302, %v341_v13  ;;  %v459_v22 = vmul.f32 %v458_v14, %v943_v46 }
  0x5e   : > { %v502_v23 = vadd.f32 0.05243302, %v501_v15  ;;  %v513_v24 = vadd.f32 0.112945676, %v512_v16  ;;  %v353_v25 = vadd.f32 0.112945676, %v352_v17  ;;  %v470_v26 = vmul.f32 %v469_v18, %v943_v46 }
  0x5f   : > { %v423_v27 = vmul.f32 %v422_v19, %v937_v42  ;;  %v434_v28 = vmul.f32 %v433_v20, %v937_v42  ;;  %v343_v35 = vmul.f32 %v342_v21, %v939_v43  ;;  %v460_v38 = vadd.f32 0.0036580483, %v459_v22 }
  0x60   : > { %v503_v39 = vmul.f32 %v502_v23, %v941_v45  ;;  %v514_v40 = vmul.f32 %v513_v24, %v941_v45  ;;  %v354_v41 = vmul.f32 %v353_v25, %v939_v43  ;;  %v471_v44 = vadd.f32 0.014752088, %v470_v26 }
  0x61   : > { %v424_v47 = vadd.f32 0.18741608, %v423_v27  ;;  %v435_v48 = vadd.f32 0.4994258, %v434_v28  ;;  %v344_v54 = vadd.f32 0.18741608, %v343_v35  ;;  %v461_v55 = vmul.f32 %v460_v38, %v943_v46 }
  0x62   : > { %v504_v49 = vadd.f32 0.18741608, %v503_v39  ;;  %v515_v50 = vadd.f32 0.4994258, %v514_v40  ;;  %v355_v51 = vadd.f32 0.4994258, %v354_v41  ;;  %v472_v52 = vmul.f32 %v471_v44, %v943_v46 }
  0x63   : > { %v436_v53 = vmul.f32 %v435_v48, %v937_v42  ;;  %v425_v58 = vmul.f32 %v424_v47, %v937_v42  ;;  %v345_v1 = vmul.f32 %v344_v54, %v939_v43  ;;  %v462_v4 = vadd.f32 0.05243302, %v461_v55 }
  0x64   : > { %v516_v57 = vmul.f32 %v515_v50, %v941_v45  ;;  %v356_v59 = vmul.f32 %v355_v51, %v939_v43  ;;  %v473_v60 = vadd.f32 0.112945676, %v472_v52  ;;  %v505_v61 = vmul.f32 %v504_v49, %v941_v45 }
  0x65   : > { %v437_v62 = vadd.f32 1.0, %v436_v53  ;;  %v426_v3 = vadd.f32 1.1283791, %v425_v58  ;;  %v993_v45 = vmul.f32 0.5, %v915_v32  ;;  %v996_v6 = vmul.f32 0.5, %v909_v29 }
  0x66   : > { %v517_v63 = vadd.f32 1.0, %v516_v57  ;;  %v985_v0 = vadd.f32 1.0, %v356_v59  ;;  %v474_v42 = vmul.f32 %v473_v60, %v943_v46  ;;  %v506_v5 = vadd.f32 1.1283791, %v505_v61 }
  0x67   : > { %762 = vrcp.f32 %v437_v62  ;;  %v447_v7 = vand.u32 2147483647, %v437_v62  ;;  %v346_v8 = vadd.f32 1.1283791, %v345_v1  ;;  %v427_v43 = vmul.f32 %v426_v3, %v918_v33 }
  0x68   : > { %764 = vrcp.f32 %v517_v63  ;;  %v463_v9 = vmul.f32 %v462_v4, %v943_v46  ;;  %v475_v11 = vadd.f32 0.4994258, %v474_v42  ;;  %v1000_v12 = vmin.f32 %v375_v2, 16.0 }
  0x69   : > { %766 = vrcp.f32 %v985_v0  ;;  %v507_v14 = vmul.f32 %v506_v5, %v924_v36  ;;  %vm523_vm0 = vweird.f32 %v517_v63  ;;  %v527_v15 = vand.u32 2147483647, %v517_v63 }
  0x6a   : > { %vm443_vm1 = vweird.f32 %v437_v62  ;;  %v529_v16 = vand.u32 2147483648, %v517_v63  ;;  %v476_v29 = vmul.f32 %v475_v11, %v943_v46  ;;  %v377_v18 = vmul.f32 2.1237322e-06, %v1000_v12 }
  0x6b   : > { %vm1005_vm2 = vcmp.eq.f32.partialorder %v447_v7, 8.507059e+37  ;;  %v449_v20 = vand.u32 2147483648, %v437_v62  ;;  %v347_v21 = vmul.f32 %v346_v8, %v921_v34  ;;  %v388_v25 = vmul.f32 3.8918573e-05, %v1000_v12 }
  0x6c   : > { %v1010_v23 = vadd.f32 1.0, %v476_v29  ;;  %v378_v24 = vadd.f32 0.00028619796, %v377_v18  ;;  %vm1013_vm3 = vcmp.eq.f32.partialorder %v527_v15, 8.507059e+37  ;;  %vm363_vm4 = vweird.f32 %v985_v0  ;;  %v573_v18 = vpop.permute.xlu2 %572 }
  0x6d   : > { %v763_v13 = vpop.eup %762  ;;  %v464_v38 = vadd.f32 0.18741608, %v463_v9  ;;  %v369_v40 = vand.u32 2147483648, %v985_v0  ;;  %v367_v44 = vand.u32 2147483647, %v985_v0  ;;  %v450_v50 = vor.u32 1.1754944e-38, %v449_v20 }
  0x6e   : > { %v765_v32 = vpop.eup %764  ;;  %v439_v17 = vmul.f32 %v763_v13, %v437_v62  ;;  %vm444_vm5 = vweird.f32 %v763_v13  ;;  %768 = vrcp.f32 %v1010_v23  ;;  %v379_v47 = vmul.f32 %v378_v24, %v1000_v12 }
  0x6f   : > { %v519_v19 = vmul.f32 %v765_v32, %v517_v63  ;;  %v767_v22 = vpop.eup %766  ;;  %vm524_vm6 = vweird.f32 %v765_v32  ;;  %v389_v48 = vadd.f32 0.001143296, %v388_v25  ;;  %vm445_vm7 = vmor %vm443_vm1, %vm444_vm5  ;;  %v530_v52 = vor.u32 1.1754944e-38, %v529_v16 }
  0x70   : > { %v440_v36 = vsub.f32 1.0, %v439_v17  ;;  %v359_v28 = vmul.f32 %v767_v22, %v985_v0  ;;  %vm364_vm8 = vweird.f32 %v767_v22  ;;  %vm525_vm9 = vmor %vm523_vm0, %vm524_vm6  ;;  %v465_v54 = vmul.f32 %v464_v38, %v943_v46 }
  0x71   : > { %v520_v26 = vsub.f32 1.0, %v519_v19  ;;  %v390_v55 = vmul.f32 %v389_v48, %v1000_v12  ;;  %v370_v60 = vor.u32 1.1754944e-38, %v369_v40  ;;  %vm365_vm10 = vmor %vm363_vm4, %vm364_vm8  ;;  %v380_v63 = vadd.f32 0.0036580483, %v379_v47 }
  0x72   : > { %v441_v35 = vmul.f32 %v763_v13, %v440_v36  ;;  %v360_v39 = vsub.f32 1.0, %v359_v28  ;;  %vm368_vm11 = vcmp.eq.f32.partialorder %v367_v44, 8.507059e+37  ;;  %v466_v7 = vadd.f32 1.1283791, %v465_v54 }
  0x73   : > { %v521_v34 = vmul.f32 %v765_v32, %v520_v26  ;;  %v391_v2 = vadd.f32 0.014752088, %v390_v55  ;;  %v489_v15 = vand.u32 2147483648, %v1010_v23  ;;  %v325_v33 = vmul.f32 0.5, %v911_v30 }
  0x74   : > { %v442_v41 = vadd.f32 %v763_v13, %v441_v35  ;;  %v361_v51 = vmul.f32 %v767_v22, %v360_v39  ;;  %v769_v61 = vpop.eup %768  ;;  %v467_v20 = vmul.f32 %v466_v7, %v927_v37  ;;  %vm483_vm13 = vweird.f32 %v1010_v23 }
  0x75   : > { %v522_v49 = vadd.f32 %v765_v32, %v521_v34  ;;  %v479_v4 = vmul.f32 %v769_v61, %v1010_v23  ;;  %v392_v8 = vmul.f32 %v391_v2, %v1000_v12  ;;  %vm484_vm12 = vweird.f32 %v769_v61 }
  0x76   : > { %v446_v53 = vsel %vm445_vm7, %v763_v13, %v442_v41  ;;  %v362_v59 = vadd.f32 %v767_v22, %v361_v51  ;;  %vm485_vm14 = vmor %vm483_vm13, %vm484_vm12  ;;  %v490_v37 = vor.u32 1.1754944e-38, %v489_v15  ;;  %v328_v47 = vmul.f32 0.5, %v913_v31 }
  0x77   : > { %v526_v57 = vsel %vm525_vm9, %v765_v32, %v522_v49  ;;  %v451_v58 = vsel %vm1005_vm2, %v450_v50, %v446_v53  ;;  %v480_v13 = vsub.f32 1.0, %v479_v4  ;;  %v393_v32 = vadd.f32 0.112945676, %v392_v8 }
  0x78   : > { %v531_v62 = vsel %vm1013_vm3, %v530_v52, %v526_v57  ;;  %v452_v1 = vmul.f32 %v451_v58, %v427_v43  ;;  %v366_v46 = vsel %vm365_vm10, %v767_v22, %v362_v59  ;;  %v487_v43 = vand.u32 2147483647, %v1010_v23 }
  0x79   : > { %v532_v3 = vmul.f32 %v531_v62, %v507_v14  ;;  %v371_v5 = vsel %vm368_vm11, %v370_v60, %v366_v46  ;;  %v381_v14 = vmul.f32 %v380_v63, %v1000_v12  ;;  %v481_v29 = vmul.f32 %v769_v61, %v480_v13 }
  0x7a   : > { %v704_v42 = vclamps-f32 %v452_v1, 1.0  ;;  %v372_v11 = vmul.f32 %v371_v5, %v347_v21  ;;  %v394_v21 = vmul.f32 %v393_v32, %v1000_v12  ;;  %vm488_vm15 = vcmp.eq.f32.partialorder %v487_v43, 8.507059e+37 }
  0x7b   : > { %v706_v9 = vclamps-f32 %v532_v3, 1.0  ;;  %v482_v25 = vadd.f32 %v769_v61, %v481_v29  ;;  %v382_v38 = vadd.f32 0.05243302, %v381_v14 }
  0x7c   : > { %v537_v0 = vadd.f32 1.0, %v704_v42  ;;  %v702_v17 = vclamps-f32 %v372_v11, 1.0  ;;  %v395_v26 = vadd.f32 0.4994258, %v394_v21 }
  0x7d   : > { %v539_v16 = vadd.f32 1.0, %v706_v9  ;;  %v486_v35 = vsel %vm485_vm14, %v769_v61, %v482_v25  ;;  %v383_v44 = vmul.f32 %v382_v38, %v1000_v12 }
  0x7e   : > { %v542_v19 = vmul.f32 %v537_v0, %v996_v6  ;;  %v535_v24 = vadd.f32 1.0, %v702_v17  ;;  %v491_v34 = vsel %vm488_vm15, %v490_v37, %v486_v35 }
  0x7f   : > { %v544_v22 = vmul.f32 %v539_v16, %v993_v45  ;;  %v396_v45 = vmul.f32 %v395_v26, %v1000_v12  ;;  %v492_v40 = vmul.f32 %v491_v34, %v467_v20  ;;  %v384_v51 = vadd.f32 0.18741608, %v383_v44 }
  0x80   : > { %v540_v28 = vmul.f32 %v535_v24, %v325_v33 }
  0x81   : > { %v579_v27 = vmul.f32 %v573_v18, %v544_v22  ;;  %v397_v23 = vadd.f32 1.0, %v396_v45  ;;  %v705_v41 = vclamps-f32 %v492_v40, 1.0  ;;  %v385_v54 = vmul.f32 %v384_v51, %v1000_v12 }
  0x82   : > { %v563_v36 = vpop.permute.xlu1 %562  ;;  %v553_v6 = vpop.permute.xlu0 %552  ;;  %v326_v12 = vmul.f32 0.5, %v959_v10 }
  0x83   : > { %v577_v30 = vmul.f32 %v563_v36, %v542_v19  ;;  %584 = vst [vmem:[%s1047_s9 + $0x20] sm:$0xf] %v579_v27  ;;  %v575_v39 = vmul.f32 %v553_v6, %v540_v28  ;;  %770 = vrcp.f32 %v397_v23  ;;  %v538_v48 = vadd.f32 1.0, %v705_v41 }
  0x84   : > { %v409_v58 = vand.u32 2147483648, %v397_v23  ;;  %v386_v59 = vadd.f32 1.1283791, %v385_v54  ;;  %v407_v61 = vand.u32 2147483647, %v397_v23  ;;  %vm403_vm1 = vweird.f32 %v397_v23 }
  0x85   : > { %582 = vst [vmem:[%s1047_s9 + $0x10] sm:$0xff] %v577_v30  ;;  %v543_v50 = vmul.f32 %v538_v48, %v328_v47 }
  0x86   : > { %580 = vst [vmem:[%s1047_s9] sm:$0xff] %v575_v39  ;;  %v410_v31 = vor.u32 1.1754944e-38, %v409_v58  ;;  %v387_v1 = vmul.f32 %v386_v59, %v979_v56  ;;  %vm408_vm3 = vcmp.eq.f32.partialorder %v407_v61, 8.507059e+37 }
  0x89   : > { %v771_v53 = vpop.eup %770 }
  0x8a   : > { %v568_v49 = vpop.permute.xlu1 %567  ;;  %v399_v55 = vmul.f32 %v771_v53, %v397_v23  ;;  %vm404_vm0 = vweird.f32 %v771_v53  ;;  %v558_v42 = vpop.permute.xlu0 %557 }
  0x8b   : > { %v578_v52 = vmul.f32 %v568_v49, %v543_v50  ;;  %vm405_vm2 = vmor %vm403_vm1, %vm404_vm0 }
  0x8c   : > { %v400_v57 = vsub.f32 1.0, %v399_v55 }
  0x8d   : > { %583 = vst [vmem:[%s1047_s9 + $0x18] sm:$0xff] %v578_v52 }
  0x8e   : > { %v401_v60 = vmul.f32 %v771_v53, %v400_v57 }
  0x90   : > { %v402_v62 = vadd.f32 %v771_v53, %v401_v60 }
  0x92   : > { %v406_v63 = vsel %vm405_vm2, %v771_v53, %v402_v62 }
  0x93   : > { %v411_v2 = vsel %vm408_vm3, %v410_v31, %v406_v63 }
  0x94   : > { %v412_v3 = vmul.f32 %v411_v2, %v387_v1 }
  0x96   : > { %v703_v46 = vclamps-f32 %v412_v3, 1.0 }
  0x98   : > { %v536_v4 = vadd.f32 1.0, %v703_v46 }
  0x9a   : > { %v541_v5 = vmul.f32 %v536_v4, %v326_v12 }
  0x9c   : > { %v576_v7 = vmul.f32 %v558_v42, %v541_v5 }
  0x9e   : > { %581 = vst [vmem:[%s1047_s9 + $0x8] sm:$0xff] %v576_v7 }
  0x9f PF: > { %s15_s22 = sadd.s32 1, %s810_s22   ;;  %s1087_s18 = smov %s802_s20 }
  0xa0   : > { %p12_p7 = scmp.ge.s32.totalorder %s15_s22, 10   ;;  %s1088_s19 = smov %s806_s21 }
  0xa1   : > { %s1089_s20 = smov %s1092_s23  ;;  %s1090_s21 = smov %s1096_s24 }
  0xa2   :  { %14 = sbr.rel (!%p12_p7) target bundleno = 3 (0x3), region = 74 }

// kernel: _lambda_.22
= control target key start
LH: loop header
LB: loop body
LE: loop exit
PB: predicated region body
PF: predicated region fallthrough
CT: control target
= control target key end

     0   :  { %s405_s6 = smov 0   ;;  %s407_s7 = smov 0   ;;  %s466_s0 = inlined_call_operand.vmem [shape: f32[2,4,36,128], index: 0, kind: input, shape index: {}]   ;;  %s467_s1 = inlined_call_operand.vmem [shape: f32[2,2,8,128], index: 1, kind: output, shape index: {}]  }
   0x1   :  { %s409_s8 = smov 0   ;;  %s411_s9 = smov 0  }
   0x2   :  { %s413_s10 = smov 0  }
   0x3 LB: > { %s20_s11 = sadd.s32 1, %s384_s8  ;;  %s23_s12 = sadd.s32 1, %s388_s9  ;;  %s392_s10 = sphi %s413_s10, %s11_s10   ;;  %s388_s9 = sphi %s411_s9, %s471_s9   ;;  %s384_s8 = sphi %s409_s8, %s470_s8   ;;  %s380_s7 = sphi %s407_s7, %s469_s7   ;;  %s376_s6 = sphi %s405_s6, %s468_s6  }
   0x4   : > { %p21_p0 = scmp.ge.s32.totalorder %s20_s11, 4  ;;  %p299_p1 = scmp.ge.s32.totalorder %s392_s10, 1 }
   0x5   : > { %p105_p2 = scmp.lt.s32.totalorder %s392_s10, 9 }
   0x6   : > { %s473_s11 = smov (%p21_p0, %s20_s11), 0  ;;  %s475_s12 = smov (!%p21_p0, %s23_s12), %s388_s9 }
   0x7   : > { %p106_p3 = pnand %p299_p1, %p105_p2  ;;  %p25_p4 = scmp.ge.s32.totalorder %s475_s12, 2 }
   0x8   : > { %p129_p5 = scmp.lt.s32.totalorder (!%p106_p3), %s380_s7, 1  ;;  %p131_p6 = scmp.lt.s32.totalorder (!%p106_p3), %s376_s6, 3 }
   0x9   : > { %s477_s12 = smov (%p25_p4, %s475_s12), 0  ;;  %109 = sbr.rel (%p106_p3) target bundleno = 208 (0xd0), region = 24 }
   0xa   : > { %p303_p7 = scmp.ne.s32.totalorder (!%p106_p3), %s376_s6, 0 }
   0xe   : > { %s479_s7 = smov (!%p129_p5, %s380_s7), 1 }
   0xf   : > { %s132_s13 = scalar_select %p131_p6, %s376_s6, 3 }
  0x10   : > { %s310_s14 = smul.u32 20, %s479_s7  ;;  %s308_s15 = sshll.u32 %s479_s7, 4 }
  0x11   : > { %s309_s16 = smul.u32 5, %s132_s13  ;;  %s442_s19 = scalar_lea.vmem %s467_s1, %s308_s15 }
  0x12   : > { %146 = sbr.rel (%p303_p7) target bundleno = 25 (0x19), region = 28 }
  0x13   : > { %s135_s20 = sadd.s32 %s310_s14, %s309_s16 }
  0x14   : > { %s300_s21 = sshll.u32 %s135_s20, 3 }
  0x15   : > { %s137_s24 = scalar_lea.vmem %s466_s0, %s300_s21 }
  0x17   : > { %v394_v0 = vmov 0.0  }
  0x18   : > { %147 = vst [vmem:[#allocation2] sm:$0x3] %v394_v0 }
  0x19 PF: > { %v148_v1 = vld [vmem:[%s137_s24] sm:$0xff]  ;;  %v149_v2 = vld [vmem:[%s137_s24 + $0x8] sm:$0xff]  ;;  %v150_v3 = vld [vmem:[%s137_s24 + $0x10] sm:$0xff]  ;;  %vm157_vm0 = vcmask 1043456   ;;  %p304_p8 = scmp.ne.s32.totalorder %s376_s6, 3 }
  0x1a   : > { %v151_v4 = vld [vmem:[%s137_s24 + $0x18] sm:$0xff]  ;;  %v152_v5 = vld [vmem:[%s137_s24 + $0x20] sm:$0xf]  ;;  %v154_v6 = vadd.f32 %v149_v2, %v148_v1  ;;  %v169_v7 = vmul.f32 %v148_v1, %v148_v1  ;;  %v170_v8 = vmul.f32 %v149_v2, %v149_v2  ;;  %v171_v9 = vmul.f32 %v150_v3, %v150_v3 }
  0x1b   : > { %v173_v10 = vmul.f32 %v152_v5, %v152_v5  ;;  %v172_v12 = vmul.f32 %v151_v4, %v151_v4  ;;  %v158_v14 = vsel %vm157_vm0, %v152_v5, 0.0 }
  0x1c   : > { %v155_v11 = vadd.f32 %v154_v6, %v150_v3  ;;  %v174_v13 = vadd.f32 %v170_v8, %v169_v7 }
  0x1d   : > { %v177_v17 = vsel %vm157_vm0, %v173_v10, 0.0 }
  0x1e   : > { %v156_v15 = vadd.f32 %v155_v11, %v151_v4  ;;  %v175_v16 = vadd.f32 %v174_v13, %v171_v9 }
  0x1f   : > { %v153_v30 = vld [vmem:[#allocation2] sm:$0x1]  ;;  %v168_v33 = vld [vmem:[#allocation2 + $0x1] sm:$0x1] }
  0x20   : > { %v159_v18 = vadd.f32 %v158_v14, %v156_v15  ;;  %v176_v19 = vadd.f32 %v175_v16, %v172_v12 }
  0x22   : > { %v160_v20 = vrot.slane %v159_v18, 4  ;;  %v178_v21 = vadd.f32 %v177_v17, %v176_v19 }
  0x24   : > { %v161_v22 = vadd.f32 %v160_v20, %v159_v18  ;;  %v179_v23 = vrot.slane %v178_v21, 4 }
  0x26   : > { %v162_v24 = vrot.slane %v161_v22, 2  ;;  %v180_v25 = vadd.f32 %v179_v23, %v178_v21 }
  0x28   : > { %v163_v26 = vadd.f32 %v162_v24, %v161_v22  ;;  %v181_v27 = vrot.slane %v180_v25, 2 }
  0x2a   : > { %v164_v28 = vrot.slane %v163_v26, 1  ;;  %v182_v29 = vadd.f32 %v181_v27, %v180_v25 }
  0x2c   : > { %v165_v31 = vadd.f32 %v164_v28, %v163_v26  ;;  %v183_v32 = vrot.slane %v182_v29, 1 }
  0x2e   : > { %v166_v34 = vadd.f32 %v165_v31, %v153_v30  ;;  %v184_v35 = vadd.f32 %v183_v32, %v182_v29  ;;  %190 = sbr.rel (%p304_p8) target bundleno = 208 (0xd0), region = 32 }
  0x30   : > { %167 = vst [vmem:[#allocation2] sm:$0x1] %v166_v34  ;;  %v185_v36 = vadd.f32 %v184_v35, %v168_v33 }
  0x32   : > { %186 = vst [vmem:[#allocation2 + $0x1] sm:$0x1] %v185_v36 }
  0x33   : > { %vm192_vm1 = vcmask 1040384  }
  0x37   : > { %v191_v37 = vld [vmem:[#allocation2] sm:$0x1] }
  0x38   : > { %v193_v38 = vsel %vm192_vm1, %v191_v37, 0.0 }
  0x39   : > { %194 = vadd.xlane.f32.xlu0 %v193_v38  ;;  %v197_v39 = vld [vmem:[#allocation2 + $0x1] sm:$0x1] }
  0x3a   : > { %v198_v40 = vsel %vm192_vm1, %v197_v39, 0.0 }
  0x41   : > { %199 = vadd.xlane.f32.xlu0 %v198_v40 }
  0xac   : > { %v195_v41 = vpop.xlane.xlu0 %194 }
  0xad   : > { %v196_v42 = vmul.f32 0.001953125, %v195_v41 }
  0xaf   : > { %v215_v43 = vperm.slane %v196_v42, 0  ;;  %v202_v45 = vmul.f32 %v196_v42, %v196_v42 }
  0xb1   : > { %216 = vst [vmem:[%s442_s19] sm:$0xff] %v215_v43 }
  0xb4   : > { %v200_v44 = vpop.xlane.xlu0 %199 }
  0xb5   : > { %v201_v46 = vmul.f32 0.001953125, %v200_v44 }
  0xb7   : > { %v203_v47 = vsub.f32 %v201_v46, %v202_v45 }
  0xb9   : > { %v204_v48 = vadd.f32 1e-05, %v203_v47 }
  0xbb   : > { %352 = vrsqrt.f32 %v204_v48  ;;  %vm211_vm3 = vweird.f32 %v204_v48 }
  0xc1   : > { %v353_v49 = vpop.eup %352 }
  0xc2   : > { %v206_v50 = vmul.f32 %v353_v49, %v204_v48  ;;  %vm212_vm2 = vweird.f32 %v353_v49 }
  0xc3   : > { %vm213_vm4 = vmor %vm211_vm3, %vm212_vm2 }
  0xc4   : > { %v207_v51 = vmul.f32 %v353_v49, %v206_v50 }
  0xc6   : > { %v208_v52 = vmul.f32 0.5, %v207_v51 }
  0xc8   : > { %v209_v53 = vsub.f32 1.5, %v208_v52 }
  0xca   : > { %v210_v54 = vmul.f32 %v353_v49, %v209_v53 }
  0xcc   : > { %v214_v55 = vsel %vm213_vm4, %v353_v49, %v210_v54 }
  0xcd   : > { %v217_v56 = vperm.slane %v214_v55, 0 }
  0xcf   : > { %305 = vst [vmem:[%s442_s19 + $0x8] sm:$0xff] %v217_v56 }
  0xd0 PF: > { %s11_s10 = sadd.s32 1, %s392_s10   ;;  %s468_s6 = smov %s384_s8 }
  0xd1   : > { %p8_p9 = scmp.ge.s32.totalorder %s11_s10, 10   ;;  %s469_s7 = smov %s388_s9 }
  0xd2   : > { %s470_s8 = smov %s473_s11  ;;  %s471_s9 = smov %s477_s12 }
  0xd3   :  { %10 = sbr.rel (!%p8_p9) target bundleno = 3 (0x3), region = 63 }

// kernel: _lambda_.25
= control target key start
LH: loop header
LB: loop body
LE: loop exit
PB: predicated region body
PF: predicated region fallthrough
CT: control target
= control target key end

     0   :  { %vm57_vm4 = vcmask 261120   ;;  %s131_s1 = inlined_call_operand.vmem [shape: bf16[32,128], index: 1, kind: input, shape index: {}]   ;;  %s132_s0 = inlined_call_operand.vmem [shape: f32[2,32], index: 0, kind: input, shape index: {}]   ;;  %s133_s2 = inlined_call_operand.vmem [shape: f32[1,128], index: 2, kind: input, shape index: {}]   ;;  %s134_s3 = inlined_call_operand.vmem [shape: f32[2,128], index: 3, kind: output, shape index: {}]  }
   0x1   :  { %v90_v0 = vld [vmem:[%s131_s1 + $0x8] sm:$0xff]  ;;  %v15_v1 = vld [vmem:[%s132_s0] sm:$0x3] }
   0x2   :  { %v79_v2 = vmul.f32 -1.442695, %v15_v1  ;;  %67 = vmatpush.bf16.msra.mxu0 %v90_v0  ;;  %v89_v3 = vld [vmem:[%s131_s1] sm:$0xff] }
   0x3   :  { %v91_v18 = vld [vmem:[%s133_s2] ss:$0 sm:$0xff] }
   0x4   :  { %92 = vpow2.f32 %v79_v2 }
   0x6   :  { %68 = vmatpush.bf16.msra.mxu0 %v89_v3 }
   0xa   :  { %v93_v4 = vpop.eup %92 }
   0xb   :  { %v19_v5 = vadd.f32 1.0, %v93_v4 }
   0xd   :  { %94 = vrcp.f32 %v19_v5  ;;  %v31_v8 = vand.u32 2147483648, %v19_v5  ;;  %vm25_vm0 = vweird.f32 %v19_v5  ;;  %v29_v10 = vand.u32 2147483647, %v19_v5 }
   0xf   :  { %v32_v12 = vor.u32 1.1754944e-38, %v31_v8  ;;  %vm30_vm3 = vcmp.eq.f32.partialorder %v29_v10, 8.507059e+37 }
  0x13   :  { %v95_v6 = vpop.eup %94 }
  0x14   :  { %v21_v7 = vmul.f32 %v95_v6, %v19_v5  ;;  %vm26_vm1 = vweird.f32 %v95_v6 }
  0x15   :  { %vm27_vm2 = vmor %vm25_vm0, %vm26_vm1 }
  0x16   :  { %v22_v9 = vsub.f32 1.0, %v21_v7 }
  0x18   :  { %v23_v11 = vmul.f32 %v95_v6, %v22_v9 }
  0x1a   :  { %v24_v13 = vadd.f32 %v95_v6, %v23_v11 }
  0x1c   :  { %v28_v14 = vsel %vm27_vm2, %v95_v6, %v24_v13 }
  0x1d   :  { %v33_v15 = vsel %vm30_vm3, %v32_v12, %v28_v14 }
  0x1e   :  { %v35_v16 = vmul.f32 %v33_v15, %v15_v1 }
  0x20   :  { %v36_v17 = vpack.c.bf16 %v35_v16, %v35_v16 }
  0x22   :  { %88 = vmatmul.msk.bf16.vlgmr.msra.gmra.mxu0 %vm57_vm4, %v36_v17 }
  0x9f   :  { %v70_v19 = vpop.f32.mrf.mxu0 }
  0xa0   :  { %v71_v20 = vadd.f32 %v91_v18, %v70_v19 }
  0xa2   :  { %74 = vst [vmem:[%s134_s3] sm:$0x3] %v71_v20 }
  0xa7   :  { %v72_v21 = vpop.f32.mrf.mxu0 }

// kernel: _lambda_.27
= control target key start
LH: loop header
LB: loop body
LE: loop exit
PB: predicated region body
PF: predicated region fallthrough
CT: control target
= control target key end

     0   :  { %s601_s18 = smov 0   ;;  %s603_s19 = smov 0   ;;  %s681_s0 = inlined_call_operand.vmem [shape: f32[2,4,36,128], index: 0, kind: input, shape index: {}]   ;;  %s682_s1 = inlined_call_operand.vmem [shape: f32[2,2,8,128], index: 1, kind: input, shape index: {}]   ;;  %s683_s2 = inlined_call_operand.vmem [shape: f32[1,128], index: 2, kind: input, shape index: {}]   ;;  %s684_s3 = inlined_call_operand.vmem [shape: f32[1,128], index: 3, kind: input, shape index: {}]   ;;  %s685_s4 = inlined_call_operand.vmem [shape: f32[2,1,128], index: 4, kind: input, shape index: {}]   ;;  %s686_s5 = inlined_call_operand.vmem [shape: f32[2,4,36,128], index: 5, kind: output, shape index: {}]  }
   0x1   :  { %s605_s20 = smov 0   ;;  %s607_s21 = smov 0  }
   0x2   :  { %s609_s22 = smov 0  }
   0x3 LB: > { %s24_s23 = sadd.s32 1, %s561_s20  ;;  %s27_s24 = sadd.s32 1, %s565_s21  ;;  %s569_s22 = sphi %s609_s22, %s15_s22   ;;  %s565_s21 = sphi %s607_s21, %s690_s21   ;;  %s561_s20 = sphi %s605_s20, %s689_s20   ;;  %s557_s19 = sphi %s603_s19, %s688_s19   ;;  %s553_s18 = sphi %s601_s18, %s687_s18  }
   0x4   : > { %p25_p0 = scmp.ge.s32.totalorder %s24_s23, 4  ;;  %p473_p1 = scmp.ge.s32.totalorder %s569_s22, 1 }
   0x5   : > { %p225_p2 = scmp.lt.s32.totalorder %s569_s22, 9 }
   0x6   : > { %s692_s23 = smov (%p25_p0, %s24_s23), 0  ;;  %s694_s24 = smov (!%p25_p0, %s27_s24), %s565_s21 }
   0x7   : > { %p226_p3 = pnand %p473_p1, %p225_p2  ;;  %p29_p4 = scmp.ge.s32.totalorder %s694_s24, 2 }
   0x8   : > { %p269_p5 = scmp.lt.s32.totalorder (!%p226_p3), %s557_s19, 1  ;;  %p271_p6 = scmp.lt.s32.totalorder (!%p226_p3), %s553_s18, 3 }
   0x9   : > { %s696_s24 = smov (%p29_p4, %s694_s24), 0  ;;  %229 = sbr.rel (%p226_p3) target bundleno = 84 (0x54), region = 40 }
   0xe   : > { %s698_s19 = smov (!%p269_p5, %s557_s19), 1  ;;  %s700_s18 = smov (!%p271_p6, %s553_s18), 3  ;;  %v529_v12 = vld [vmem:[%s683_s2] ss:$0 sm:$0xff] }
   0xf   : > { %s481_s25 = sshll.u32 %s698_s19, 4  ;;  %s285_s6 = scalar_lea.vmem %s685_s4, %s698_s19  ;;  %v530_v19 = vld [vmem:[%s684_s3] ss:$0 sm:$0xff] }
  0x10   : > { %s282_s28 = scalar_lea.vmem %s682_s1, %s481_s25  ;;  %s483_s7 = smul.u32 20, %s698_s19  ;;  %v528_v21 = vld [vmem:[%s285_s6] ss:$0 sm:$0xff] }
  0x11   : > { %v295_v0 = vld [vmem:[%s282_s28] sm:$0x1]  ;;  %v478_v1 = vld [vmem:[%s282_s28 + $0x8] sm:$0x1]  ;;  %s482_s8 = smul.u32 5, %s700_s18 }
  0x12   : > { %484 = vpush %v295_v0 }
  0x13   : > { %486 = vpush %v478_v1  ;;  %s642_s9 = sadd.s32 %s483_s7, %s482_s8 }
  0x14   : > { %s474_s10 = sshll.u32 %s642_s9, 3 }
  0x15   : > { %s277_s13 = scalar_lea.vmem %s681_s0, %s474_s10  ;;  %s294_s30 = scalar_lea.vmem %s686_s5, %s474_s10 }
  0x16   : > { %v298_v2 = vld [vmem:[%s277_s13] sm:$0xff]  ;;  %v299_v3 = vld [vmem:[%s277_s13 + $0x8] sm:$0xff]  ;;  %v300_v4 = vld [vmem:[%s277_s13 + $0x10] sm:$0xff] }
  0x17   : > { %v301_v5 = vld [vmem:[%s277_s13 + $0x18] sm:$0xff]  ;;  %v302_v6 = vld [vmem:[%s277_s13 + $0x20] sm:$0xf] }
  0x43   : > { %s485_s14 = spop %484 }
  0x44   : > { %v305_v7 = vstv %s485_s14  ;;  %s487_s15 = spop %486 }
  0x45   : > { %v307_v8 = vsub.f32 %v298_v2, %v305_v7  ;;  %v308_v9 = vsub.f32 %v299_v3, %v305_v7  ;;  %v309_v10 = vsub.f32 %v300_v4, %v305_v7  ;;  %v310_v11 = vsub.f32 %v301_v5, %v305_v7 }
  0x46   : > { %v311_v13 = vsub.f32 %v302_v6, %v305_v7  ;;  %v314_v14 = vstv %s487_s15 }
  0x47   : > { %v316_v15 = vmul.f32 %v314_v14, %v307_v8  ;;  %v317_v16 = vmul.f32 %v314_v14, %v308_v9  ;;  %v318_v17 = vmul.f32 %v314_v14, %v309_v10  ;;  %v319_v18 = vmul.f32 %v314_v14, %v310_v11 }
  0x48   : > { %v320_v20 = vmul.f32 %v314_v14, %v311_v13 }
  0x49   : > { %v325_v22 = vmul.f32 %v529_v12, %v316_v15  ;;  %v326_v23 = vmul.f32 %v529_v12, %v317_v16  ;;  %v327_v24 = vmul.f32 %v529_v12, %v318_v17  ;;  %v328_v25 = vmul.f32 %v529_v12, %v319_v18 }
  0x4a   : > { %v329_v26 = vmul.f32 %v529_v12, %v320_v20 }
  0x4b   : > { %v334_v27 = vadd.f32 %v530_v19, %v325_v22  ;;  %v335_v28 = vadd.f32 %v530_v19, %v326_v23  ;;  %v336_v29 = vadd.f32 %v530_v19, %v327_v24  ;;  %v337_v30 = vadd.f32 %v530_v19, %v328_v25 }
  0x4c   : > { %v338_v31 = vadd.f32 %v530_v19, %v329_v26 }
  0x4d   : > { %v343_v32 = vadd.f32 %v528_v21, %v334_v27  ;;  %v344_v33 = vadd.f32 %v528_v21, %v335_v28  ;;  %v345_v34 = vadd.f32 %v528_v21, %v336_v29  ;;  %v346_v35 = vadd.f32 %v528_v21, %v337_v30 }
  0x4e   : > { %v347_v36 = vadd.f32 %v528_v21, %v338_v31 }
  0x4f   : > { %348 = vst [vmem:[%s294_s30] sm:$0xff] %v343_v32 }
  0x50   : > { %349 = vst [vmem:[%s294_s30 + $0x8] sm:$0xff] %v344_v33 }
  0x51   : > { %350 = vst [vmem:[%s294_s30 + $0x10] sm:$0xff] %v345_v34 }
  0x52   : > { %351 = vst [vmem:[%s294_s30 + $0x18] sm:$0xff] %v346_v35 }
  0x53   : > { %352 = vst [vmem:[%s294_s30 + $0x20] sm:$0xf] %v347_v36 }
  0x54 PF: > { %s15_s22 = sadd.s32 1, %s569_s22   ;;  %s687_s18 = smov %s561_s20 }
  0x55   : > { %p12_p7 = scmp.ge.s32.totalorder %s15_s22, 10   ;;  %s688_s19 = smov %s565_s21 }
  0x56   : > { %s689_s20 = smov %s692_s23  ;;  %s690_s21 = smov %s696_s24 }
  0x57   :  { %14 = sbr.rel (!%p12_p7) target bundleno = 3 (0x3), region = 77 }

// kernel: _lambda_.15
= control target key start
LH: loop header
LB: loop body
LE: loop exit
PB: predicated region body
PF: predicated region fallthrough
CT: control target
= control target key end

     0   :  { %s2184_s12 = smov 0   ;;  %s2186_s13 = smov 0   ;;  %s2489_s0 = inlined_call_operand.vmem [shape: bf16[2,6,50,128], index: 0, kind: input, shape index: {}]   ;;  %s2490_s1 = inlined_call_operand.vmem [shape: bf16[3,9,128,128], index: 1, kind: input, shape index: {}]   ;;  %s2491_s2 = inlined_call_operand.vmem [shape: f32[36,1], index: 2, kind: input, shape index: {}]   ;;  %s2492_s3 = inlined_call_operand.vmem [shape: f32[2,4,36,128], index: 3, kind: output, shape index: {}]  }
   0x1   :  { %s2188_s14 = smov 0   ;;  %s2190_s15 = smov 0  }
   0x2   :  { %s2192_s16 = smov 0   ;;  %s2194_s17 = smov 0  }
   0x3   :  { %s2196_s18 = smov 0  }
   0x4 LB: > { %s25_s19 = sadd.s32 1, %s2148_s15  ;;  %s28_s20 = sadd.s32 1, %s2152_s16  ;;  %s2160_s18 = sphi %s2196_s18, %s13_s18   ;;  %s2156_s17 = sphi %s2194_s17, %s2498_s17   ;;  %s2152_s16 = sphi %s2192_s16, %s2497_s16   ;;  %s2148_s15 = sphi %s2190_s15, %s2496_s15   ;;  %s2144_s14 = sphi %s2188_s14, %s2495_s14   ;;  %s2140_s13 = sphi %s2186_s13, %s2494_s13   ;;  %s2136_s12 = sphi %s2184_s12, %s2493_s12  }
   0x5   : > { %p26_p0 = scmp.ge.s32.totalorder %s25_s19, 3  ;;  %p1493_p1 = scmp.ge.s32.totalorder %s2160_s18, 1 }
   0x6   : > { %p168_p2 = scmp.lt.s32.totalorder %s2160_s18, 25  ;;  %s32_s21 = sadd.s32 1, %s2156_s17 }
   0x7   : > { %s2500_s19 = smov (%p26_p0, %s25_s19), 0  ;;  %s2502_s20 = smov (!%p26_p0, %s28_s20), %s2152_s16 }
   0x8   : > { %p169_p3 = pnand %p1493_p1, %p168_p2  ;;  %p30_p4 = scmp.ge.s32.totalorder %s2502_s20, 4 }
   0x9   : > { %s201_s22 = sadd.s32 (!%p169_p3), %s2136_s12, %s2140_s13  ;;  %p202_p6 = scmp.lt.s32.totalorder (!%p169_p3), %s2144_s14, 1 }
   0xa   : > { %s2504_s20 = smov (%p30_p4, %s2502_s20), 0  ;;  %s2506_s21 = smov (!%p30_p4, %s32_s21), %s2156_s17 }
   0xb   : > { %p34_p5 = scmp.ge.s32.totalorder %s2506_s21, 2  ;;  %172 = sbr.rel (%p169_p3) target bundleno = 445 (0x1bd), region = 32 }
   0xc   : > { %p204_p7 = scmp.lt.s32.totalorder (!%p169_p3), %s201_s22, 5  ;;  %p214_p8 = scmp.lt.s32.totalorder (!%p169_p3), %s2140_s13, 3 }
   0xd   : > { %s2508_s21 = smov (%p34_p5, %s2506_s21), 0  ;;  %p1496_p9 = scmp.ne.s32.totalorder (!%p169_p3), %s2136_s12, 0 }
  0x10   : > { %s2510_s14 = smov (!%p202_p6, %s2144_s14), 1  ;;  %s2512_s22 = smov (!%p204_p7, %s201_s22), 5 }
  0x11   : > { %s2042_s23 = smul.u32 42, %s2510_s14  ;;  %s2514_s13 = smov (!%p214_p8, %s2140_s13), 3 }
  0x12   : > { %s2041_s24 = smul.u32 7, %s2512_s22 }
  0x13   : > { %s2044_s26 = smul.u32 20, %s2510_s14 }
  0x14   : > { %s208_s25 = sadd.s32 %s2042_s23, %s2041_s24  ;;  %s2043_s28 = smul.u32 5, %s2514_s13 }
  0x15   : > { %s1494_s27 = sshll.u32 %s208_s25, 2  ;;  %224 = sbr.rel (%p1496_p9) target bundleno = 32 (0x20), region = 36 }
  0x16   : > { %s2232_s4 = scalar_lea.vmem %s2489_s0, %s1494_s27  ;;  %s218_s5 = sadd.s32 %s2044_s26, %s2043_s28 }
  0x17   : > { %s1495_s6 = sshll.u32 %s218_s5, 3 }
  0x18   : > { %s2237_s9 = scalar_lea.vmem %s2492_s3, %s1495_s6 }
  0x1a   : > { %v2162_v0 = vmov 0.0  }
  0x1b   : > { %225 = vst [vmem:[#allocation2 + $0x8] sm:$0xff] %v2162_v0 }
  0x1c   : > { %226 = vst [vmem:[#allocation2] sm:$0xff] %v2162_v0 }
  0x1d   : > { %227 = vst [vmem:[#allocation2 + $0x20] sm:$0xff] %v2162_v0 }
  0x1e   : > { %228 = vst [vmem:[#allocation2 + $0x10] sm:$0xff] %v2162_v0 }
  0x1f   : > { %229 = vst [vmem:[#allocation2 + $0x18] sm:$0xf] %v2162_v0 }
  0x20 PF: > { %s1938_s10 = smul.u32 576, %s2136_s12  ;;  %v254_v12 = vld [vmem:[%s2232_s4 + $0x10] sm:$0x7]  ;;  %v2262_v17 = vld [vmem:[%s2232_s4] sm:$0xff]   ;;  %v2271_v23 = vld [vmem:[%s2232_s4 + $0x8] sm:$0xff]  ;;  %vm485_vm0 = vcmask 1046528  }
  0x21   : > { %v283_v14 = vunpack.c.l.b16 %v254_v12  ;;  %v2021_v18 = vld [vmem:[%s2232_s4] sm:$0xf0]  ;;  %v2022_v24 = vld [vmem:[%s2232_s4] sm:$0xe]  ;;  %v291_v25 = vshll.u32 %v2262_v17, 16  ;;  %v289_v35 = vshrl.u32 %v2262_v17, 16 }
  0x22   : > { %s2244_s14 = scalar_lea.vmem %s2490_s1, %s1938_s10  ;;  %v570_v26 = vld [vmem:[%s2232_s4] sm:$0x8]  ;;  %v2277_v27 = vld [vmem:[%s2232_s4 + $0x4] sm:$0xff]   ;;  %v2023_v32 = vor.u32 %v2022_v24, %v2021_v18  ;;  %v296_v37 = vshll.u32 %v2271_v23, 16  ;;  %v487_v44 = vrot.slane %v2271_v23, 1  ;;  %vm610_vm2 = vcmask 1044480  }
  0x23   : > { %v1954_v1 = vld [vmem:[%s2244_s14 + $0x78] sm:$0xff]  ;;  %v1953_v3 = vld [vmem:[%s2244_s14 + $0x70] sm:$0xff]  ;;  %v1952_v7 = vld [vmem:[%s2244_s14 + $0x68] sm:$0xff]  ;;  %v2266_v20 = vpack.c.b16 %v283_v14, %v283_v14  ;;  %v601_v33 = vunpack.c.l.b16 %v570_v26  ;;  %v602_v34 = vunpack.c.l.b16 %v2277_v27  ;;  %v293_v36 = vrot.slane %v291_v25, 1  ;;  %p1934_p10 = scmp.ne.s32.totalorder %s2136_s12, 2 }
  0x24   : > { %v1962_v2 = vld [vmem:[%s2244_s14 + $0xb8] sm:$0xff]  ;;  %2025 = vmatpush.bf16.msra.mxu1 %v1954_v1  ;;  %v1961_v4 = vld [vmem:[%s2244_s14 + $0xb0] sm:$0xff]  ;;  %362 = vmatpush.bf16.msra.mxu0 %v1954_v1  ;;  %v1960_v8 = vld [vmem:[%s2244_s14 + $0xa8] sm:$0xff]  ;;  %v486_v43 = vrot.slane %v2023_v32, 1  ;;  %v298_v48 = vrot.slane %v296_v37, 1  ;;  %vm952_vm4 = vcmask 1045504  }
  0x25   : > { %542 = vmatpush.bf16.msra.mxu2 %v1962_v2  ;;  %v1970_v5 = vld [vmem:[%s2244_s14 + $0xf8] sm:$0xff]  ;;  %v1969_v6 = vld [vmem:[%s2244_s14 + $0xf0] sm:$0xff]  ;;  %v1968_v9 = vld [vmem:[%s2244_s14 + $0xe8] sm:$0xff]  ;;  %v304_v28 = vshll.u32 %v2266_v20, 16  ;;  %v308_v39 = vshrl.u32 %v2266_v20, 16  ;;  %v2295_v45 = vpack.c.b16 %v602_v34, %v601_v33  ;;  %v294_v47 = vor.u32 %v293_v36, %v289_v35 }
  0x26   : > { %667 = vmatpush.bf16.msra.mxu3 %v1970_v5  ;;  %v1951_v10 = vld [vmem:[%s2244_s14 + $0x60] sm:$0xff]  ;;  %v1950_v15 = vld [vmem:[%s2244_s14 + $0x58] sm:$0xff]  ;;  %v1949_v21 = vld [vmem:[%s2244_s14 + $0x50] sm:$0xff]  ;;  %vm287_vm1 = vsmask.f32 7424  ;;  %v488_v53 = vsel %vm485_vm0, %v486_v43, %v487_v44  ;;  %v489_v12 = vrot.slane %v2266_v20, 1 }
  0x27   : > { %v1959_v11 = vld [vmem:[%s2244_s14 + $0xa0] sm:$0xff]  ;;  %v1958_v16 = vld [vmem:[%s2244_s14 + $0x98] sm:$0xff]  ;;  %v1957_v22 = vld [vmem:[%s2244_s14 + $0x90] sm:$0xff]  ;;  %v2286_v38 = vrot.slane %v304_v28, 1  ;;  %v611_v55 = vrot.slane %v2295_v45, 3  ;;  %v299_v58 = vsel %vm287_vm1, %v294_v47, %v298_v48  ;;  %v720_v32 = vshrl.u32 %v2295_v45, 16 }
  0x28   : > { %2026 = vmatpush.bf16.msra.mxu1 %v1953_v3  ;;  %363 = vmatpush.bf16.msra.mxu0 %v1953_v3  ;;  %v1967_v13 = vld [vmem:[%s2244_s14 + $0xe0] sm:$0xff]  ;;  %v1966_v19 = vld [vmem:[%s2244_s14 + $0xd8] sm:$0xff]  ;;  %v1965_v29 = vld [vmem:[%s2244_s14 + $0xd0] sm:$0xff]  ;;  %v723_v33 = vshll.u32 %v2295_v45, 16  ;;  %vm718_vm3 = vsmask.f32 4352 }
  0x29   : > { %543 = vmatpush.bf16.msra.mxu2 %v1961_v4  ;;  %v1948_v30 = vld [vmem:[%s2244_s14 + $0x48] sm:$0xff]  ;;  %v1947_v41 = vld [vmem:[%s2244_s14 + $0x40] sm:$0xff]  ;;  %v1946_v46 = vld [vmem:[%s2244_s14 + $0x38] sm:$0xff]  ;;  %v310_v52 = vor.u32 %v308_v39, %v2286_v38  ;;  %vm1077_vm5 = vsmask.f32 5376 }
  0x2a   : > { %668 = vmatpush.bf16.msra.mxu3 %v1969_v6  ;;  %v1956_v31 = vld [vmem:[%s2244_s14 + $0x88] sm:$0xff]  ;;  %v1955_v42 = vld [vmem:[%s2244_s14 + $0x80] sm:$0xff]  ;;  %v1978_v50 = vld [vmem:[%s2244_s14 + $0x138] sm:$0xff] }
  0x2b   : > { %v1964_v40 = vld [vmem:[%s2244_s14 + $0xc8] sm:$0xff]  ;;  %v1994_v51 = vld [vmem:[%s2244_s14 + $0x1b8] sm:$0xff]  ;;  %v1963_v54 = vld [vmem:[%s2244_s14 + $0xc0] sm:$0xff] }
  0x2c   : > { %2027 = vmatpush.bf16.msra.mxu1 %v1952_v7  ;;  %364 = vmatpush.bf16.msra.mxu0 %v1952_v7  ;;  %v2299_v49 = vld [vmem:[%s2232_s4 + $0x8] sm:$0xff]   ;;  %v1945_v57 = vld [vmem:[%s2244_s14 + $0x30] sm:$0xff]  ;;  %v2004_v59 = vld [vmem:[%s2244_s14 + $0x1f8] sm:$0xff] }
  0x2d   : > { %544 = vmatpush.bf16.msra.mxu2 %v1960_v8  ;;  %v612_v56 = vrot.slane %v2299_v49, 3  ;;  %v1977_v60 = vld [vmem:[%s2244_s14 + $0x130] sm:$0xff]  ;;  %v1944_v62 = vld [vmem:[%s2244_s14 + $0x28] sm:$0xff]  ;;  %v1943_v7 = vld [vmem:[%s2244_s14 + $0x20] sm:$0xff]  ;;  %v300_v8 = vshrl.u32 %v2271_v23, 16  ;;  %v728_v35 = vshrl.u32 %v2299_v49, 16 }
  0x2e   : > { %669 = vmatpush.bf16.msra.mxu3 %v1968_v9  ;;  %v1993_v61 = vld [vmem:[%s2244_s14 + $0x1b0] sm:$0xff]  ;;  %v1976_v3 = vld [vmem:[%s2244_s14 + $0x128] sm:$0xff]  ;;  %v1942_v14 = vld [vmem:[%s2244_s14 + $0x18] sm:$0xff]  ;;  %v731_v36 = vshll.u32 %v2299_v49, 16 }
  0x2f   : > { %v613_v63 = vsel %vm610_vm2, %v611_v55, %v612_v56  ;;  %v2003_v0 = vld [vmem:[%s2244_s14 + $0x1f0] sm:$0xff]  ;;  %v1992_v4 = vld [vmem:[%s2244_s14 + $0x1a8] sm:$0xff]  ;;  %v1974_v18 = vld [vmem:[%s2244_s14 + $0x118] sm:$0xff]  ;;  %v730_v43 = vrot.slane %v728_v35, 3 }
  0x30   : > { %2028 = vmatpush.bf16.msra.mxu1 %v1951_v10  ;;  %365 = vmatpush.bf16.msra.mxu0 %v1951_v10  ;;  %v2321_v1 = vld [vmem:[%s2232_s4 + $0x10] sm:$0xff]   ;;  %v2002_v9 = vld [vmem:[%s2244_s14 + $0x1e8] sm:$0xff]  ;;  %v1975_v10 = vld [vmem:[%s2244_s14 + $0x120] sm:$0xff] }
  0x31   : > { %545 = vmatpush.bf16.msra.mxu2 %v1959_v11  ;;  %v575_v2 = vld [vmem:[%s2232_s4 + $0x14] sm:$0x1]  ;;  %v2327_v5 = vunpack.c.l.b16 %v2321_v1  ;;  %v1991_v11 = vld [vmem:[%s2244_s14 + $0x1a0] sm:$0xff]  ;;  %v1988_v39 = vld [vmem:[%s2244_s14 + $0x188] sm:$0xff] }
  0x32   : > { %670 = vmatpush.bf16.msra.mxu3 %v1967_v13  ;;  %v606_v6 = vunpack.c.l.b16 %v575_v2  ;;  %v1941_v24 = vld [vmem:[%s2244_s14 + $0x10] sm:$0xff]  ;;  %v1998_v45 = vld [vmem:[%s2244_s14 + $0x1c8] sm:$0xff]  ;;  %v1971_v47 = vld [vmem:[%s2244_s14 + $0x100] sm:$0xff]  ;;  %v2020_v2 = vunpack.c.h.b16 %v2299_v49 }
  0x33   : > { %v1973_v26 = vld [vmem:[%s2244_s14 + $0x110] sm:$0xff]  ;;  %v1037_v55 = vld [vmem:[%s2232_s4 + $0x4] sm:$0xc] }
  0x34   : > { %2029 = vmatpush.bf16.msra.mxu1 %v1950_v15  ;;  %366 = vmatpush.bf16.msra.mxu0 %v1950_v15  ;;  %v2336_v13 = vpack.c.b16 %v606_v6, %v2327_v5  ;;  %v302_v15 = vor.u32 %v300_v8, %v298_v48  ;;  %v1989_v28 = vld [vmem:[%s2244_s14 + $0x190] sm:$0xff]  ;;  %v1983_v20 = vld [vmem:[%s2244_s14 + $0x160] sm:$0xff] }
  0x35   : > { %546 = vmatpush.bf16.msra.mxu2 %v1958_v16  ;;  %v2001_v16 = vld [vmem:[%s2244_s14 + $0x1e0] sm:$0xff]  ;;  %v1999_v37 = vld [vmem:[%s2244_s14 + $0x1d0] sm:$0xff] }
  0x36   : > { %671 = vmatpush.bf16.msra.mxu3 %v1966_v19  ;;  %v1990_v19 = vld [vmem:[%s2244_s14 + $0x198] sm:$0xff]  ;;  %v307_v25 = vsel %vm287_vm1, %v302_v15, %v2286_v38  ;;  %v1972_v38 = vld [vmem:[%s2244_s14 + $0x108] sm:$0xff]  ;;  %v695_v48 = vld [vmem:[%s2232_s4 + $0x14] sm:$0x3] }
  0x37   : > { %v2396_v6 = vld [vmem:[%s2232_s4 + $0xc] sm:$0xff] }
  0x38   : > { %2030 = vmatpush.bf16.msra.mxu1 %v1949_v21  ;;  %367 = vmatpush.bf16.msra.mxu0 %v1949_v21  ;;  %v490_v21 = vsel %vm485_vm0, %v487_v44, %v489_v12  ;;  %v733_v44 = vrot.slane %v731_v36, 4 }
  0x39   : > { %547 = vmatpush.bf16.msra.mxu2 %v1957_v22  ;;  %v614_v22 = vrot.slane %v2336_v13, 3 }
  0x3a   : > { %672 = vmatpush.bf16.msra.mxu3 %v1965_v29  ;;  %v2000_v29 = vld [vmem:[%s2244_s14 + $0x1d8] sm:$0xff] }
  0x3c   : > { %2031 = vmatpush.bf16.msra.mxu1 %v1948_v30  ;;  %368 = vmatpush.bf16.msra.mxu0 %v1948_v30  ;;  %v615_v30 = vsel %vm610_vm2, %v612_v56, %v614_v22  ;;  %v1985_v56 = vld [vmem:[%s2244_s14 + $0x170] sm:$0xff] }
  0x3d   : > { %548 = vmatpush.bf16.msra.mxu2 %v1956_v31  ;;  %v1940_v31 = vld [vmem:[%s2244_s14 + $0x8] sm:$0xff] }
  0x3e   : > { %673 = vmatpush.bf16.msra.mxu3 %v1964_v40  ;;  %v1939_v40 = vld [vmem:[%s2244_s14] sm:$0xff] }
  0x40   : > { %2032 = vmatpush.bf16.msra.mxu1 %v1947_v41  ;;  %369 = vmatpush.bf16.msra.mxu0 %v1947_v41  ;;  %v722_v41 = vrot.slane %v720_v32, 3  ;;  %v2007_v32 = vld [vmem:[%s2244_s14 + $0x210] sm:$0xff] }
  0x41   : > { %549 = vmatpush.bf16.msra.mxu2 %v1955_v42  ;;  %v725_v42 = vrot.slane %v723_v33, 4 }
  0x42   : > { %674 = vmatpush.bf16.msra.mxu3 %v1963_v54  ;;  %v2376_v54 = vunpack.c.l.b16 %v695_v48 }
  0x43   : > { %380 = vmatmul.bf16.vlgmr.msra.gmra.mxu1 %v310_v52  ;;  %370 = vmatmul.bf16.vlgmr.msra.gmra.mxu0 %v299_v58  ;;  %v726_v52 = vor.u32 %v725_v42, %v722_v41  ;;  %v925_v58 = vld [vmem:[%s2232_s4 + $0x4] sm:$0xc]  ;;  %v2006_v41 = vld [vmem:[%s2244_s14 + $0x208] sm:$0xff] }
  0x44   : > { %439 = vmatpush.bf16.msrb.mxu1 %v1946_v46  ;;  %796 = vmatpush.bf16.msrb.mxu0 %v1978_v50  ;;  %v1986_v46 = vld [vmem:[%s2244_s14 + $0x178] sm:$0xff] }
  0x45   : > { %1009 = vmatpush.bf16.msrb.mxu2 %v1994_v51  ;;  %675 = vmatmul.bf16.vlgmr.msra.gmra.mxu3 %v613_v63  ;;  %v2012_v50 = vld [vmem:[%s2244_s14 + $0x238] sm:$0xff]  ;;  %v1987_v51 = vld [vmem:[%s2244_s14 + $0x180] sm:$0xff]  ;;  %v717_v63 = vpack.c.b16 %v2376_v54, %v2327_v5 }
  0x46   : > { %550 = vmatmul.bf16.vlgmr.msra.gmra.mxu2 %v488_v53  ;;  %1155 = vmatpush.bf16.msrb.mxu3 %v2004_v59  ;;  %v2374_v53 = vor.u32 %v733_v44, %v730_v43  ;;  %v1997_v59 = vld [vmem:[%s2244_s14 + $0x1c0] sm:$0xff]  ;;  %v234_v44 = vld [vmem:[%s2232_s4 + $0x10] sm:$0x3] }
  0x47   : > { %v737_v8 = vshrl.u32 %v717_v63, 16 }
  0x48   : > { %440 = vmatpush.bf16.msrb.mxu1 %v1945_v57  ;;  %797 = vmatpush.bf16.msrb.mxu0 %v1977_v60  ;;  %v2011_v57 = vld [vmem:[%s2244_s14 + $0x230] sm:$0xff]  ;;  %v1068_v60 = vunpack.c.l.b16 %v1037_v55 }
  0x49   : > { %1010 = vmatpush.bf16.msrb.mxu2 %v1993_v61  ;;  %v1069_v61 = vunpack.c.h.b16 %v2277_v27  ;;  %v845_v27 = vpack.c.b16 %v2376_v54, %v2376_v54 }
  0x4a   : > { %1156 = vmatpush.bf16.msrb.mxu3 %v2003_v0  ;;  %v1984_v0 = vld [vmem:[%s2244_s14 + $0x168] sm:$0xff] }
  0x4c   : > { %441 = vmatpush.bf16.msrb.mxu1 %v1944_v62  ;;  %798 = vmatpush.bf16.msrb.mxu0 %v1976_v3  ;;  %v735_v62 = vsel %vm718_vm3, %v726_v52, %v2374_v53  ;;  %v948_v3 = vunpack.c.l.b16 %v925_v58  ;;  %v1183_v58 = vld [vmem:[%s2232_s4 + $0x4] sm:$0x8] }
  0x4d   : > { %1011 = vmatpush.bf16.msrb.mxu2 %v1992_v4  ;;  %v2010_v4 = vld [vmem:[%s2244_s14 + $0x228] sm:$0xff] }
  0x4e   : > { %1157 = vmatpush.bf16.msrb.mxu3 %v2002_v9  ;;  %v740_v9 = vshll.u32 %v717_v63, 16 }
  0x50   : > { %442 = vmatpush.bf16.msrb.mxu1 %v1943_v7  ;;  %799 = vmatpush.bf16.msrb.mxu0 %v1975_v10  ;;  %v1074_v7 = vpack.c.b16 %v1069_v61, %v1068_v60  ;;  %v2404_v10 = vpack.c.b16 %v2327_v5, %v2020_v2  ;;  %v742_v13 = vrot.slane %v740_v9, 4  ;;  %v1982_v5 = vld [vmem:[%s2244_s14 + $0x158] sm:$0xff]  ;;  %v1204_v60 = vunpack.c.l.b16 %v1183_v58 }
  0x51   : > { %1012 = vmatpush.bf16.msrb.mxu2 %v1991_v11  ;;  %v1207_v2 = vrot.slane %v2396_v6, 3 }
  0x52   : > { %1158 = vmatpush.bf16.msrb.mxu3 %v2001_v16  ;;  %v1082_v15 = vshll.u32 %v1074_v7, 16  ;;  %v1087_v16 = vshrl.u32 %v2396_v6, 16 }
  0x53   : > { %375 = vmatmul.bf16.gmra.mxu0 %v307_v25 }
  0x54   : > { %443 = vmatpush.bf16.msrb.mxu1 %v1942_v14  ;;  %800 = vmatpush.bf16.msrb.mxu0 %v1974_v18  ;;  %v1079_v14 = vshrl.u32 %v1074_v7, 16  ;;  %v1090_v18 = vshll.u32 %v2396_v6, 16 }
  0x55   : > { %1013 = vmatpush.bf16.msrb.mxu2 %v1990_v19  ;;  %680 = vmatmul.bf16.gmra.mxu3 %v615_v30  ;;  %v739_v19 = vrot.slane %v737_v8, 3 }
  0x56   : > { %555 = vmatmul.bf16.gmra.mxu2 %v490_v21  ;;  %1159 = vmatpush.bf16.msrb.mxu3 %v2000_v29  ;;  %v1081_v25 = vrot.slane %v1079_v14, 2  ;;  %v1092_v29 = vrot.slane %v1090_v18, 3 }
  0x57   : > { %v743_v30 = vor.u32 %v742_v13, %v739_v19 }
  0x58   : > { %444 = vmatpush.bf16.msrb.mxu1 %v1941_v24  ;;  %801 = vmatpush.bf16.msrb.mxu0 %v1973_v26  ;;  %v2008_v24 = vld [vmem:[%s2244_s14 + $0x218] sm:$0xff]  ;;  %v1084_v26 = vrot.slane %v1082_v15, 3 }
  0x59   : > { %1014 = vmatpush.bf16.msrb.mxu2 %v1989_v28  ;;  %v1089_v28 = vrot.slane %v1087_v16, 2 }
  0x5a   : > { %1160 = vmatpush.bf16.msrb.mxu3 %v1999_v37  ;;  %v1085_v35 = vor.u32 %v1084_v26, %v1081_v25  ;;  %v744_v37 = vsel %vm718_vm3, %v2374_v53, %v743_v30 }
  0x5b   : > { %v1093_v36 = vor.u32 %v1092_v29, %v1089_v28 }
  0x5c   : > { %445 = vmatpush.bf16.msrb.mxu1 %v1940_v31  ;;  %802 = vmatpush.bf16.msrb.mxu0 %v1972_v38  ;;  %v1981_v31 = vld [vmem:[%s2244_s14 + $0x150] sm:$0xff] }
  0x5d   : > { %1015 = vmatpush.bf16.msrb.mxu2 %v1988_v39  ;;  %v1851_v38 = vld [vmem:[%s2232_s4 + $0x14] sm:$0xf]  ;;  %v1996_v39 = vld [vmem:[%s2232_s4 + $0x14] sm:$0x10]  ;;  %v1094_v42 = vsel %vm1077_vm5, %v1085_v35, %v1093_v36 }
  0x5e   : > { %1161 = vmatpush.bf16.msrb.mxu3 %v1998_v45  ;;  %v1852_v43 = vor.u32 %v1996_v39, %v1851_v38  ;;  %v1979_v45 = vld [vmem:[%s2244_s14 + $0x140] sm:$0xff] }
  0x60   : > { %446 = vmatpush.bf16.msrb.mxu1 %v1939_v40  ;;  %803 = vmatpush.bf16.msrb.mxu0 %v1971_v47  ;;  %v1980_v40 = vld [vmem:[%s2244_s14 + $0x148] sm:$0xff]  ;;  %v386_v47 = vunpack.c.l.b16 %v234_v44 }
  0x61   : > { %1016 = vmatpush.bf16.msrb.mxu2 %v1987_v51  ;;  %v1099_v51 = vshll.u32 %v1852_v43, 16 }
  0x62   : > { %1162 = vmatpush.bf16.msrb.mxu3 %v1997_v59  ;;  %v387_v52 = vpack.c.b16 %v386_v47, %v386_v47 }
  0x63   : > { %447 = vmatmul.bf16.vlgmr.msrb.gmra.mxu1 %v2262_v17  ;;  %v2019_v17 = vunpack.c.l.b16 %v2299_v49  ;;  %804 = vmatmul.bf16.vlgmr.msrb.gmra.mxu0 %v735_v62  ;;  %v1101_v55 = vrot.slane %v1099_v51, 3  ;;  %v1205_v62 = vpack.c.b16 %v1069_v61, %v1204_v60 }
  0x64   : > { %897 = vmatpush.bf16.msra.mxu1 %v1986_v46  ;;  %1262 = vmatpush.bf16.msra.mxu0 %v2012_v50  ;;  %v2005_v46 = vld [vmem:[%s2244_s14 + $0x200] sm:$0xff] }
  0x65   : > { %2033 = vmatpush.bf16.msra.mxu2 %v2012_v50  ;;  %685 = vmatmul.bf16.gmra.mxu3 %v614_v22  ;;  %v950_v11 = vpack.c.b16 %v2019_v17, %v948_v3  ;;  %v954_v22 = vrot.slane %v2404_v10, 2  ;;  %v1096_v50 = vshrl.u32 %v1852_v43, 16  ;;  %v843_v63 = vpack.c.b16 %v2019_v17, %v602_v34 }
  0x66   : > { %560 = vmatmul.bf16.gmra.mxu2 %v489_v12  ;;  %v2009_v12 = vld [vmem:[%s2244_s14 + $0x220] sm:$0xff] }
  0x67   : > { %v953_v21 = vrot.slane %v950_v11, 2  ;;  %v1098_v53 = vrot.slane %v1096_v50, 2 }
  0x68   : > { %898 = vmatpush.bf16.msra.mxu1 %v1985_v56  ;;  %1263 = vmatpush.bf16.msra.mxu0 %v2011_v57 }
  0x69   : > { %2034 = vmatpush.bf16.msra.mxu2 %v2011_v57  ;;  %v955_v33 = vsel %vm952_vm4, %v953_v21, %v954_v22  ;;  %v1102_v57 = vor.u32 %v1101_v55, %v1098_v53 }
  0x6b   : > { %v1103_v59 = vsel %vm1077_vm5, %v1093_v36, %v1102_v57 }
  0x6c   : > { %899 = vmatpush.bf16.msra.mxu1 %v1984_v0  ;;  %1264 = vmatpush.bf16.msra.mxu0 %v2010_v4  ;;  %v1206_v0 = vrot.slane %v1205_v62, 3  ;;  %v1290_v62 = vld [vmem:[#allocation2 + $0x8] sm:$0xff] }
  0x6d   : > { %2035 = vmatpush.bf16.msra.mxu2 %v2010_v4  ;;  %v1209_v4 = vrot.slane %v1852_v43, 3 }
  0x6e   : > { %v1208_v3 = vsel %vm610_vm2, %v1206_v0, %v1207_v2 }
  0x6f   : > { %v1210_v7 = vsel %vm610_vm2, %v1207_v2, %v1209_v4 }
  0x70   : > { %900 = vmatpush.bf16.msra.mxu1 %v1983_v20  ;;  %1265 = vmatpush.bf16.msra.mxu0 %v2009_v12 }
  0x71   : > { %2036 = vmatpush.bf16.msra.mxu2 %v2009_v12 }
  0x73   : > { %452 = vmatmul.bf16.gmra.mxu1 %v2271_v23  ;;  %809 = vmatmul.bf16.gmra.mxu0 %v744_v37  ;;  %v949_v23 = vunpack.c.h.b16 %v2321_v1 }
  0x74   : > { %901 = vmatpush.bf16.msra.mxu1 %v1982_v5  ;;  %1266 = vmatpush.bf16.msra.mxu0 %v2008_v24 }
  0x75   : > { %2037 = vmatpush.bf16.msra.mxu2 %v2008_v24  ;;  %1163 = vmatmul.bf16.vlgmr.msrb.gmra.mxu3 %v1094_v42  ;;  %v951_v48 = vpack.c.b16 %v949_v23, %v949_v23 }
  0x76   : > { %1017 = vmatmul.bf16.vlgmr.msrb.gmra.mxu2 %v955_v33 }
  0x77   : > { %v956_v1 = vrot.slane %v951_v48, 2 }
  0x78   : > { %902 = vmatpush.bf16.msra.mxu1 %v1981_v31  ;;  %1267 = vmatpush.bf16.msra.mxu0 %v2007_v32 }
  0x79   : > { %2038 = vmatpush.bf16.msra.mxu2 %v2007_v32  ;;  %v957_v56 = vsel %vm952_vm4, %v954_v22, %v956_v1 }
  0x7c   : > { %903 = vmatpush.bf16.msra.mxu1 %v1980_v40  ;;  %1268 = vmatpush.bf16.msra.mxu0 %v2006_v41 }
  0x7d   : > { %2039 = vmatpush.bf16.msra.mxu2 %v2006_v41 }
  0x80   : > { %904 = vmatpush.bf16.msra.mxu1 %v1979_v45  ;;  %1269 = vmatpush.bf16.msra.mxu0 %v2005_v46 }
  0x81   : > { %2040 = vmatpush.bf16.msra.mxu2 %v2005_v46 }
  0x83   : > { %457 = vmatmul.bf16.gmra.mxu1 %v387_v52  ;;  %814 = vmatmul.bf16.gmra.mxu0 %v743_v30 }
  0x85   : > { %1168 = vmatmul.bf16.gmra.mxu3 %v1103_v59 }
  0x86   : > { %1022 = vmatmul.bf16.gmra.mxu2 %v957_v56 }
  0x93   : > { %905 = vmatmul.bf16.vlgmr.msra.gmra.mxu1 %v843_v63  ;;  %1270 = vmatmul.bf16.vlgmr.msra.gmra.mxu0 %v1208_v3 }
  0x95   : > { %1173 = vmatmul.bf16.gmra.mxu3 %v1102_v57 }
  0x96   : > { %1027 = vmatmul.bf16.gmra.mxu2 %v956_v1 }
  0xa3   : > { %910 = vmatmul.bf16.gmra.mxu1 %v2404_v10  ;;  %1275 = vmatmul.bf16.gmra.mxu0 %v1210_v7 }
  0xa6   : > { %1280 = vmatmul.bf16.vlgmr.msra.gmra.mxu2 %v1209_v4 }
  0xb3   : > { %915 = vmatmul.bf16.gmra.mxu1 %v845_v27 }
  0xc0   : > { %v381_v34 = vpop.f32.mrf.mxu1  ;;  %v371_v49 = vpop.f32.mrf.mxu0 }
  0xc8   : > { %v383_v17 = vpop.f32.mrf.mxu1  ;;  %v373_v6 = vpop.f32.mrf.mxu0 }
  0xc9   : > { %v551_v61 = vpop.f32.mrf.mxu2  ;;  %v676_v8 = vpop.f32.mrf.mxu3 }
  0xd0   : > { %v376_v20 = vpop.f32.mrf.mxu0 }
  0xd1   : > { %v553_v9 = vpop.f32.mrf.mxu2  ;;  %v678_v11 = vpop.f32.mrf.mxu3 }
  0xd8   : > { %v378_v14 = vpop.f32.mrf.mxu0 }
  0xd9   : > { %v556_v12 = vpop.f32.mrf.mxu2  ;;  %v681_v10 = vpop.f32.mrf.mxu3 }
  0xe0   : > { %v448_v15 = vpop.f32.mrf.mxu1  ;;  %v805_v13 = vpop.f32.mrf.mxu0 }
  0xe1   : > { %v449_v16 = vadd.f32 %v448_v15, %v371_v49  ;;  %v558_v18 = vpop.f32.mrf.mxu2  ;;  %v683_v5 = vpop.f32.mrf.mxu3 }
  0xe3   : > { %v565_v19 = vadd.f32 %v551_v61, %v449_v16 }
  0xe5   : > { %v690_v48 = vadd.f32 %v676_v8, %v565_v19 }
  0xe7   : > { %v819_v52 = vadd.f32 %v805_v13, %v690_v48 }
  0xe8   : > { %v450_v54 = vpop.f32.mrf.mxu1  ;;  %v807_v25 = vpop.f32.mrf.mxu0 }
  0xe9   : > { %v451_v21 = vadd.f32 %v450_v54, %v373_v6  ;;  %v561_v22 = vpop.f32.mrf.mxu2  ;;  %v2444_v26 = vpop.f32.mrf.mxu3  ;;  %v1291_v6 = vld [vmem:[#allocation2] sm:$0xff] }
  0xea   : > { %v1292_v54 = vld [vmem:[#allocation2 + $0x20] sm:$0xff] }
  0xeb   : > { %v566_v24 = vadd.f32 %v553_v9, %v451_v21 }
  0xed   : > { %v691_v56 = vadd.f32 %v678_v11, %v566_v24 }
  0xef   : > { %v820_v63 = vadd.f32 %v807_v25, %v691_v56 }
  0xf0   : > { %v453_v28 = vpop.f32.mrf.mxu1  ;;  %v810_v32 = vpop.f32.mrf.mxu0 }
  0xf1   : > { %v454_v29 = vadd.f32 %v453_v28, %v376_v20  ;;  %v563_v30 = vpop.f32.mrf.mxu2  ;;  %v688_v33 = vpop.f32.mrf.mxu3 }
  0xf2   : > { %v1293_v33 = vld [vmem:[#allocation2 + $0x10] sm:$0xff] }
  0xf3   : > { %v567_v31 = vadd.f32 %v556_v12, %v454_v29 }
  0xf5   : > { %v692_v27 = vadd.f32 %v681_v10, %v567_v31 }
  0xf7   : > { %v821_v8 = vadd.f32 %v810_v32, %v692_v27 }
  0xf8   : > { %v455_v35 = vpop.f32.mrf.mxu1  ;;  %v812_v39 = vpop.f32.mrf.mxu0 }
  0xf9   : > { %v456_v36 = vadd.f32 %v455_v35, %v378_v14  ;;  %v1018_v37 = vpop.f32.mrf.mxu2  ;;  %v1164_v40 = vpop.f32.mrf.mxu3 }
  0xfb   : > { %v568_v38 = vadd.f32 %v558_v18, %v456_v36 }
  0xfd   : > { %v693_v15 = vadd.f32 %v683_v5, %v568_v38 }
  0xff   : > { %v822_v10 = vadd.f32 %v812_v39, %v693_v15 }
 0x100   : > { %v458_v41 = vpop.f32.mrf.mxu1  ;;  %v815_v44 = vpop.f32.mrf.mxu0 }
 0x101   : > { %v459_v23 = vadd.f32 %v458_v41, %v381_v34  ;;  %v1020_v42 = vpop.f32.mrf.mxu2  ;;  %v1166_v45 = vpop.f32.mrf.mxu3 }
 0x103   : > { %v569_v43 = vadd.f32 %v561_v22, %v459_v23  ;;  %v1294_v23 = vld [vmem:[#allocation2 + $0x18] sm:$0xf] }
 0x105   : > { %v694_v29 = vadd.f32 %v2444_v26, %v569_v43 }
 0x107   : > { %v823_v5 = vadd.f32 %v815_v44, %v694_v29 }
 0x108   : > { %v460_v46 = vpop.f32.mrf.mxu1  ;;  %v817_v50 = vpop.f32.mrf.mxu0 }
 0x109   : > { %v1023_v47 = vpop.f32.mrf.mxu2  ;;  %v1169_v51 = vpop.f32.mrf.mxu3 }
 0x110   : > { %v906_v1 = vpop.f32.mrf.mxu1  ;;  %v1271_v58 = vpop.f32.mrf.mxu0 }
 0x111   : > { %v920_v53 = vadd.f32 %v906_v1, %v819_v52  ;;  %v1025_v55 = vpop.f32.mrf.mxu2  ;;  %v1171_v60 = vpop.f32.mrf.mxu3 }
 0x113   : > { %v1032_v57 = vadd.f32 %v1018_v37, %v920_v53 }
 0x115   : > { %v1178_v59 = vadd.f32 %v1164_v40, %v1032_v57 }
 0x117   : > { %v1285_v0 = vadd.f32 %v1271_v58, %v1178_v59 }
 0x118   : > { %v908_v2 = vpop.f32.mrf.mxu1  ;;  %v1273_v49 = vpop.f32.mrf.mxu0 }
 0x119   : > { %v1295_v3 = vadd.f32 %v1290_v62, %v1285_v0  ;;  %v921_v4 = vadd.f32 %v908_v2, %v820_v63  ;;  %v1028_v7 = vpop.f32.mrf.mxu2  ;;  %v1174_v17 = vpop.f32.mrf.mxu3 }
 0x11b   : > { %1300 = vst [vmem:[#allocation2 + $0x8] sm:$0xff] %v1295_v3  ;;  %v1033_v34 = vadd.f32 %v1020_v42, %v921_v4 }
 0x11d   : > { %v1179_v61 = vadd.f32 %v1166_v45, %v1033_v34 }
 0x11f   : > { %v1286_v9 = vadd.f32 %v1273_v49, %v1179_v61 }
 0x120   : > { %v911_v20 = vpop.f32.mrf.mxu1  ;;  %v1276_v18 = vpop.f32.mrf.mxu0 }
 0x121   : > { %v1296_v11 = vadd.f32 %v1291_v6, %v1286_v9  ;;  %v922_v12 = vadd.f32 %v911_v20, %v821_v8  ;;  %v1030_v14 = vpop.f32.mrf.mxu2  ;;  %v1176_v13 = vpop.f32.mrf.mxu3 }
 0x123   : > { %1301 = vst [vmem:[#allocation2] sm:$0xff] %v1296_v11  ;;  %v1034_v16 = vadd.f32 %v1023_v47, %v922_v12 }
 0x125   : > { %v1180_v19 = vadd.f32 %v1169_v51, %v1034_v16 }
 0x127   : > { %v1287_v21 = vadd.f32 %v1276_v18, %v1180_v19 }
 0x128   : > { %v913_v22 = vpop.f32.mrf.mxu1  ;;  %v1278_v31 = vpop.f32.mrf.mxu0 }
 0x129   : > { %v1297_v24 = vadd.f32 %v1292_v54, %v1287_v21  ;;  %v923_v25 = vadd.f32 %v913_v22, %v822_v10  ;;  %v1281_v28 = vpop.f32.mrf.mxu2 }
 0x12b   : > { %1302 = vst [vmem:[#allocation2 + $0x20] sm:$0xff] %v1297_v24  ;;  %v1035_v30 = vadd.f32 %v1025_v55, %v923_v25 }
 0x12d   : > { %v1181_v32 = vadd.f32 %v1171_v60, %v1035_v30 }
 0x12f   : > { %v1288_v35 = vadd.f32 %v1278_v31, %v1181_v32 }
 0x130   : > { %v916_v36 = vpop.f32.mrf.mxu1 }
 0x131   : > { %v1298_v37 = vadd.f32 %v1293_v33, %v1288_v35  ;;  %v924_v38 = vadd.f32 %v916_v36, %v823_v5  ;;  %v1283_v40 = vpop.f32.mrf.mxu2 }
 0x133   : > { %1303 = vst [vmem:[#allocation2 + $0x10] sm:$0xff] %v1298_v37  ;;  %v1036_v39 = vadd.f32 %v1028_v7, %v924_v38 }
 0x135   : > { %v1182_v41 = vadd.f32 %v1174_v17, %v1036_v39 }
 0x137   : > { %v1289_v42 = vadd.f32 %v1281_v28, %v1182_v41  ;;  %1308 = sbr.rel (%p1934_p10) target bundleno = 445 (0x1bd), region = 40 }
 0x138   : > { %v918_v45 = vpop.f32.mrf.mxu1 }
 0x139   : > { %v1299_v46 = vadd.f32 %v1294_v23, %v1289_v42 }
 0x13b   : > { %1304 = vst [vmem:[#allocation2 + $0x18] sm:$0xf] %v1299_v46 }
 0x13c   : > { %v1316_v26 = vld [vmem:[%s2491_s2 + $0x10] sm:$0xff]  ;;  %v1314_v43 = vld [vmem:[%s2491_s2] sm:$0xff]  ;;  %v2163_v44 = vmov 0   ;;  %v1317_v48 = vld [vmem:[%s2491_s2 + $0x18] sm:$0xff] }
 0x13d   : > { %2104 = vset.pattern.permute.xlu1 %v2163_v44  ;;  %2103 = vset.pattern.permute.xlu0 %v2163_v44  ;;  %v1318_v47 = vld [vmem:[%s2491_s2 + $0x20] sm:$0xf]  ;;  %v1315_v50 = vld [vmem:[%s2491_s2 + $0x8] sm:$0xff]  ;;  %v1312_v60 = vld [vmem:[#allocation2 + $0x10] sm:$0xff] }
 0x13e   : > { %1331 = vperm.xlu1 %2104, %v1316_v26   ;;  %1321 = vperm.xlu0 %2103, %v1314_v43   ;;  %v1311_v53 = vld [vmem:[#allocation2 + $0x20] sm:$0xff]  ;;  %v1309_v55 = vld [vmem:[#allocation2 + $0x8] sm:$0xff] }
 0x13f   : > { %2105 = vset.pattern.permute.xlu2 %v2163_v44  ;;  %v1310_v62 = vld [vmem:[#allocation2] sm:$0xff] }
 0x140   : > { %1341 = vperm.xlu2 %2105, %v1318_v47  }
 0x142   : > { %v1313_v51 = vld [vmem:[#allocation2 + $0x18] sm:$0xf] }
 0x146   : > { %1336 = vperm.xlu1 %2104, %v1317_v48   ;;  %1326 = vperm.xlu0 %2103, %v1315_v50  }
 0x19a   : > { %v1342_v52 = vpop.permute.xlu2 %1341 }
 0x19b   : > { %v1348_v1 = vmul.f32 %v1342_v52, %v1313_v51 }
 0x19d   : > { %1353 = vst [vmem:[%s2237_s9 + $0x20] sm:$0xf] %v1348_v1 }
 0x1b0   : > { %v1332_v56 = vpop.permute.xlu1 %1331  ;;  %v1322_v57 = vpop.permute.xlu0 %1321 }
 0x1b1   : > { %v1346_v58 = vmul.f32 %v1332_v56, %v1311_v53  ;;  %v1344_v59 = vmul.f32 %v1322_v57, %v1309_v55 }
 0x1b3   : > { %1351 = vst [vmem:[%s2237_s9 + $0x10] sm:$0xff] %v1346_v58 }
 0x1b4   : > { %1349 = vst [vmem:[%s2237_s9] sm:$0xff] %v1344_v59 }
 0x1b8   : > { %v1337_v63 = vpop.permute.xlu1 %1336  ;;  %v1327_v0 = vpop.permute.xlu0 %1326 }
 0x1b9   : > { %v1347_v2 = vmul.f32 %v1337_v63, %v1312_v60  ;;  %v1345_v3 = vmul.f32 %v1327_v0, %v1310_v62 }
 0x1bb   : > { %1352 = vst [vmem:[%s2237_s9 + $0x18] sm:$0xff] %v1347_v2 }
 0x1bc   : > { %1350 = vst [vmem:[%s2237_s9 + $0x8] sm:$0xff] %v1345_v3 }
 0x1bd PF: > { %s13_s18 = sadd.s32 1, %s2160_s18   ;;  %s2493_s12 = smov %s2148_s15 }
 0x1be   : > { %p10_p11 = scmp.ge.s32.totalorder %s13_s18, 26   ;;  %s2494_s13 = smov %s2152_s16 }
 0x1bf   : > { %s2495_s14 = smov %s2156_s17  ;;  %s2496_s15 = smov %s2500_s19 }
 0x1c0   : > { %s2497_s16 = smov %s2504_s20  ;;  %s2498_s17 = smov %s2508_s21 }
 0x1c1   :  { %12 = sbr.rel (!%p10_p11) target bundleno = 4 (0x4), region = 79 }

</bundles_post_ra>
